<compile_context>
chip_gen: v6e
topology: v6e:2x2x1
jax: 0.10.0
libtpu: 0.0.40
codegen_flags: <defaults>
</compile_context>

<pallas_src>
import functools

import jax
import jax.numpy as jnp
from jax.experimental import pallas as pl
from jax.experimental.pallas import tpu as pltpu


# ---------------------------------------------------------------------------
# Weight / constant preparation (done once, outside the timed forward).
# ---------------------------------------------------------------------------
def _band_conv3x3(w, W):
    """(Cout, Cin, 3, 3) torch-layout weight -> (3, W*Cin, W*Cout) bf16 banded weights.

    Band kh satisfies: (x_rows @ band_kh)[i, j*Cout+o] == sum_{kw,c} x[i, s, c] *
    w[o, c, kh, kw] with s = j+kw-1 (out-of-range columns are simply absent: they
    correspond to zero padding)."""
    Cout, Cin = int(w.shape[0]), int(w.shape[1])
    bands = []
    for kh in range(3):
        Z = jnp.zeros((W, Cin, W, Cout), jnp.float32)
        for kw in range(3):
            j = jnp.arange(max(0, 1 - kw), min(W, W + 1 - kw))
            s = j + kw - 1
            blk = jnp.broadcast_to(w[:, :, kh, kw].T, (int(j.shape[0]), Cin, Cout))
            Z = Z.at[s, :, j, :].set(blk)
        bands.append(Z.reshape(W * Cin, W * Cout))
    return jnp.stack(bands).astype(jnp.bfloat16)


def _band_upconv2x2(w, W2):
    """ConvTranspose2d weight (Cin, Cout, 2, 2) -> (2, W2*Cin, 2*W2*Cout) bf16 bands.

    Band di maps input row i2 to output row 2*i2+di:
    (x2 @ band_di)[i2, (2*j2+dj)*Cout+o] == sum_c x2[i2, j2*Cin+c] * w[c, o, di, dj]."""
    Cin, Cout = int(w.shape[0]), int(w.shape[1])
    W = 2 * W2
    j2 = jnp.arange(W2)
    bands = []
    for di in range(2):
        Z = jnp.zeros((W2, Cin, W, Cout), jnp.float32)
        for dj in range(2):
            blk = jnp.broadcast_to(w[:, :, di, dj], (W2, Cin, Cout))
            Z = Z.at[j2, :, 2 * j2 + dj, :].set(blk)
        bands.append(Z.reshape(W2 * Cin, W * Cout))
    return jnp.stack(bands).astype(jnp.bfloat16)


def _block_diag_1x1(w, W):
    """1x1 conv weight (Cout, Cin, 1, 1) -> (W*Cin, W*Cout) bf16 block-diagonal."""
    Cout, Cin = int(w.shape[0]), int(w.shape[1])
    j = jnp.arange(W)
    Z = jnp.zeros((W, Cin, W, Cout), jnp.float32)
    blk = jnp.broadcast_to(w[:, :, 0, 0].T, (W, Cin, Cout))
    Z = Z.at[j, :, j, :].set(blk)
    return Z.reshape(W * Cin, W * Cout).astype(jnp.bfloat16)


def _tile_bias(b, W):
    """(Cout,) -> (1, W*Cout) f32 lane-dense bias row."""
    return jnp.tile(b.astype(jnp.float32), (W,)).reshape(1, -1)


def _row_select(H):
    """(H//2, H-1) f32 selection matrix: [i2, 2*i2] = 1 (picks even rows)."""
    i2 = jnp.arange(H // 2)
    return jnp.zeros((H // 2, H - 1), jnp.float32).at[i2, 2 * i2].set(1.0)


def _col_select(W, C):
    """((W-1)*C, (W//2)*C) f32 selection matrix: [2*j2*C+c, j2*C+c] = 1."""
    q = jnp.arange((W // 2) * C)
    r = 2 * (q // C) * C + (q % C)
    return jnp.zeros(((W - 1) * C, (W // 2) * C), jnp.float32).at[r, q].set(1.0)


def _row_interleave(H):
    """(2, H, H//2) f32: P[di, 2*i2+di, i2] = 1 (interleaves the two upconv row sets)."""
    i2 = jnp.arange(H // 2)
    p0 = jnp.zeros((H, H // 2), jnp.float32).at[2 * i2, i2].set(1.0)
    p1 = jnp.zeros((H, H // 2), jnp.float32).at[2 * i2 + 1, i2].set(1.0)
    return jnp.stack([p0, p1])


def _vmem_limit(inputs, out_shapes):
    """Right-sized VMEM budget: 2x (double-buffer) operand bytes + fixed headroom."""
    nbytes = 0
    for a in inputs:
        nbytes += int(a.size) * a.dtype.itemsize
    for o in out_shapes:
        sz = 1
        for d in o.shape:
            sz *= int(d)
        nbytes += sz * jnp.dtype(o.dtype).itemsize
    return int(min(32 << 20, max(8 << 20, 2 * nbytes + (4 << 20))))


# ---------------------------------------------------------------------------
# Fused DownConv block kernel: conv1 + ReLU + conv2 + ReLU (+ 2x2 maxpool).
# Activations use a lane-dense (H, W*C) layout; conv = 3 banded matmuls over the
# zero-row-padded (H+2, W*Cin) VMEM scratch.  bf16 MXU operands, f32 accumulate.
# ---------------------------------------------------------------------------
def _down_block_kernel(x_ref, w1_ref, b1_ref, w2_ref, b2_ref, *rest, cout, pooling):
    if pooling:
        srow_ref, scol_ref, bp_ref, pool_ref, xp1, xp2 = rest
    else:
        bp_ref, xp1, xp2 = rest
        srow_ref = scol_ref = pool_ref = None

    H = x_ref.shape[0]
    WCo = b1_ref.shape[1]
    W = WCo // cout

    # --- conv1: top/bottom zero rows + 3 banded matmuls (K = W*Cin, N = W*Cout).
    xp1[...] = jnp.zeros_like(xp1)
    xp1[pl.ds(1, H), :] = x_ref[...]
    acc = jnp.zeros((H, WCo), jnp.float32)
    for kh in range(3):
        acc = acc + jnp.dot(xp1[pl.ds(kh, H), :], w1_ref[kh],
                            preferred_element_type=jnp.float32)
    y1 = jnp.maximum(acc + b1_ref[...], 0.0)

    # --- conv2 (input stays in VMEM).
    xp2[...] = jnp.zeros_like(xp2)
    xp2[pl.ds(1, H), :] = y1.astype(xp2.dtype)
    acc = jnp.zeros((H, WCo), jnp.float32)
    for kh in range(3):
        acc = acc + jnp.dot(xp2[pl.ds(kh, H), :], w2_ref[kh],
                            preferred_element_type=jnp.float32)
    y2 = jnp.maximum(acc + b2_ref[...], 0.0)

    bp_ref[...] = y2.astype(bp_ref.dtype)          # before_pool (dropout = identity)

    if pooling:
        # 2x2 maxpool fused in: pairwise max + exact 0/1 selection matmuls (MXU),
        # pooling the same bf16 values that were stored as before_pool.
        a = bp_ref[pl.ds(0, H - 1), :].astype(jnp.float32)
        b = bp_ref[pl.ds(1, H - 1), :].astype(jnp.float32)
        rm = jnp.maximum(a, b)                                        # (H-1, W*C)
        rsel = jnp.dot(srow_ref[...], rm,
                       preferred_element_type=jnp.float32)            # (H/2, W*C)
        cm = jnp.maximum(rsel[:, 0:(W - 1) * cout], rsel[:, cout:WCo])
        pooled = jnp.dot(cm, scol_ref[...],
                         preferred_element_type=jnp.float32)          # (H/2, W/2*C)
        pool_ref[...] = pooled.astype(pool_ref.dtype)


def _down_block(x, blk, c):
    N = x.shape[0]
    H, W, cin, cout, pooling = c["H"], c["W"], c["cin"], c["cout"], c["pooling"]
    WCi, WCo = W * cin, W * cout

    inputs = [x, blk["w1"], blk["b1"], blk["w2"], blk["b2"]]
    in_specs = [
        pl.BlockSpec((None, H, WCi), lambda n: (n, 0, 0)),
        pl.BlockSpec((3, WCi, WCo), lambda n: (0, 0, 0)),
        pl.BlockSpec((1, WCo), lambda n: (0, 0)),
        pl.BlockSpec((3, WCo, WCo), lambda n: (0, 0, 0)),
        pl.BlockSpec((1, WCo), lambda n: (0, 0)),
    ]
    out_shape = [jax.ShapeDtypeStruct((N, H, WCo), jnp.bfloat16)]
    out_specs = [pl.BlockSpec((None, H, WCo), lambda n: (n, 0, 0))]
    if pooling:
        inputs += [blk["srow"], blk["scol"]]
        in_specs += [
            pl.BlockSpec((H // 2, H - 1), lambda n: (0, 0)),
            pl.BlockSpec(((W - 1) * cout, (W // 2) * cout), lambda n: (0, 0)),
        ]
        out_shape.append(
            jax.ShapeDtypeStruct((N, H // 2, (W // 2) * cout), jnp.bfloat16))
        out_specs.append(
            pl.BlockSpec((None, H // 2, (W // 2) * cout), lambda n: (n, 0, 0)))

    scratch = [pltpu.VMEM((H + 2, WCi), jnp.bfloat16),
               pltpu.VMEM((H + 2, WCo), jnp.bfloat16)]
    kernel = functools.partial(_down_block_kernel, cout=cout, pooling=pooling)

    return pl.pallas_call(
        kernel,
        out_shape=tuple(out_shape) if pooling else out_shape[0],
        grid_spec=pltpu.PrefetchScalarGridSpec(
            num_scalar_prefetch=0,
            grid=(N,),
            in_specs=in_specs,
            out_specs=tuple(out_specs) if pooling else out_specs[0],
            scratch_shapes=scratch,
        ),
        compiler_params=pltpu.CompilerParams(
            dimension_semantics=("parallel",),
            vmem_limit_bytes=_vmem_limit(inputs, out_shape),
        ),
    )(*inputs)


# ---------------------------------------------------------------------------
# Fused UpConv block kernel: ConvTranspose2d(k=2,s=2) + concat + conv1 + ReLU +
# conv2 + ReLU (+ final 1x1 conv for the last block).
# ---------------------------------------------------------------------------
def _up_block_kernel(xu_ref, xd_ref, rup_ref, bup_ref, p_ref,
                     w1u_ref, w1d_ref, b1_ref, w2_ref, b2_ref, *rest, last):
    if last:
        fw_ref, fb_ref, out_ref, xpu, xpd, xp2 = rest
    else:
        out_ref, xpu, xpd, xp2 = rest
        fw_ref = fb_ref = None

    H = xd_ref.shape[0]
    WCo = xd_ref.shape[1]

    # --- ConvTranspose2d(k=2, s=2): banded matmul per output-row parity + 0/1
    #     row-interleave matmul.
    up = jnp.zeros((H, WCo), jnp.float32)
    for di in range(2):
        a = jnp.dot(xu_ref[...], rup_ref[di], preferred_element_type=jnp.float32)
        up = up + jnp.dot(p_ref[di], a, preferred_element_type=jnp.float32)
    up = up + bup_ref[...]

    # --- torch.cat((from_up, from_down), 1) fused into conv1 via two padded halves
    #     and split weights (the concatenated tensor is never materialized).
    xpu[...] = jnp.zeros_like(xpu)
    xpu[pl.ds(1, H), :] = up.astype(xpu.dtype)
    xpd[...] = jnp.zeros_like(xpd)
    xpd[pl.ds(1, H), :] = xd_ref[...]
    acc = jnp.zeros((H, WCo), jnp.float32)
    for kh in range(3):
        acc = acc + jnp.dot(xpu[pl.ds(kh, H), :], w1u_ref[kh],
                            preferred_element_type=jnp.float32)
        acc = acc + jnp.dot(xpd[pl.ds(kh, H), :], w1d_ref[kh],
                            preferred_element_type=jnp.float32)
    y1 = jnp.maximum(acc + b1_ref[...], 0.0)

    # --- conv2.
    xp2[...] = jnp.zeros_like(xp2)
    xp2[pl.ds(1, H), :] = y1.astype(xp2.dtype)
    acc = jnp.zeros((H, WCo), jnp.float32)
    for kh in range(3):
        acc = acc + jnp.dot(xp2[pl.ds(kh, H), :], w2_ref[kh],
                            preferred_element_type=jnp.float32)
    y2 = jnp.maximum(acc + b2_ref[...], 0.0)

    if last:
        # Final 1x1 conv (no activation) fused in as one block-diagonal matmul.
        fin = jnp.dot(y2.astype(jnp.bfloat16), fw_ref[...],
                      preferred_element_type=jnp.float32) + fb_ref[...]
        out_ref[...] = fin.astype(out_ref.dtype)
    else:
        out_ref[...] = y2.astype(out_ref.dtype)


def _up_block(xu, xd, blk, c):
    N = xu.shape[0]
    H, W, cout, cin_up, last = c["H"], c["W"], c["cout"], c["cin_up"], c["last"]
    H2, W2 = H // 2, W // 2
    WCo = W * cout

    inputs = [xu, xd, blk["rup"], blk["bup"], blk["pmat"],
              blk["w1u"], blk["w1d"], blk["b1"], blk["w2"], blk["b2"]]
    in_specs = [
        pl.BlockSpec((None, H2, W2 * cin_up), lambda n: (n, 0, 0)),
        pl.BlockSpec((None, H, WCo), lambda n: (n, 0, 0)),
        pl.BlockSpec((2, W2 * cin_up, WCo), lambda n: (0, 0, 0)),
        pl.BlockSpec((1, WCo), lambda n: (0, 0)),
        pl.BlockSpec((2, H, H2), lambda n: (0, 0, 0)),
        pl.BlockSpec((3, WCo, WCo), lambda n: (0, 0, 0)),
        pl.BlockSpec((3, WCo, WCo), lambda n: (0, 0, 0)),
        pl.BlockSpec((1, WCo), lambda n: (0, 0)),
        pl.BlockSpec((3, WCo, WCo), lambda n: (0, 0, 0)),
        pl.BlockSpec((1, WCo), lambda n: (0, 0)),
    ]
    if last:
        nc = c["n_classes"]
        inputs += [blk["fw"], blk["fb"]]
        in_specs += [
            pl.BlockSpec((WCo, W * nc), lambda n: (0, 0)),
            pl.BlockSpec((1, W * nc), lambda n: (0, 0)),
        ]
        out_shape = jax.ShapeDtypeStruct((N, H, W * nc), jnp.float32)
        out_spec = pl.BlockSpec((None, H, W * nc), lambda n: (n, 0, 0))
    else:
        out_shape = jax.ShapeDtypeStruct((N, H, WCo), jnp.bfloat16)
        out_spec = pl.BlockSpec((None, H, WCo), lambda n: (n, 0, 0))

    scratch = [pltpu.VMEM((H + 2, WCo), jnp.bfloat16) for _ in range(3)]
    kernel = functools.partial(_up_block_kernel, last=last)

    return pl.pallas_call(
        kernel,
        out_shape=out_shape,
        grid_spec=pltpu.PrefetchScalarGridSpec(
            num_scalar_prefetch=0,
            grid=(N,),
            in_specs=in_specs,
            out_specs=out_spec,
            scratch_shapes=scratch,
        ),
        compiler_params=pltpu.CompilerParams(
            dimension_semantics=("parallel",),
            vmem_limit_bytes=_vmem_limit(inputs, [out_shape]),
        ),
    )(*inputs)


# ---------------------------------------------------------------------------
# Parameters (PyTorch layouts), one-time kernel-friendly repacking, and forward.
# ---------------------------------------------------------------------------
def init_unet_params(key, in_ch, start_ch, depth, n_classes):
    keys = iter(jax.random.split(key, 32))

    def xavier(k, co, ci, kh, kw):
        std = (2.0 / ((ci + co) * kh * kw)) ** 0.5
        return std * jax.random.normal(k, (co, ci, kh, kw), jnp.float32)

    params = {"down": [], "up": []}
    outs = in_ch
    for i in range(depth):
        ins = in_ch if i == 0 else outs
        outs = start_ch * 2 ** i
        params["down"].append({
            "w1": xavier(next(keys), outs, ins, 3, 3),
            "b1": jnp.zeros((outs,), jnp.float32),
            "w2": xavier(next(keys), outs, outs, 3, 3),
            "b2": jnp.zeros((outs,), jnp.float32),
        })
    for _ in range(depth - 1):
        ins = outs
        outs = ins // 2
        lim = 1.0 / (ins * 4) ** 0.5          # PyTorch default ConvTranspose2d init
        params["up"].append({
            "up_w": jax.random.uniform(next(keys), (ins, outs, 2, 2),
                                       jnp.float32, -lim, lim),
            "up_b": jax.random.uniform(next(keys), (outs,), jnp.float32, -lim, lim),
            "w1": xavier(next(keys), outs, 2 * outs, 3, 3),
            "b1": jnp.zeros((outs,), jnp.float32),
            "w2": xavier(next(keys), outs, outs, 3, 3),
            "b2": jnp.zeros((outs,), jnp.float32),
        })
    params["final_w"] = xavier(next(keys), n_classes, outs, 1, 1)
    params["final_b"] = jnp.zeros((n_classes,), jnp.float32)
    return params


def prepare_unet_params(params, height, width):
    """One-time repack of PyTorch-layout weights into banded/tiled kernel operands.

    Returns (arrays_pytree, static_cfg); only `arrays_pytree` is a jit argument."""
    depth = len(params["down"])
    assert len(params["up"]) >= 1, "final-conv fusion assumes depth >= 2"
    downs, ups, cfg_down, cfg_up = [], [], [], []
    H, W = height, width
    for i, p in enumerate(params["down"]):
        pooling = i < depth - 1
        cout, cin = int(p["w1"].shape[0]), int(p["w1"].shape[1])
        blk = dict(w1=_band_conv3x3(p["w1"], W), b1=_tile_bias(p["b1"], W),
                   w2=_band_conv3x3(p["w2"], W), b2=_tile_bias(p["b2"], W))
        if pooling:
            blk["srow"] = _row_select(H)
            blk["scol"] = _col_select(W, cout)
        downs.append(blk)
        cfg_down.append(dict(H=H, W=W, cin=cin, cout=cout, pooling=pooling))
        if pooling:
            H //= 2
            W //= 2
    nc = int(params["final_w"].shape[0])
    for i, p in enumerate(params["up"]):
        H *= 2
        W *= 2
        cin_up, cout = int(p["up_w"].shape[0]), int(p["up_w"].shape[1])
        last = i == len(params["up"]) - 1
        blk = dict(rup=_band_upconv2x2(p["up_w"], W // 2),
                   bup=_tile_bias(p["up_b"], W),
                   pmat=_row_interleave(H),
                   w1u=_band_conv3x3(p["w1"][:, :cout], W),
                   w1d=_band_conv3x3(p["w1"][:, cout:], W),
                   b1=_tile_bias(p["b1"], W),
                   w2=_band_conv3x3(p["w2"], W),
                   b2=_tile_bias(p["b2"], W))
        if last:
            blk["fw"] = _block_diag_1x1(params["final_w"], W)
            blk["fb"] = _tile_bias(params["final_b"], W)
        ups.append(blk)
        cfg_up.append(dict(H=H, W=W, cout=cout, cin_up=cin_up, last=last,
                           n_classes=nc))
    arrays = {"down": downs, "up": ups}
    cfg = {"down": tuple(cfg_down), "up": tuple(cfg_up),
           "n_classes": nc, "H": H, "W": W}
    return arrays, cfg


def make_unet_forward(cfg):
    def forward(prep, x_nchw):
        N, Cin0, H0, W0 = x_nchw.shape
        x = jnp.transpose(x_nchw, (0, 2, 3, 1)).reshape(N, H0, W0 * Cin0)
        x = x.astype(jnp.bfloat16)
        skips = []
        for blk, c in zip(prep["down"], cfg["down"]):
            if c["pooling"]:
                bp, x = _down_block(x, blk, c)
                skips.append(bp)
            else:
                x = _down_block(x, blk, c)
        for i, (blk, c) in enumerate(zip(prep["up"], cfg["up"])):
            x = _up_block(x, skips[-(i + 1)], blk, c)
        nc, H, W = cfg["n_classes"], cfg["H"], cfg["W"]
        y = x.reshape(N, H, W, nc)
        return jnp.transpose(y, (0, 3, 1, 2))      # NHWC -> NCHW
    return forward


# ---------------------------------------------------------------------------
# Pure-XLA reference (mimics the kernels' bf16 rounding points) for self-checking.
# ---------------------------------------------------------------------------
def _ref_conv3x3(x, w, b):
    y = jax.lax.conv_general_dilated(
        x, w, window_strides=(1, 1), padding=((1, 1), (1, 1)),
        dimension_numbers=("NHWC", "OIHW", "NHWC"))
    return y + b.reshape(1, 1, 1, -1)


def _ref_maxpool2x2(x):
    n, h, w, c = x.shape
    return jnp.max(x.reshape(n, h // 2, 2, w // 2, 2, c), axis=(2, 4))


def _ref_upconv2x2(x, w, b):
    n, h, wd, _ = x.shape
    cout = w.shape[1]
    t = jnp.einsum("nijc,coab->niajbo", x, w)
    return t.reshape(n, 2 * h, 2 * wd, cout) + b.reshape(1, 1, 1, -1)


def unet_reference(params, x_nchw):
    q = lambda v: v.astype(jnp.bfloat16).astype(jnp.float32)
    x = q(jnp.transpose(x_nchw, (0, 2, 3, 1)))
    depth = len(params["down"])
    skips = []
    for i, p in enumerate(params["down"]):
        x = q(jnp.maximum(_ref_conv3x3(x, q(p["w1"]), p["b1"]), 0.0))
        x = q(jnp.maximum(_ref_conv3x3(x, q(p["w2"]), p["b2"]), 0.0))
        skips.append(x)
        if i < depth - 1:
            x = _ref_maxpool2x2(x)
    for i, p in enumerate(params["up"]):
        skip = skips[-(i + 2)]
        up = q(_ref_upconv2x2(x, q(p["up_w"]), p["up_b"]))
        cat = jnp.concatenate([up, skip], axis=-1)
        x = q(jnp.maximum(_ref_conv3x3(cat, q(p["w1"]), p["b1"]), 0.0))
        x = q(jnp.maximum(_ref_conv3x3(x, q(p["w2"]), p["b2"]), 0.0))
    wf = q(params["final_w"][:, :, 0, 0])
    y = jnp.einsum("nhwc,oc->nhwo", x, wf) + params["final_b"].reshape(1, 1, 1, -1)
    return jnp.transpose(y, (0, 3, 1, 2))


# ---------------------------------------------------------------------------
if __name__ == "__main__":
    # UNet config: input_shape=(16, 16, 4), start_ch=8, depth=3, n_classes=3,
    # up_mode='transpose', merge_mode='concat', batch_norm=False, eval-mode dropout.
    batch, in_ch, height, width = 2, 4, 16, 16
    start_ch, depth, n_classes = 8, 3, 3

    key = jax.random.PRNGKey(0)
    k_params, k_x = jax.random.split(key)
    params = init_unet_params(k_params, in_ch, start_ch, depth, n_classes)
    x = jax.random.normal(k_x, (batch, in_ch, height, width), jnp.float32)

    # One-time weight repacking (outside the timed forward), then the hot path is
    # 5 pallas_calls + 2 layout transposes.
    prep, cfg = prepare_unet_params(params, height, width)
    fwd = jax.jit(make_unet_forward(cfg))

    out = jax.block_until_ready(fwd(prep, x))
    assert out.shape == (batch, n_classes, height, width), out.shape
    assert bool(jnp.all(jnp.isfinite(out)))

    # Correctness check against a pure-XLA reference that rounds to bf16 at the same
    # points as the kernels (residual difference is f32 accumulation-order noise).
    ref = jax.block_until_ready(unet_reference(params, x))
    max_err = float(jnp.max(jnp.abs(out - ref)))
    assert max_err < 3e-2, max_err

    print("KERNEL_OK")
</pallas_src>

<mosaic_0001>
module attributes {stable_mosaic.version = 11 : i64} {
  func.func @_down_block_kernel(%arg0: i32, %arg1: memref<1x16x64xbf16, #tpu.memory_space<vmem>>, %arg2: memref<3x64x128xbf16, #tpu.memory_space<vmem>>, %arg3: memref<1x128xf32, #tpu.memory_space<vmem>>, %arg4: memref<3x128x128xbf16, #tpu.memory_space<vmem>>, %arg5: memref<1x128xf32, #tpu.memory_space<vmem>>, %arg6: memref<8x15xf32, #tpu.memory_space<vmem>>, %arg7: memref<120x64xf32, #tpu.memory_space<vmem>>, %arg8: memref<1x16x128xbf16, #tpu.memory_space<vmem>>, %arg9: memref<1x8x64xbf16, #tpu.memory_space<vmem>>, %arg10: memref<18x64xbf16, #tpu.memory_space<vmem>>, %arg11: memref<18x128xbf16, #tpu.memory_space<vmem>>) attributes {dimension_semantics = [#tpu.dimension_semantics<parallel>], iteration_bounds = array<i64: 2>, scalar_prefetch = 0 : i64, scratch_operands = 2 : i64, tpu.core_type = #tpu.core_type<tc>, window_params = [{transform_indices = @transform_0, window_bounds = array<i64: 1, 16, 64>}, {pipeline_mode = #tpu.pipeline_mode<synchronous>, transform_indices = @transform_1, window_bounds = array<i64: 3, 64, 128>}, {pipeline_mode = #tpu.pipeline_mode<synchronous>, transform_indices = @transform_2, window_bounds = array<i64: 1, 128>}, {pipeline_mode = #tpu.pipeline_mode<synchronous>, transform_indices = @transform_3, window_bounds = array<i64: 3, 128, 128>}, {pipeline_mode = #tpu.pipeline_mode<synchronous>, transform_indices = @transform_4, window_bounds = array<i64: 1, 128>}, {pipeline_mode = #tpu.pipeline_mode<synchronous>, transform_indices = @transform_5, window_bounds = array<i64: 8, 15>}, {pipeline_mode = #tpu.pipeline_mode<synchronous>, transform_indices = @transform_6, window_bounds = array<i64: 120, 64>}, {transform_indices = @transform_7, window_bounds = array<i64: 1, 16, 128>}, {transform_indices = @transform_8, window_bounds = array<i64: 1, 8, 64>}]} {
    %cst = arith.constant 0.000000e+00 : bf16
    %0 = vector.broadcast %cst : bf16 to vector<18x64xbf16>
    %c0 = arith.constant 0 : index
    %c0_0 = arith.constant 0 : index
    %1 = vector.load %arg10[%c0, %c0_0] : memref<18x64xbf16, #tpu.memory_space<vmem>>, vector<18x64xbf16>
    tpu.vector_store %arg10[%c0, %c0_0], %0 {strides = array<i32>} : memref<18x64xbf16, #tpu.memory_space<vmem>>, vector<18x64xbf16>,
    %c0_1 = arith.constant 0 : index
    %c0_2 = arith.constant 0 : index
    %c0_3 = arith.constant 0 : index
    %2 = vector.load %arg1[%c0_1, %c0_2, %c0_3] : memref<1x16x64xbf16, #tpu.memory_space<vmem>>, vector<1x16x64xbf16>
    %3 = vector.shape_cast %2 : vector<1x16x64xbf16> to vector<16x64xbf16>
    %c1 = arith.constant 1 : index
    %c0_4 = arith.constant 0 : index
    %4 = vector.load %arg10[%c1, %c0_4] : memref<18x64xbf16, #tpu.memory_space<vmem>>, vector<16x64xbf16>
    tpu.vector_store %arg10[%c1, %c0_4], %3 {strides = array<i32>} : memref<18x64xbf16, #tpu.memory_space<vmem>>, vector<16x64xbf16>,
    %cst_5 = arith.constant 0.000000e+00 : f32
    %5 = vector.broadcast %cst_5 : f32 to vector<16x128xf32>
    %c0_6 = arith.constant 0 : index
    %c0_7 = arith.constant 0 : index
    %6 = vector.load %arg10[%c0_6, %c0_7] : memref<18x64xbf16, #tpu.memory_space<vmem>>, vector<16x64xbf16>
    %c0_8 = arith.constant 0 : index
    %c0_9 = arith.constant 0 : index
    %c0_10 = arith.constant 0 : index
    %7 = vector.load %arg2[%c0_8, %c0_9, %c0_10] : memref<3x64x128xbf16, #tpu.memory_space<vmem>>, vector<1x64x128xbf16>
    %8 = vector.shape_cast %7 : vector<1x64x128xbf16> to vector<64x128xbf16>
    %cst_11 = arith.constant dense<0.000000e+00> : vector<16x128xf32>
    %9 = tpu.matmul %6, %8, %cst_11 {dimension_numbers = #tpu.dot_dimension_numbers<[1], [0], [0], [1], [0, 0, 1, 1], [], []>} : vector<16x64xbf16>, vector<64x128xbf16>, vector<16x128xf32> -> vector<16x128xf32>
    %10 = arith.addf %5, %9 : vector<16x128xf32>
    %c1_12 = arith.constant 1 : index
    %c0_13 = arith.constant 0 : index
    %11 = vector.load %arg10[%c1_12, %c0_13] : memref<18x64xbf16, #tpu.memory_space<vmem>>, vector<16x64xbf16>
    %c1_14 = arith.constant 1 : index
    %c0_15 = arith.constant 0 : index
    %c0_16 = arith.constant 0 : index
    %12 = vector.load %arg2[%c1_14, %c0_15, %c0_16] : memref<3x64x128xbf16, #tpu.memory_space<vmem>>, vector<1x64x128xbf16>
    %13 = vector.shape_cast %12 : vector<1x64x128xbf16> to vector<64x128xbf16>
    %cst_17 = arith.constant dense<0.000000e+00> : vector<16x128xf32>
    %14 = tpu.matmul %11, %13, %cst_17 {dimension_numbers = #tpu.dot_dimension_numbers<[1], [0], [0], [1], [0, 0, 1, 1], [], []>} : vector<16x64xbf16>, vector<64x128xbf16>, vector<16x128xf32> -> vector<16x128xf32>
    %15 = arith.addf %10, %14 : vector<16x128xf32>
    %c2 = arith.constant 2 : index
    %c0_18 = arith.constant 0 : index
    %16 = vector.load %arg10[%c2, %c0_18] : memref<18x64xbf16, #tpu.memory_space<vmem>>, vector<16x64xbf16>
    %c2_19 = arith.constant 2 : index
    %c0_20 = arith.constant 0 : index
    %c0_21 = arith.constant 0 : index
    %17 = vector.load %arg2[%c2_19, %c0_20, %c0_21] : memref<3x64x128xbf16, #tpu.memory_space<vmem>>, vector<1x64x128xbf16>
    %18 = vector.shape_cast %17 : vector<1x64x128xbf16> to vector<64x128xbf16>
    %cst_22 = arith.constant dense<0.000000e+00> : vector<16x128xf32>
    %19 = tpu.matmul %16, %18, %cst_22 {dimension_numbers = #tpu.dot_dimension_numbers<[1], [0], [0], [1], [0, 0, 1, 1], [], []>} : vector<16x64xbf16>, vector<64x128xbf16>, vector<16x128xf32> -> vector<16x128xf32>
    %20 = arith.addf %15, %19 : vector<16x128xf32>
    %c0_23 = arith.constant 0 : index
    %c0_24 = arith.constant 0 : index
    %21 = vector.load %arg3[%c0_23, %c0_24] : memref<1x128xf32, #tpu.memory_space<vmem>>, vector<1x128xf32>
    %22 = vector.broadcast %21 : vector<1x128xf32> to vector<16x128xf32>
    %23 = arith.addf %20, %22 : vector<16x128xf32>
    %cst_25 = arith.constant 0.000000e+00 : f32
    %24 = vector.broadcast %cst_25 : f32 to vector<16x128xf32>
    %25 = arith.maximumf %23, %24 : vector<16x128xf32>
    %cst_26 = arith.constant 0.000000e+00 : bf16
    %26 = vector.broadcast %cst_26 : bf16 to vector<18x128xbf16>
    %c0_27 = arith.constant 0 : index
    %c0_28 = arith.constant 0 : index
    %27 = vector.load %arg11[%c0_27, %c0_28] : memref<18x128xbf16, #tpu.memory_space<vmem>>, vector<18x128xbf16>
    tpu.vector_store %arg11[%c0_27, %c0_28], %26 {strides = array<i32>} : memref<18x128xbf16, #tpu.memory_space<vmem>>, vector<18x128xbf16>,
    %28 = arith.truncf %25 : vector<16x128xf32> to vector<16x128xbf16>
    %c1_29 = arith.constant 1 : index
    %c0_30 = arith.constant 0 : index
    %29 = vector.load %arg11[%c1_29, %c0_30] : memref<18x128xbf16, #tpu.memory_space<vmem>>, vector<16x128xbf16>
    tpu.vector_store %arg11[%c1_29, %c0_30], %28 {strides = array<i32>} : memref<18x128xbf16, #tpu.memory_space<vmem>>, vector<16x128xbf16>,
    %cst_31 = arith.constant 0.000000e+00 : f32
    %30 = vector.broadcast %cst_31 : f32 to vector<16x128xf32>
    %c0_32 = arith.constant 0 : index
    %c0_33 = arith.constant 0 : index
    %31 = vector.load %arg11[%c0_32, %c0_33] : memref<18x128xbf16, #tpu.memory_space<vmem>>, vector<16x128xbf16>
    %c0_34 = arith.constant 0 : index
    %c0_35 = arith.constant 0 : index
    %c0_36 = arith.constant 0 : index
    %32 = vector.load %arg4[%c0_34, %c0_35, %c0_36] : memref<3x128x128xbf16, #tpu.memory_space<vmem>>, vector<1x128x128xbf16>
    %33 = vector.shape_cast %32 : vector<1x128x128xbf16> to vector<128x128xbf16>
    %cst_37 = arith.constant dense<0.000000e+00> : vector<16x128xf32>
    %34 = tpu.matmul %31, %33, %cst_37 {dimension_numbers = #tpu.dot_dimension_numbers<[1], [0], [0], [1], [0, 0, 1, 1], [], []>} : vector<16x128xbf16>, vector<128x128xbf16>, vector<16x128xf32> -> vector<16x128xf32>
    %35 = arith.addf %30, %34 : vector<16x128xf32>
    %c1_38 = arith.constant 1 : index
    %c0_39 = arith.constant 0 : index
    %36 = vector.load %arg11[%c1_38, %c0_39] : memref<18x128xbf16, #tpu.memory_space<vmem>>, vector<16x128xbf16>
    %c1_40 = arith.constant 1 : index
    %c0_41 = arith.constant 0 : index
    %c0_42 = arith.constant 0 : index
    %37 = vector.load %arg4[%c1_40, %c0_41, %c0_42] : memref<3x128x128xbf16, #tpu.memory_space<vmem>>, vector<1x128x128xbf16>
    %38 = vector.shape_cast %37 : vector<1x128x128xbf16> to vector<128x128xbf16>
    %cst_43 = arith.constant dense<0.000000e+00> : vector<16x128xf32>
    %39 = tpu.matmul %36, %38, %cst_43 {dimension_numbers = #tpu.dot_dimension_numbers<[1], [0], [0], [1], [0, 0, 1, 1], [], []>} : vector<16x128xbf16>, vector<128x128xbf16>, vector<16x128xf32> -> vector<16x128xf32>
    %40 = arith.addf %35, %39 : vector<16x128xf32>
    %c2_44 = arith.constant 2 : index
    %c0_45 = arith.constant 0 : index
    %41 = vector.load %arg11[%c2_44, %c0_45] : memref<18x128xbf16, #tpu.memory_space<vmem>>, vector<16x128xbf16>
    %c2_46 = arith.constant 2 : index
    %c0_47 = arith.constant 0 : index
    %c0_48 = arith.constant 0 : index
    %42 = vector.load %arg4[%c2_46, %c0_47, %c0_48] : memref<3x128x128xbf16, #tpu.memory_space<vmem>>, vector<1x128x128xbf16>
    %43 = vector.shape_cast %42 : vector<1x128x128xbf16> to vector<128x128xbf16>
    %cst_49 = arith.constant dense<0.000000e+00> : vector<16x128xf32>
    %44 = tpu.matmul %41, %43, %cst_49 {dimension_numbers = #tpu.dot_dimension_numbers<[1], [0], [0], [1], [0, 0, 1, 1], [], []>} : vector<16x128xbf16>, vector<128x128xbf16>, vector<16x128xf32> -> vector<16x128xf32>
    %45 = arith.addf %40, %44 : vector<16x128xf32>
    %c0_50 = arith.constant 0 : index
    %c0_51 = arith.constant 0 : index
    %46 = vector.load %arg5[%c0_50, %c0_51] : memref<1x128xf32, #tpu.memory_space<vmem>>, vector<1x128xf32>
    %47 = vector.broadcast %46 : vector<1x128xf32> to vector<16x128xf32>
    %48 = arith.addf %45, %47 : vector<16x128xf32>
    %cst_52 = arith.constant 0.000000e+00 : f32
    %49 = vector.broadcast %cst_52 : f32 to vector<16x128xf32>
    %50 = arith.maximumf %48, %49 : vector<16x128xf32>
    %51 = arith.truncf %50 : vector<16x128xf32> to vector<16x128xbf16>
    %c0_53 = arith.constant 0 : index
    %c0_54 = arith.constant 0 : index
    %c0_55 = arith.constant 0 : index
    %52 = vector.load %arg8[%c0_53, %c0_54, %c0_55] : memref<1x16x128xbf16, #tpu.memory_space<vmem>>, vector<1x16x128xbf16>
    %53 = vector.shape_cast %52 : vector<1x16x128xbf16> to vector<16x128xbf16>
    %54 = vector.shape_cast %51 : vector<16x128xbf16> to vector<1x16x128xbf16>
    tpu.vector_store %arg8[%c0_53, %c0_54, %c0_55], %54 {strides = array<i32>} : memref<1x16x128xbf16, #tpu.memory_space<vmem>>, vector<1x16x128xbf16>,
    %c0_56 = arith.constant 0 : index
    %c0_57 = arith.constant 0 : index
    %c0_58 = arith.constant 0 : index
    %55 = vector.load %arg8[%c0_56, %c0_57, %c0_58] : memref<1x16x128xbf16, #tpu.memory_space<vmem>>, vector<1x15x128xbf16>
    %56 = vector.shape_cast %55 : vector<1x15x128xbf16> to vector<15x128xbf16>
    %57 = arith.extf %56 : vector<15x128xbf16> to vector<15x128xf32>
    %c0_59 = arith.constant 0 : index
    %c1_60 = arith.constant 1 : index
    %c0_61 = arith.constant 0 : index
    %58 = vector.load %arg8[%c0_59, %c1_60, %c0_61] : memref<1x16x128xbf16, #tpu.memory_space<vmem>>, vector<1x15x128xbf16>
    %59 = vector.shape_cast %58 : vector<1x15x128xbf16> to vector<15x128xbf16>
    %60 = arith.extf %59 : vector<15x128xbf16> to vector<15x128xf32>
    %61 = arith.maximumf %57, %60 : vector<15x128xf32>
    %c0_62 = arith.constant 0 : index
    %c0_63 = arith.constant 0 : index
    %62 = vector.load %arg6[%c0_62, %c0_63] : memref<8x15xf32, #tpu.memory_space<vmem>>, vector<8x15xf32>
    %cst_64 = arith.constant dense<0.000000e+00> : vector<8x128xf32>
    %63 = tpu.matmul %62, %61, %cst_64 {dimension_numbers = #tpu.dot_dimension_numbers<[1], [0], [0], [1], [0, 0, 1, 1], [], []>} : vector<8x15xf32>, vector<15x128xf32>, vector<8x128xf32> -> vector<8x128xf32>
    %64 = vector.extract_strided_slice %63 {offsets = [0, 0], sizes = [8, 120], strides = [1, 1]} : vector<8x128xf32> to vector<8x120xf32>
    %65 = vector.extract_strided_slice %63 {offsets = [0, 8], sizes = [8, 120], strides = [1, 1]} : vector<8x128xf32> to vector<8x120xf32>
    %66 = arith.maximumf %64, %65 : vector<8x120xf32>
    %c0_65 = arith.constant 0 : index
    %c0_66 = arith.constant 0 : index
    %67 = vector.load %arg7[%c0_65, %c0_66] : memref<120x64xf32, #tpu.memory_space<vmem>>, vector<120x64xf32>
    %cst_67 = arith.constant dense<0.000000e+00> : vector<8x64xf32>
    %68 = tpu.matmul %66, %67, %cst_67 {dimension_numbers = #tpu.dot_dimension_numbers<[1], [0], [0], [1], [0, 0, 1, 1], [], []>} : vector<8x120xf32>, vector<120x64xf32>, vector<8x64xf32> -> vector<8x64xf32>
    %69 = arith.truncf %68 : vector<8x64xf32> to vector<8x64xbf16>
    %c0_68 = arith.constant 0 : index
    %c0_69 = arith.constant 0 : index
    %c0_70 = arith.constant 0 : index
    %70 = vector.load %arg9[%c0_68, %c0_69, %c0_70] : memref<1x8x64xbf16, #tpu.memory_space<vmem>>, vector<1x8x64xbf16>
    %71 = vector.shape_cast %70 : vector<1x8x64xbf16> to vector<8x64xbf16>
    %72 = vector.shape_cast %69 : vector<8x64xbf16> to vector<1x8x64xbf16>
    tpu.vector_store %arg9[%c0_68, %c0_69, %c0_70], %72 {strides = array<i32>} : memref<1x8x64xbf16, #tpu.memory_space<vmem>>, vector<1x8x64xbf16>,
    return
  }
  func.func @transform_0(%arg0: i32) -> (i32, i32, i32) {
    %c0_i32 = arith.constant 0 : i32
    %c0_i32_0 = arith.constant 0 : i32
    %c0_i32_1 = arith.constant 0 : i32
    return %arg0, %c0_i32, %c0_i32_0 : i32, i32, i32
  }
  func.func @transform_1(%arg0: i32) -> (i32, i32, i32) {
    %c0_i32 = arith.constant 0 : i32
    %c0_i32_0 = arith.constant 0 : i32
    %c0_i32_1 = arith.constant 0 : i32
    %c0_i32_2 = arith.constant 0 : i32
    return %c0_i32, %c0_i32_0, %c0_i32_1 : i32, i32, i32
  }
  func.func @transform_2(%arg0: i32) -> (i32, i32) {
    %c0_i32 = arith.constant 0 : i32
    %c0_i32_0 = arith.constant 0 : i32
    %c0_i32_1 = arith.constant 0 : i32
    return %c0_i32, %c0_i32_0 : i32, i32
  }
  func.func @transform_3(%arg0: i32) -> (i32, i32, i32) {
    %c0_i32 = arith.constant 0 : i32
    %c0_i32_0 = arith.constant 0 : i32
    %c0_i32_1 = arith.constant 0 : i32
    %c0_i32_2 = arith.constant 0 : i32
    return %c0_i32, %c0_i32_0, %c0_i32_1 : i32, i32, i32
  }
  func.func @transform_4(%arg0: i32) -> (i32, i32) {
    %c0_i32 = arith.constant 0 : i32
    %c0_i32_0 = arith.constant 0 : i32
    %c0_i32_1 = arith.constant 0 : i32
    return %c0_i32, %c0_i32_0 : i32, i32
  }
  func.func @transform_5(%arg0: i32) -> (i32, i32) {
    %c0_i32 = arith.constant 0 : i32
    %c0_i32_0 = arith.constant 0 : i32
    %c0_i32_1 = arith.constant 0 : i32
    return %c0_i32, %c0_i32_0 : i32, i32
  }
  func.func @transform_6(%arg0: i32) -> (i32, i32) {
    %c0_i32 = arith.constant 0 : i32
    %c0_i32_0 = arith.constant 0 : i32
    %c0_i32_1 = arith.constant 0 : i32
    return %c0_i32, %c0_i32_0 : i32, i32
  }
  func.func @transform_7(%arg0: i32) -> (i32, i32, i32) {
    %c0_i32 = arith.constant 0 : i32
    %c0_i32_0 = arith.constant 0 : i32
    %c0_i32_1 = arith.constant 0 : i32
    return %arg0, %c0_i32, %c0_i32_0 : i32, i32, i32
  }
  func.func @transform_8(%arg0: i32) -> (i32, i32, i32) {
    %c0_i32 = arith.constant 0 : i32
    %c0_i32_0 = arith.constant 0 : i32
    %c0_i32_1 = arith.constant 0 : i32
    return %arg0, %c0_i32, %c0_i32_0 : i32, i32, i32
  }
}

module attributes {stable_mosaic.version = 11 : i64} {
  func.func @_down_block_kernel(%arg0: i32, %arg1: memref<1x8x64xbf16, #tpu.memory_space<vmem>>, %arg2: memref<3x64x128xbf16, #tpu.memory_space<vmem>>, %arg3: memref<1x128xf32, #tpu.memory_space<vmem>>, %arg4: memref<3x128x128xbf16, #tpu.memory_space<vmem>>, %arg5: memref<1x128xf32, #tpu.memory_space<vmem>>, %arg6: memref<4x7xf32, #tpu.memory_space<vmem>>, %arg7: memref<112x64xf32, #tpu.memory_space<vmem>>, %arg8: memref<1x8x128xbf16, #tpu.memory_space<vmem>>, %arg9: memref<1x4x64xbf16, #tpu.memory_space<vmem>>, %arg10: memref<10x64xbf16, #tpu.memory_space<vmem>>, %arg11: memref<10x128xbf16, #tpu.memory_space<vmem>>) attributes {dimension_semantics = [#tpu.dimension_semantics<parallel>], iteration_bounds = array<i64: 2>, scalar_prefetch = 0 : i64, scratch_operands = 2 : i64, tpu.core_type = #tpu.core_type<tc>, window_params = [{transform_indices = @transform_0, window_bounds = array<i64: 1, 8, 64>}, {pipeline_mode = #tpu.pipeline_mode<synchronous>, transform_indices = @transform_1, window_bounds = array<i64: 3, 64, 128>}, {pipeline_mode = #tpu.pipeline_mode<synchronous>, transform_indices = @transform_2, window_bounds = array<i64: 1, 128>}, {pipeline_mode = #tpu.pipeline_mode<synchronous>, transform_indices = @transform_3, window_bounds = array<i64: 3, 128, 128>}, {pipeline_mode = #tpu.pipeline_mode<synchronous>, transform_indices = @transform_4, window_bounds = array<i64: 1, 128>}, {pipeline_mode = #tpu.pipeline_mode<synchronous>, transform_indices = @transform_5, window_bounds = array<i64: 4, 7>}, {pipeline_mode = #tpu.pipeline_mode<synchronous>, transform_indices = @transform_6, window_bounds = array<i64: 112, 64>}, {transform_indices = @transform_7, window_bounds = array<i64: 1, 8, 128>}, {transform_indices = @transform_8, window_bounds = array<i64: 1, 4, 64>}]} {
    %cst = arith.constant 0.000000e+00 : bf16
    %0 = vector.broadcast %cst : bf16 to vector<10x64xbf16>
    %c0 = arith.constant 0 : index
    %c0_0 = arith.constant 0 : index
    %1 = vector.load %arg10[%c0, %c0_0] : memref<10x64xbf16, #tpu.memory_space<vmem>>, vector<10x64xbf16>
    tpu.vector_store %arg10[%c0, %c0_0], %0 {strides = array<i32>} : memref<10x64xbf16, #tpu.memory_space<vmem>>, vector<10x64xbf16>,
    %c0_1 = arith.constant 0 : index
    %c0_2 = arith.constant 0 : index
    %c0_3 = arith.constant 0 : index
    %2 = vector.load %arg1[%c0_1, %c0_2, %c0_3] : memref<1x8x64xbf16, #tpu.memory_space<vmem>>, vector<1x8x64xbf16>
    %3 = vector.shape_cast %2 : vector<1x8x64xbf16> to vector<8x64xbf16>
    %c1 = arith.constant 1 : index
    %c0_4 = arith.constant 0 : index
    %4 = vector.load %arg10[%c1, %c0_4] : memref<10x64xbf16, #tpu.memory_space<vmem>>, vector<8x64xbf16>
    tpu.vector_store %arg10[%c1, %c0_4], %3 {strides = array<i32>} : memref<10x64xbf16, #tpu.memory_space<vmem>>, vector<8x64xbf16>,
    %cst_5 = arith.constant 0.000000e+00 : f32
    %5 = vector.broadcast %cst_5 : f32 to vector<8x128xf32>
    %c0_6 = arith.constant 0 : index
    %c0_7 = arith.constant 0 : index
    %6 = vector.load %arg10[%c0_6, %c0_7] : memref<10x64xbf16, #tpu.memory_space<vmem>>, vector<8x64xbf16>
    %c0_8 = arith.constant 0 : index
    %c0_9 = arith.constant 0 : index
    %c0_10 = arith.constant 0 : index
    %7 = vector.load %arg2[%c0_8, %c0_9, %c0_10] : memref<3x64x128xbf16, #tpu.memory_space<vmem>>, vector<1x64x128xbf16>
    %8 = vector.shape_cast %7 : vector<1x64x128xbf16> to vector<64x128xbf16>
    %cst_11 = arith.constant dense<0.000000e+00> : vector<8x128xf32>
    %9 = tpu.matmul %6, %8, %cst_11 {dimension_numbers = #tpu.dot_dimension_numbers<[1], [0], [0], [1], [0, 0, 1, 1], [], []>} : vector<8x64xbf16>, vector<64x128xbf16>, vector<8x128xf32> -> vector<8x128xf32>
    %10 = arith.addf %5, %9 : vector<8x128xf32>
    %c1_12 = arith.constant 1 : index
    %c0_13 = arith.constant 0 : index
    %11 = vector.load %arg10[%c1_12, %c0_13] : memref<10x64xbf16, #tpu.memory_space<vmem>>, vector<8x64xbf16>
    %c1_14 = arith.constant 1 : index
    %c0_15 = arith.constant 0 : index
    %c0_16 = arith.constant 0 : index
    %12 = vector.load %arg2[%c1_14, %c0_15, %c0_16] : memref<3x64x128xbf16, #tpu.memory_space<vmem>>, vector<1x64x128xbf16>
    %13 = vector.shape_cast %12 : vector<1x64x128xbf16> to vector<64x128xbf16>
    %cst_17 = arith.constant dense<0.000000e+00> : vector<8x128xf32>
    %14 = tpu.matmul %11, %13, %cst_17 {dimension_numbers = #tpu.dot_dimension_numbers<[1], [0], [0], [1], [0, 0, 1, 1], [], []>} : vector<8x64xbf16>, vector<64x128xbf16>, vector<8x128xf32> -> vector<8x128xf32>
    %15 = arith.addf %10, %14 : vector<8x128xf32>
    %c2 = arith.constant 2 : index
    %c0_18 = arith.constant 0 : index
    %16 = vector.load %arg10[%c2, %c0_18] : memref<10x64xbf16, #tpu.memory_space<vmem>>, vector<8x64xbf16>
    %c2_19 = arith.constant 2 : index
    %c0_20 = arith.constant 0 : index
    %c0_21 = arith.constant 0 : index
    %17 = vector.load %arg2[%c2_19, %c0_20, %c0_21] : memref<3x64x128xbf16, #tpu.memory_space<vmem>>, vector<1x64x128xbf16>
    %18 = vector.shape_cast %17 : vector<1x64x128xbf16> to vector<64x128xbf16>
    %cst_22 = arith.constant dense<0.000000e+00> : vector<8x128xf32>
    %19 = tpu.matmul %16, %18, %cst_22 {dimension_numbers = #tpu.dot_dimension_numbers<[1], [0], [0], [1], [0, 0, 1, 1], [], []>} : vector<8x64xbf16>, vector<64x128xbf16>, vector<8x128xf32> -> vector<8x128xf32>
    %20 = arith.addf %15, %19 : vector<8x128xf32>
    %c0_23 = arith.constant 0 : index
    %c0_24 = arith.constant 0 : index
    %21 = vector.load %arg3[%c0_23, %c0_24] : memref<1x128xf32, #tpu.memory_space<vmem>>, vector<1x128xf32>
    %22 = vector.broadcast %21 : vector<1x128xf32> to vector<8x128xf32>
    %23 = arith.addf %20, %22 : vector<8x128xf32>
    %cst_25 = arith.constant 0.000000e+00 : f32
    %24 = vector.broadcast %cst_25 : f32 to vector<8x128xf32>
    %25 = arith.maximumf %23, %24 : vector<8x128xf32>
    %cst_26 = arith.constant 0.000000e+00 : bf16
    %26 = vector.broadcast %cst_26 : bf16 to vector<10x128xbf16>
    %c0_27 = arith.constant 0 : index
    %c0_28 = arith.constant 0 : index
    %27 = vector.load %arg11[%c0_27, %c0_28] : memref<10x128xbf16, #tpu.memory_space<vmem>>, vector<10x128xbf16>
    tpu.vector_store %arg11[%c0_27, %c0_28], %26 {strides = array<i32>} : memref<10x128xbf16, #tpu.memory_space<vmem>>, vector<10x128xbf16>,
    %28 = arith.truncf %25 : vector<8x128xf32> to vector<8x128xbf16>
    %c1_29 = arith.constant 1 : index
    %c0_30 = arith.constant 0 : index
    %29 = vector.load %arg11[%c1_29, %c0_30] : memref<10x128xbf16, #tpu.memory_space<vmem>>, vector<8x128xbf16>
    tpu.vector_store %arg11[%c1_29, %c0_30], %28 {strides = array<i32>} : memref<10x128xbf16, #tpu.memory_space<vmem>>, vector<8x128xbf16>,
    %cst_31 = arith.constant 0.000000e+00 : f32
    %30 = vector.broadcast %cst_31 : f32 to vector<8x128xf32>
    %c0_32 = arith.constant 0 : index
    %c0_33 = arith.constant 0 : index
    %31 = vector.load %arg11[%c0_32, %c0_33] : memref<10x128xbf16, #tpu.memory_space<vmem>>, vector<8x128xbf16>
    %c0_34 = arith.constant 0 : index
    %c0_35 = arith.constant 0 : index
    %c0_36 = arith.constant 0 : index
    %32 = vector.load %arg4[%c0_34, %c0_35, %c0_36] : memref<3x128x128xbf16, #tpu.memory_space<vmem>>, vector<1x128x128xbf16>
    %33 = vector.shape_cast %32 : vector<1x128x128xbf16> to vector<128x128xbf16>
    %cst_37 = arith.constant dense<0.000000e+00> : vector<8x128xf32>
    %34 = tpu.matmul %31, %33, %cst_37 {dimension_numbers = #tpu.dot_dimension_numbers<[1], [0], [0], [1], [0, 0, 1, 1], [], []>} : vector<8x128xbf16>, vector<128x128xbf16>, vector<8x128xf32> -> vector<8x128xf32>
    %35 = arith.addf %30, %34 : vector<8x128xf32>
    %c1_38 = arith.constant 1 : index
    %c0_39 = arith.constant 0 : index
    %36 = vector.load %arg11[%c1_38, %c0_39] : memref<10x128xbf16, #tpu.memory_space<vmem>>, vector<8x128xbf16>
    %c1_40 = arith.constant 1 : index
    %c0_41 = arith.constant 0 : index
    %c0_42 = arith.constant 0 : index
    %37 = vector.load %arg4[%c1_40, %c0_41, %c0_42] : memref<3x128x128xbf16, #tpu.memory_space<vmem>>, vector<1x128x128xbf16>
    %38 = vector.shape_cast %37 : vector<1x128x128xbf16> to vector<128x128xbf16>
    %cst_43 = arith.constant dense<0.000000e+00> : vector<8x128xf32>
    %39 = tpu.matmul %36, %38, %cst_43 {dimension_numbers = #tpu.dot_dimension_numbers<[1], [0], [0], [1], [0, 0, 1, 1], [], []>} : vector<8x128xbf16>, vector<128x128xbf16>, vector<8x128xf32> -> vector<8x128xf32>
    %40 = arith.addf %35, %39 : vector<8x128xf32>
    %c2_44 = arith.constant 2 : index
    %c0_45 = arith.constant 0 : index
    %41 = vector.load %arg11[%c2_44, %c0_45] : memref<10x128xbf16, #tpu.memory_space<vmem>>, vector<8x128xbf16>
    %c2_46 = arith.constant 2 : index
    %c0_47 = arith.constant 0 : index
    %c0_48 = arith.constant 0 : index
    %42 = vector.load %arg4[%c2_46, %c0_47, %c0_48] : memref<3x128x128xbf16, #tpu.memory_space<vmem>>, vector<1x128x128xbf16>
    %43 = vector.shape_cast %42 : vector<1x128x128xbf16> to vector<128x128xbf16>
    %cst_49 = arith.constant dense<0.000000e+00> : vector<8x128xf32>
    %44 = tpu.matmul %41, %43, %cst_49 {dimension_numbers = #tpu.dot_dimension_numbers<[1], [0], [0], [1], [0, 0, 1, 1], [], []>} : vector<8x128xbf16>, vector<128x128xbf16>, vector<8x128xf32> -> vector<8x128xf32>
    %45 = arith.addf %40, %44 : vector<8x128xf32>
    %c0_50 = arith.constant 0 : index
    %c0_51 = arith.constant 0 : index
    %46 = vector.load %arg5[%c0_50, %c0_51] : memref<1x128xf32, #tpu.memory_space<vmem>>, vector<1x128xf32>
    %47 = vector.broadcast %46 : vector<1x128xf32> to vector<8x128xf32>
    %48 = arith.addf %45, %47 : vector<8x128xf32>
    %cst_52 = arith.constant 0.000000e+00 : f32
    %49 = vector.broadcast %cst_52 : f32 to vector<8x128xf32>
    %50 = arith.maximumf %48, %49 : vector<8x128xf32>
    %51 = arith.truncf %50 : vector<8x128xf32> to vector<8x128xbf16>
    %c0_53 = arith.constant 0 : index
    %c0_54 = arith.constant 0 : index
    %c0_55 = arith.constant 0 : index
    %52 = vector.load %arg8[%c0_53, %c0_54, %c0_55] : memref<1x8x128xbf16, #tpu.memory_space<vmem>>, vector<1x8x128xbf16>
    %53 = vector.shape_cast %52 : vector<1x8x128xbf16> to vector<8x128xbf16>
    %54 = vector.shape_cast %51 : vector<8x128xbf16> to vector<1x8x128xbf16>
    tpu.vector_store %arg8[%c0_53, %c0_54, %c0_55], %54 {strides = array<i32>} : memref<1x8x128xbf16, #tpu.memory_space<vmem>>, vector<1x8x128xbf16>,
    %c0_56 = arith.constant 0 : index
    %c0_57 = arith.constant 0 : index
    %c0_58 = arith.constant 0 : index
    %55 = vector.load %arg8[%c0_56, %c0_57, %c0_58] : memref<1x8x128xbf16, #tpu.memory_space<vmem>>, vector<1x7x128xbf16>
    %56 = vector.shape_cast %55 : vector<1x7x128xbf16> to vector<7x128xbf16>
    %57 = arith.extf %56 : vector<7x128xbf16> to vector<7x128xf32>
    %c0_59 = arith.constant 0 : index
    %c1_60 = arith.constant 1 : index
    %c0_61 = arith.constant 0 : index
    %58 = vector.load %arg8[%c0_59, %c1_60, %c0_61] : memref<1x8x128xbf16, #tpu.memory_space<vmem>>, vector<1x7x128xbf16>
    %59 = vector.shape_cast %58 : vector<1x7x128xbf16> to vector<7x128xbf16>
    %60 = arith.extf %59 : vector<7x128xbf16> to vector<7x128xf32>
    %61 = arith.maximumf %57, %60 : vector<7x128xf32>
    %c0_62 = arith.constant 0 : index
    %c0_63 = arith.constant 0 : index
    %62 = vector.load %arg6[%c0_62, %c0_63] : memref<4x7xf32, #tpu.memory_space<vmem>>, vector<4x7xf32>
    %cst_64 = arith.constant dense<0.000000e+00> : vector<4x128xf32>
    %63 = tpu.matmul %62, %61, %cst_64 {dimension_numbers = #tpu.dot_dimension_numbers<[1], [0], [0], [1], [0, 0, 1, 1], [], []>} : vector<4x7xf32>, vector<7x128xf32>, vector<4x128xf32> -> vector<4x128xf32>
    %64 = vector.extract_strided_slice %63 {offsets = [0, 0], sizes = [4, 112], strides = [1, 1]} : vector<4x128xf32> to vector<4x112xf32>
    %65 = vector.extract_strided_slice %63 {offsets = [0, 16], sizes = [4, 112], strides = [1, 1]} : vector<4x128xf32> to vector<4x112xf32>
    %66 = arith.maximumf %64, %65 : vector<4x112xf32>
    %c0_65 = arith.constant 0 : index
    %c0_66 = arith.constant 0 : index
    %67 = vector.load %arg7[%c0_65, %c0_66] : memref<112x64xf32, #tpu.memory_space<vmem>>, vector<112x64xf32>
    %cst_67 = arith.constant dense<0.000000e+00> : vector<4x64xf32>
    %68 = tpu.matmul %66, %67, %cst_67 {dimension_numbers = #tpu.dot_dimension_numbers<[1], [0], [0], [1], [0, 0, 1, 1], [], []>} : vector<4x112xf32>, vector<112x64xf32>, vector<4x64xf32> -> vector<4x64xf32>
    %69 = arith.truncf %68 : vector<4x64xf32> to vector<4x64xbf16>
    %c0_68 = arith.constant 0 : index
    %c0_69 = arith.constant 0 : index
    %c0_70 = arith.constant 0 : index
    %70 = vector.load %arg9[%c0_68, %c0_69, %c0_70] : memref<1x4x64xbf16, #tpu.memory_space<vmem>>, vector<1x4x64xbf16>
    %71 = vector.shape_cast %70 : vector<1x4x64xbf16> to vector<4x64xbf16>
    %72 = vector.shape_cast %69 : vector<4x64xbf16> to vector<1x4x64xbf16>
    tpu.vector_store %arg9[%c0_68, %c0_69, %c0_70], %72 {strides = array<i32>} : memref<1x4x64xbf16, #tpu.memory_space<vmem>>, vector<1x4x64xbf16>,
    return
  }
  func.func @transform_0(%arg0: i32) -> (i32, i32, i32) {
    %c0_i32 = arith.constant 0 : i32
    %c0_i32_0 = arith.constant 0 : i32
    %c0_i32_1 = arith.constant 0 : i32
    return %arg0, %c0_i32, %c0_i32_0 : i32, i32, i32
  }
  func.func @transform_1(%arg0: i32) -> (i32, i32, i32) {
    %c0_i32 = arith.constant 0 : i32
    %c0_i32_0 = arith.constant 0 : i32
    %c0_i32_1 = arith.constant 0 : i32
    %c0_i32_2 = arith.constant 0 : i32
    return %c0_i32, %c0_i32_0, %c0_i32_1 : i32, i32, i32
  }
  func.func @transform_2(%arg0: i32) -> (i32, i32) {
    %c0_i32 = arith.constant 0 : i32
    %c0_i32_0 = arith.constant 0 : i32
    %c0_i32_1 = arith.constant 0 : i32
    return %c0_i32, %c0_i32_0 : i32, i32
  }
  func.func @transform_3(%arg0: i32) -> (i32, i32, i32) {
    %c0_i32 = arith.constant 0 : i32
    %c0_i32_0 = arith.constant 0 : i32
    %c0_i32_1 = arith.constant 0 : i32
    %c0_i32_2 = arith.constant 0 : i32
    return %c0_i32, %c0_i32_0, %c0_i32_1 : i32, i32, i32
  }
  func.func @transform_4(%arg0: i32) -> (i32, i32) {
    %c0_i32 = arith.constant 0 : i32
    %c0_i32_0 = arith.constant 0 : i32
    %c0_i32_1 = arith.constant 0 : i32
    return %c0_i32, %c0_i32_0 : i32, i32
  }
  func.func @transform_5(%arg0: i32) -> (i32, i32) {
    %c0_i32 = arith.constant 0 : i32
    %c0_i32_0 = arith.constant 0 : i32
    %c0_i32_1 = arith.constant 0 : i32
    return %c0_i32, %c0_i32_0 : i32, i32
  }
  func.func @transform_6(%arg0: i32) -> (i32, i32) {
    %c0_i32 = arith.constant 0 : i32
    %c0_i32_0 = arith.constant 0 : i32
    %c0_i32_1 = arith.constant 0 : i32
    return %c0_i32, %c0_i32_0 : i32, i32
  }
  func.func @transform_7(%arg0: i32) -> (i32, i32, i32) {
    %c0_i32 = arith.constant 0 : i32
    %c0_i32_0 = arith.constant 0 : i32
    %c0_i32_1 = arith.constant 0 : i32
    return %arg0, %c0_i32, %c0_i32_0 : i32, i32, i32
  }
  func.func @transform_8(%arg0: i32) -> (i32, i32, i32) {
    %c0_i32 = arith.constant 0 : i32
    %c0_i32_0 = arith.constant 0 : i32
    %c0_i32_1 = arith.constant 0 : i32
    return %arg0, %c0_i32, %c0_i32_0 : i32, i32, i32
  }
}

module attributes {stable_mosaic.version = 11 : i64} {
  func.func @_down_block_kernel(%arg0: i32, %arg1: memref<1x4x64xbf16, #tpu.memory_space<vmem>>, %arg2: memref<3x64x128xbf16, #tpu.memory_space<vmem>>, %arg3: memref<1x128xf32, #tpu.memory_space<vmem>>, %arg4: memref<3x128x128xbf16, #tpu.memory_space<vmem>>, %arg5: memref<1x128xf32, #tpu.memory_space<vmem>>, %arg6: memref<1x4x128xbf16, #tpu.memory_space<vmem>>, %arg7: memref<6x64xbf16, #tpu.memory_space<vmem>>, %arg8: memref<6x128xbf16, #tpu.memory_space<vmem>>) attributes {dimension_semantics = [#tpu.dimension_semantics<parallel>], iteration_bounds = array<i64: 2>, scalar_prefetch = 0 : i64, scratch_operands = 2 : i64, tpu.core_type = #tpu.core_type<tc>, window_params = [{transform_indices = @transform_0, window_bounds = array<i64: 1, 4, 64>}, {pipeline_mode = #tpu.pipeline_mode<synchronous>, transform_indices = @transform_1, window_bounds = array<i64: 3, 64, 128>}, {pipeline_mode = #tpu.pipeline_mode<synchronous>, transform_indices = @transform_2, window_bounds = array<i64: 1, 128>}, {pipeline_mode = #tpu.pipeline_mode<synchronous>, transform_indices = @transform_3, window_bounds = array<i64: 3, 128, 128>}, {pipeline_mode = #tpu.pipeline_mode<synchronous>, transform_indices = @transform_4, window_bounds = array<i64: 1, 128>}, {transform_indices = @transform_5, window_bounds = array<i64: 1, 4, 128>}]} {
    %cst = arith.constant 0.000000e+00 : bf16
    %0 = vector.broadcast %cst : bf16 to vector<6x64xbf16>
    %c0 = arith.constant 0 : index
    %c0_0 = arith.constant 0 : index
    %1 = vector.load %arg7[%c0, %c0_0] : memref<6x64xbf16, #tpu.memory_space<vmem>>, vector<6x64xbf16>
    tpu.vector_store %arg7[%c0, %c0_0], %0 {strides = array<i32>} : memref<6x64xbf16, #tpu.memory_space<vmem>>, vector<6x64xbf16>,
    %c0_1 = arith.constant 0 : index
    %c0_2 = arith.constant 0 : index
    %c0_3 = arith.constant 0 : index
    %2 = vector.load %arg1[%c0_1, %c0_2, %c0_3] : memref<1x4x64xbf16, #tpu.memory_space<vmem>>, vector<1x4x64xbf16>
    %3 = vector.shape_cast %2 : vector<1x4x64xbf16> to vector<4x64xbf16>
    %c1 = arith.constant 1 : index
    %c0_4 = arith.constant 0 : index
    %4 = vector.load %arg7[%c1, %c0_4] : memref<6x64xbf16, #tpu.memory_space<vmem>>, vector<4x64xbf16>
    tpu.vector_store %arg7[%c1, %c0_4], %3 {strides = array<i32>} : memref<6x64xbf16, #tpu.memory_space<vmem>>, vector<4x64xbf16>,
    %cst_5 = arith.constant 0.000000e+00 : f32
    %5 = vector.broadcast %cst_5 : f32 to vector<4x128xf32>
    %c0_6 = arith.constant 0 : index
    %c0_7 = arith.constant 0 : index
    %6 = vector.load %arg7[%c0_6, %c0_7] : memref<6x64xbf16, #tpu.memory_space<vmem>>, vector<4x64xbf16>
    %c0_8 = arith.constant 0 : index
    %c0_9 = arith.constant 0 : index
    %c0_10 = arith.constant 0 : index
    %7 = vector.load %arg2[%c0_8, %c0_9, %c0_10] : memref<3x64x128xbf16, #tpu.memory_space<vmem>>, vector<1x64x128xbf16>
    %8 = vector.shape_cast %7 : vector<1x64x128xbf16> to vector<64x128xbf16>
    %cst_11 = arith.constant dense<0.000000e+00> : vector<4x128xf32>
    %9 = tpu.matmul %6, %8, %cst_11 {dimension_numbers = #tpu.dot_dimension_numbers<[1], [0], [0], [1], [0, 0, 1, 1], [], []>} : vector<4x64xbf16>, vector<64x128xbf16>, vector<4x128xf32> -> vector<4x128xf32>
    %10 = arith.addf %5, %9 : vector<4x128xf32>
    %c1_12 = arith.constant 1 : index
    %c0_13 = arith.constant 0 : index
    %11 = vector.load %arg7[%c1_12, %c0_13] : memref<6x64xbf16, #tpu.memory_space<vmem>>, vector<4x64xbf16>
    %c1_14 = arith.constant 1 : index
    %c0_15 = arith.constant 0 : index
    %c0_16 = arith.constant 0 : index
    %12 = vector.load %arg2[%c1_14, %c0_15, %c0_16] : memref<3x64x128xbf16, #tpu.memory_space<vmem>>, vector<1x64x128xbf16>
    %13 = vector.shape_cast %12 : vector<1x64x128xbf16> to vector<64x128xbf16>
    %cst_17 = arith.constant dense<0.000000e+00> : vector<4x128xf32>
    %14 = tpu.matmul %11, %13, %cst_17 {dimension_numbers = #tpu.dot_dimension_numbers<[1], [0], [0], [1], [0, 0, 1, 1], [], []>} : vector<4x64xbf16>, vector<64x128xbf16>, vector<4x128xf32> -> vector<4x128xf32>
    %15 = arith.addf %10, %14 : vector<4x128xf32>
    %c2 = arith.constant 2 : index
    %c0_18 = arith.constant 0 : index
    %16 = vector.load %arg7[%c2, %c0_18] : memref<6x64xbf16, #tpu.memory_space<vmem>>, vector<4x64xbf16>
    %c2_19 = arith.constant 2 : index
    %c0_20 = arith.constant 0 : index
    %c0_21 = arith.constant 0 : index
    %17 = vector.load %arg2[%c2_19, %c0_20, %c0_21] : memref<3x64x128xbf16, #tpu.memory_space<vmem>>, vector<1x64x128xbf16>
    %18 = vector.shape_cast %17 : vector<1x64x128xbf16> to vector<64x128xbf16>
    %cst_22 = arith.constant dense<0.000000e+00> : vector<4x128xf32>
    %19 = tpu.matmul %16, %18, %cst_22 {dimension_numbers = #tpu.dot_dimension_numbers<[1], [0], [0], [1], [0, 0, 1, 1], [], []>} : vector<4x64xbf16>, vector<64x128xbf16>, vector<4x128xf32> -> vector<4x128xf32>
    %20 = arith.addf %15, %19 : vector<4x128xf32>
    %c0_23 = arith.constant 0 : index
    %c0_24 = arith.constant 0 : index
    %21 = vector.load %arg3[%c0_23, %c0_24] : memref<1x128xf32, #tpu.memory_space<vmem>>, vector<1x128xf32>
    %22 = vector.broadcast %21 : vector<1x128xf32> to vector<4x128xf32>
    %23 = arith.addf %20, %22 : vector<4x128xf32>
    %cst_25 = arith.constant 0.000000e+00 : f32
    %24 = vector.broadcast %cst_25 : f32 to vector<4x128xf32>
    %25 = arith.maximumf %23, %24 : vector<4x128xf32>
    %cst_26 = arith.constant 0.000000e+00 : bf16
    %26 = vector.broadcast %cst_26 : bf16 to vector<6x128xbf16>
    %c0_27 = arith.constant 0 : index
    %c0_28 = arith.constant 0 : index
    %27 = vector.load %arg8[%c0_27, %c0_28] : memref<6x128xbf16, #tpu.memory_space<vmem>>, vector<6x128xbf16>
    tpu.vector_store %arg8[%c0_27, %c0_28], %26 {strides = array<i32>} : memref<6x128xbf16, #tpu.memory_space<vmem>>, vector<6x128xbf16>,
    %28 = arith.truncf %25 : vector<4x128xf32> to vector<4x128xbf16>
    %c1_29 = arith.constant 1 : index
    %c0_30 = arith.constant 0 : index
    %29 = vector.load %arg8[%c1_29, %c0_30] : memref<6x128xbf16, #tpu.memory_space<vmem>>, vector<4x128xbf16>
    tpu.vector_store %arg8[%c1_29, %c0_30], %28 {strides = array<i32>} : memref<6x128xbf16, #tpu.memory_space<vmem>>, vector<4x128xbf16>,
    %cst_31 = arith.constant 0.000000e+00 : f32
    %30 = vector.broadcast %cst_31 : f32 to vector<4x128xf32>
    %c0_32 = arith.constant 0 : index
    %c0_33 = arith.constant 0 : index
    %31 = vector.load %arg8[%c0_32, %c0_33] : memref<6x128xbf16, #tpu.memory_space<vmem>>, vector<4x128xbf16>
    %c0_34 = arith.constant 0 : index
    %c0_35 = arith.constant 0 : index
    %c0_36 = arith.constant 0 : index
    %32 = vector.load %arg4[%c0_34, %c0_35, %c0_36] : memref<3x128x128xbf16, #tpu.memory_space<vmem>>, vector<1x128x128xbf16>
    %33 = vector.shape_cast %32 : vector<1x128x128xbf16> to vector<128x128xbf16>
    %cst_37 = arith.constant dense<0.000000e+00> : vector<4x128xf32>
    %34 = tpu.matmul %31, %33, %cst_37 {dimension_numbers = #tpu.dot_dimension_numbers<[1], [0], [0], [1], [0, 0, 1, 1], [], []>} : vector<4x128xbf16>, vector<128x128xbf16>, vector<4x128xf32> -> vector<4x128xf32>
    %35 = arith.addf %30, %34 : vector<4x128xf32>
    %c1_38 = arith.constant 1 : index
    %c0_39 = arith.constant 0 : index
    %36 = vector.load %arg8[%c1_38, %c0_39] : memref<6x128xbf16, #tpu.memory_space<vmem>>, vector<4x128xbf16>
    %c1_40 = arith.constant 1 : index
    %c0_41 = arith.constant 0 : index
    %c0_42 = arith.constant 0 : index
    %37 = vector.load %arg4[%c1_40, %c0_41, %c0_42] : memref<3x128x128xbf16, #tpu.memory_space<vmem>>, vector<1x128x128xbf16>
    %38 = vector.shape_cast %37 : vector<1x128x128xbf16> to vector<128x128xbf16>
    %cst_43 = arith.constant dense<0.000000e+00> : vector<4x128xf32>
    %39 = tpu.matmul %36, %38, %cst_43 {dimension_numbers = #tpu.dot_dimension_numbers<[1], [0], [0], [1], [0, 0, 1, 1], [], []>} : vector<4x128xbf16>, vector<128x128xbf16>, vector<4x128xf32> -> vector<4x128xf32>
    %40 = arith.addf %35, %39 : vector<4x128xf32>
    %c2_44 = arith.constant 2 : index
    %c0_45 = arith.constant 0 : index
    %41 = vector.load %arg8[%c2_44, %c0_45] : memref<6x128xbf16, #tpu.memory_space<vmem>>, vector<4x128xbf16>
    %c2_46 = arith.constant 2 : index
    %c0_47 = arith.constant 0 : index
    %c0_48 = arith.constant 0 : index
    %42 = vector.load %arg4[%c2_46, %c0_47, %c0_48] : memref<3x128x128xbf16, #tpu.memory_space<vmem>>, vector<1x128x128xbf16>
    %43 = vector.shape_cast %42 : vector<1x128x128xbf16> to vector<128x128xbf16>
    %cst_49 = arith.constant dense<0.000000e+00> : vector<4x128xf32>
    %44 = tpu.matmul %41, %43, %cst_49 {dimension_numbers = #tpu.dot_dimension_numbers<[1], [0], [0], [1], [0, 0, 1, 1], [], []>} : vector<4x128xbf16>, vector<128x128xbf16>, vector<4x128xf32> -> vector<4x128xf32>
    %45 = arith.addf %40, %44 : vector<4x128xf32>
    %c0_50 = arith.constant 0 : index
    %c0_51 = arith.constant 0 : index
    %46 = vector.load %arg5[%c0_50, %c0_51] : memref<1x128xf32, #tpu.memory_space<vmem>>, vector<1x128xf32>
    %47 = vector.broadcast %46 : vector<1x128xf32> to vector<4x128xf32>
    %48 = arith.addf %45, %47 : vector<4x128xf32>
    %cst_52 = arith.constant 0.000000e+00 : f32
    %49 = vector.broadcast %cst_52 : f32 to vector<4x128xf32>
    %50 = arith.maximumf %48, %49 : vector<4x128xf32>
    %51 = arith.truncf %50 : vector<4x128xf32> to vector<4x128xbf16>
    %c0_53 = arith.constant 0 : index
    %c0_54 = arith.constant 0 : index
    %c0_55 = arith.constant 0 : index
    %52 = vector.load %arg6[%c0_53, %c0_54, %c0_55] : memref<1x4x128xbf16, #tpu.memory_space<vmem>>, vector<1x4x128xbf16>
    %53 = vector.shape_cast %52 : vector<1x4x128xbf16> to vector<4x128xbf16>
    %54 = vector.shape_cast %51 : vector<4x128xbf16> to vector<1x4x128xbf16>
    tpu.vector_store %arg6[%c0_53, %c0_54, %c0_55], %54 {strides = array<i32>} : memref<1x4x128xbf16, #tpu.memory_space<vmem>>, vector<1x4x128xbf16>,
    return
  }
  func.func @transform_0(%arg0: i32) -> (i32, i32, i32) {
    %c0_i32 = arith.constant 0 : i32
    %c0_i32_0 = arith.constant 0 : i32
    %c0_i32_1 = arith.constant 0 : i32
    return %arg0, %c0_i32, %c0_i32_0 : i32, i32, i32
  }
  func.func @transform_1(%arg0: i32) -> (i32, i32, i32) {
    %c0_i32 = arith.constant 0 : i32
    %c0_i32_0 = arith.constant 0 : i32
    %c0_i32_1 = arith.constant 0 : i32
    %c0_i32_2 = arith.constant 0 : i32
    return %c0_i32, %c0_i32_0, %c0_i32_1 : i32, i32, i32
  }
  func.func @transform_2(%arg0: i32) -> (i32, i32) {
    %c0_i32 = arith.constant 0 : i32
    %c0_i32_0 = arith.constant 0 : i32
    %c0_i32_1 = arith.constant 0 : i32
    return %c0_i32, %c0_i32_0 : i32, i32
  }
  func.func @transform_3(%arg0: i32) -> (i32, i32, i32) {
    %c0_i32 = arith.constant 0 : i32
    %c0_i32_0 = arith.constant 0 : i32
    %c0_i32_1 = arith.constant 0 : i32
    %c0_i32_2 = arith.constant 0 : i32
    return %c0_i32, %c0_i32_0, %c0_i32_1 : i32, i32, i32
  }
  func.func @transform_4(%arg0: i32) -> (i32, i32) {
    %c0_i32 = arith.constant 0 : i32
    %c0_i32_0 = arith.constant 0 : i32
    %c0_i32_1 = arith.constant 0 : i32
    return %c0_i32, %c0_i32_0 : i32, i32
  }
  func.func @transform_5(%arg0: i32) -> (i32, i32, i32) {
    %c0_i32 = arith.constant 0 : i32
    %c0_i32_0 = arith.constant 0 : i32
    %c0_i32_1 = arith.constant 0 : i32
    return %arg0, %c0_i32, %c0_i32_0 : i32, i32, i32
  }
}

module attributes {stable_mosaic.version = 11 : i64} {
  func.func @_up_block_kernel(%arg0: i32, %arg1: memref<1x4x128xbf16, #tpu.memory_space<vmem>>, %arg2: memref<1x8x128xbf16, #tpu.memory_space<vmem>>, %arg3: memref<2x128x128xbf16, #tpu.memory_space<vmem>>, %arg4: memref<1x128xf32, #tpu.memory_space<vmem>>, %arg5: memref<2x8x4xf32, #tpu.memory_space<vmem>>, %arg6: memref<3x128x128xbf16, #tpu.memory_space<vmem>>, %arg7: memref<3x128x128xbf16, #tpu.memory_space<vmem>>, %arg8: memref<1x128xf32, #tpu.memory_space<vmem>>, %arg9: memref<3x128x128xbf16, #tpu.memory_space<vmem>>, %arg10: memref<1x128xf32, #tpu.memory_space<vmem>>, %arg11: memref<1x8x128xbf16, #tpu.memory_space<vmem>>, %arg12: memref<10x128xbf16, #tpu.memory_space<vmem>>, %arg13: memref<10x128xbf16, #tpu.memory_space<vmem>>, %arg14: memref<10x128xbf16, #tpu.memory_space<vmem>>) attributes {dimension_semantics = [#tpu.dimension_semantics<parallel>], iteration_bounds = array<i64: 2>, scalar_prefetch = 0 : i64, scratch_operands = 3 : i64, tpu.core_type = #tpu.core_type<tc>, window_params = [{transform_indices = @transform_0, window_bounds = array<i64: 1, 4, 128>}, {transform_indices = @transform_1, window_bounds = array<i64: 1, 8, 128>}, {pipeline_mode = #tpu.pipeline_mode<synchronous>, transform_indices = @transform_2, window_bounds = array<i64: 2, 128, 128>}, {pipeline_mode = #tpu.pipeline_mode<synchronous>, transform_indices = @transform_3, window_bounds = array<i64: 1, 128>}, {pipeline_mode = #tpu.pipeline_mode<synchronous>, transform_indices = @transform_4, window_bounds = array<i64: 2, 8, 4>}, {pipeline_mode = #tpu.pipeline_mode<synchronous>, transform_indices = @transform_5, window_bounds = array<i64: 3, 128, 128>}, {pipeline_mode = #tpu.pipeline_mode<synchronous>, transform_indices = @transform_6, window_bounds = array<i64: 3, 128, 128>}, {pipeline_mode = #tpu.pipeline_mode<synchronous>, transform_indices = @transform_7, window_bounds = array<i64: 1, 128>}, {pipeline_mode = #tpu.pipeline_mode<synchronous>, transform_indices = @transform_8, window_bounds = array<i64: 3, 128, 128>}, {pipeline_mode = #tpu.pipeline_mode<synchronous>, transform_indices = @transform_9, window_bounds = array<i64: 1, 128>}, {transform_indices = @transform_10, window_bounds = array<i64: 1, 8, 128>}]} {
    %cst = arith.constant 0.000000e+00 : f32
    %0 = vector.broadcast %cst : f32 to vector<8x128xf32>
    %c0 = arith.constant 0 : index
    %c0_0 = arith.constant 0 : index
    %c0_1 = arith.constant 0 : index
    %1 = vector.load %arg1[%c0, %c0_0, %c0_1] : memref<1x4x128xbf16, #tpu.memory_space<vmem>>, vector<1x4x128xbf16>
    %2 = vector.shape_cast %1 : vector<1x4x128xbf16> to vector<4x128xbf16>
    %c0_2 = arith.constant 0 : index
    %c0_3 = arith.constant 0 : index
    %c0_4 = arith.constant 0 : index
    %3 = vector.load %arg3[%c0_2, %c0_3, %c0_4] : memref<2x128x128xbf16, #tpu.memory_space<vmem>>, vector<1x128x128xbf16>
    %4 = vector.shape_cast %3 : vector<1x128x128xbf16> to vector<128x128xbf16>
    %cst_5 = arith.constant dense<0.000000e+00> : vector<4x128xf32>
    %5 = tpu.matmul %2, %4, %cst_5 {dimension_numbers = #tpu.dot_dimension_numbers<[1], [0], [0], [1], [0, 0, 1, 1], [], []>} : vector<4x128xbf16>, vector<128x128xbf16>, vector<4x128xf32> -> vector<4x128xf32>
    %c0_6 = arith.constant 0 : index
    %c0_7 = arith.constant 0 : index
    %c0_8 = arith.constant 0 : index
    %6 = vector.load %arg5[%c0_6, %c0_7, %c0_8] : memref<2x8x4xf32, #tpu.memory_space<vmem>>, vector<1x8x4xf32>
    %7 = vector.shape_cast %6 : vector<1x8x4xf32> to vector<8x4xf32>
    %cst_9 = arith.constant dense<0.000000e+00> : vector<8x128xf32>
    %8 = tpu.matmul %7, %5, %cst_9 {dimension_numbers = #tpu.dot_dimension_numbers<[1], [0], [0], [1], [0, 0, 1, 1], [], []>} : vector<8x4xf32>, vector<4x128xf32>, vector<8x128xf32> -> vector<8x128xf32>
    %9 = arith.addf %0, %8 : vector<8x128xf32>
    %c0_10 = arith.constant 0 : index
    %c0_11 = arith.constant 0 : index
    %c0_12 = arith.constant 0 : index
    %10 = vector.load %arg1[%c0_10, %c0_11, %c0_12] : memref<1x4x128xbf16, #tpu.memory_space<vmem>>, vector<1x4x128xbf16>
    %11 = vector.shape_cast %10 : vector<1x4x128xbf16> to vector<4x128xbf16>
    %c1 = arith.constant 1 : index
    %c0_13 = arith.constant 0 : index
    %c0_14 = arith.constant 0 : index
    %12 = vector.load %arg3[%c1, %c0_13, %c0_14] : memref<2x128x128xbf16, #tpu.memory_space<vmem>>, vector<1x128x128xbf16>
    %13 = vector.shape_cast %12 : vector<1x128x128xbf16> to vector<128x128xbf16>
    %cst_15 = arith.constant dense<0.000000e+00> : vector<4x128xf32>
    %14 = tpu.matmul %11, %13, %cst_15 {dimension_numbers = #tpu.dot_dimension_numbers<[1], [0], [0], [1], [0, 0, 1, 1], [], []>} : vector<4x128xbf16>, vector<128x128xbf16>, vector<4x128xf32> -> vector<4x128xf32>
    %c1_16 = arith.constant 1 : index
    %c0_17 = arith.constant 0 : index
    %c0_18 = arith.constant 0 : index
    %15 = vector.load %arg5[%c1_16, %c0_17, %c0_18] : memref<2x8x4xf32, #tpu.memory_space<vmem>>, vector<1x8x4xf32>
    %16 = vector.shape_cast %15 : vector<1x8x4xf32> to vector<8x4xf32>
    %cst_19 = arith.constant dense<0.000000e+00> : vector<8x128xf32>
    %17 = tpu.matmul %16, %14, %cst_19 {dimension_numbers = #tpu.dot_dimension_numbers<[1], [0], [0], [1], [0, 0, 1, 1], [], []>} : vector<8x4xf32>, vector<4x128xf32>, vector<8x128xf32> -> vector<8x128xf32>
    %18 = arith.addf %9, %17 : vector<8x128xf32>
    %c0_20 = arith.constant 0 : index
    %c0_21 = arith.constant 0 : index
    %19 = vector.load %arg4[%c0_20, %c0_21] : memref<1x128xf32, #tpu.memory_space<vmem>>, vector<1x128xf32>
    %20 = vector.broadcast %19 : vector<1x128xf32> to vector<8x128xf32>
    %21 = arith.addf %18, %20 : vector<8x128xf32>
    %cst_22 = arith.constant 0.000000e+00 : bf16
    %22 = vector.broadcast %cst_22 : bf16 to vector<10x128xbf16>
    %c0_23 = arith.constant 0 : index
    %c0_24 = arith.constant 0 : index
    %23 = vector.load %arg12[%c0_23, %c0_24] : memref<10x128xbf16, #tpu.memory_space<vmem>>, vector<10x128xbf16>
    tpu.vector_store %arg12[%c0_23, %c0_24], %22 {strides = array<i32>} : memref<10x128xbf16, #tpu.memory_space<vmem>>, vector<10x128xbf16>,
    %24 = arith.truncf %21 : vector<8x128xf32> to vector<8x128xbf16>
    %c1_25 = arith.constant 1 : index
    %c0_26 = arith.constant 0 : index
    %25 = vector.load %arg12[%c1_25, %c0_26] : memref<10x128xbf16, #tpu.memory_space<vmem>>, vector<8x128xbf16>
    tpu.vector_store %arg12[%c1_25, %c0_26], %24 {strides = array<i32>} : memref<10x128xbf16, #tpu.memory_space<vmem>>, vector<8x128xbf16>,
    %cst_27 = arith.constant 0.000000e+00 : bf16
    %26 = vector.broadcast %cst_27 : bf16 to vector<10x128xbf16>
    %c0_28 = arith.constant 0 : index
    %c0_29 = arith.constant 0 : index
    %27 = vector.load %arg13[%c0_28, %c0_29] : memref<10x128xbf16, #tpu.memory_space<vmem>>, vector<10x128xbf16>
    tpu.vector_store %arg13[%c0_28, %c0_29], %26 {strides = array<i32>} : memref<10x128xbf16, #tpu.memory_space<vmem>>, vector<10x128xbf16>,
    %c0_30 = arith.constant 0 : index
    %c0_31 = arith.constant 0 : index
    %c0_32 = arith.constant 0 : index
    %28 = vector.load %arg2[%c0_30, %c0_31, %c0_32] : memref<1x8x128xbf16, #tpu.memory_space<vmem>>, vector<1x8x128xbf16>
    %29 = vector.shape_cast %28 : vector<1x8x128xbf16> to vector<8x128xbf16>
    %c1_33 = arith.constant 1 : index
    %c0_34 = arith.constant 0 : index
    %30 = vector.load %arg13[%c1_33, %c0_34] : memref<10x128xbf16, #tpu.memory_space<vmem>>, vector<8x128xbf16>
    tpu.vector_store %arg13[%c1_33, %c0_34], %29 {strides = array<i32>} : memref<10x128xbf16, #tpu.memory_space<vmem>>, vector<8x128xbf16>,
    %cst_35 = arith.constant 0.000000e+00 : f32
    %31 = vector.broadcast %cst_35 : f32 to vector<8x128xf32>
    %c0_36 = arith.constant 0 : index
    %c0_37 = arith.constant 0 : index
    %32 = vector.load %arg12[%c0_36, %c0_37] : memref<10x128xbf16, #tpu.memory_space<vmem>>, vector<8x128xbf16>
    %c0_38 = arith.constant 0 : index
    %c0_39 = arith.constant 0 : index
    %c0_40 = arith.constant 0 : index
    %33 = vector.load %arg6[%c0_38, %c0_39, %c0_40] : memref<3x128x128xbf16, #tpu.memory_space<vmem>>, vector<1x128x128xbf16>
    %34 = vector.shape_cast %33 : vector<1x128x128xbf16> to vector<128x128xbf16>
    %cst_41 = arith.constant dense<0.000000e+00> : vector<8x128xf32>
    %35 = tpu.matmul %32, %34, %cst_41 {dimension_numbers = #tpu.dot_dimension_numbers<[1], [0], [0], [1], [0, 0, 1, 1], [], []>} : vector<8x128xbf16>, vector<128x128xbf16>, vector<8x128xf32> -> vector<8x128xf32>
    %36 = arith.addf %31, %35 : vector<8x128xf32>
    %c0_42 = arith.constant 0 : index
    %c0_43 = arith.constant 0 : index
    %37 = vector.load %arg13[%c0_42, %c0_43] : memref<10x128xbf16, #tpu.memory_space<vmem>>, vector<8x128xbf16>
    %c0_44 = arith.constant 0 : index
    %c0_45 = arith.constant 0 : index
    %c0_46 = arith.constant 0 : index
    %38 = vector.load %arg7[%c0_44, %c0_45, %c0_46] : memref<3x128x128xbf16, #tpu.memory_space<vmem>>, vector<1x128x128xbf16>
    %39 = vector.shape_cast %38 : vector<1x128x128xbf16> to vector<128x128xbf16>
    %cst_47 = arith.constant dense<0.000000e+00> : vector<8x128xf32>
    %40 = tpu.matmul %37, %39, %cst_47 {dimension_numbers = #tpu.dot_dimension_numbers<[1], [0], [0], [1], [0, 0, 1, 1], [], []>} : vector<8x128xbf16>, vector<128x128xbf16>, vector<8x128xf32> -> vector<8x128xf32>
    %41 = arith.addf %36, %40 : vector<8x128xf32>
    %c1_48 = arith.constant 1 : index
    %c0_49 = arith.constant 0 : index
    %42 = vector.load %arg12[%c1_48, %c0_49] : memref<10x128xbf16, #tpu.memory_space<vmem>>, vector<8x128xbf16>
    %c1_50 = arith.constant 1 : index
    %c0_51 = arith.constant 0 : index
    %c0_52 = arith.constant 0 : index
    %43 = vector.load %arg6[%c1_50, %c0_51, %c0_52] : memref<3x128x128xbf16, #tpu.memory_space<vmem>>, vector<1x128x128xbf16>
    %44 = vector.shape_cast %43 : vector<1x128x128xbf16> to vector<128x128xbf16>
    %cst_53 = arith.constant dense<0.000000e+00> : vector<8x128xf32>
    %45 = tpu.matmul %42, %44, %cst_53 {dimension_numbers = #tpu.dot_dimension_numbers<[1], [0], [0], [1], [0, 0, 1, 1], [], []>} : vector<8x128xbf16>, vector<128x128xbf16>, vector<8x128xf32> -> vector<8x128xf32>
    %46 = arith.addf %41, %45 : vector<8x128xf32>
    %c1_54 = arith.constant 1 : index
    %c0_55 = arith.constant 0 : index
    %47 = vector.load %arg13[%c1_54, %c0_55] : memref<10x128xbf16, #tpu.memory_space<vmem>>, vector<8x128xbf16>
    %c1_56 = arith.constant 1 : index
    %c0_57 = arith.constant 0 : index
    %c0_58 = arith.constant 0 : index
    %48 = vector.load %arg7[%c1_56, %c0_57, %c0_58] : memref<3x128x128xbf16, #tpu.memory_space<vmem>>, vector<1x128x128xbf16>
    %49 = vector.shape_cast %48 : vector<1x128x128xbf16> to vector<128x128xbf16>
    %cst_59 = arith.constant dense<0.000000e+00> : vector<8x128xf32>
    %50 = tpu.matmul %47, %49, %cst_59 {dimension_numbers = #tpu.dot_dimension_numbers<[1], [0], [0], [1], [0, 0, 1, 1], [], []>} : vector<8x128xbf16>, vector<128x128xbf16>, vector<8x128xf32> -> vector<8x128xf32>
    %51 = arith.addf %46, %50 : vector<8x128xf32>
    %c2 = arith.constant 2 : index
    %c0_60 = arith.constant 0 : index
    %52 = vector.load %arg12[%c2, %c0_60] : memref<10x128xbf16, #tpu.memory_space<vmem>>, vector<8x128xbf16>
    %c2_61 = arith.constant 2 : index
    %c0_62 = arith.constant 0 : index
    %c0_63 = arith.constant 0 : index
    %53 = vector.load %arg6[%c2_61, %c0_62, %c0_63] : memref<3x128x128xbf16, #tpu.memory_space<vmem>>, vector<1x128x128xbf16>
    %54 = vector.shape_cast %53 : vector<1x128x128xbf16> to vector<128x128xbf16>
    %cst_64 = arith.constant dense<0.000000e+00> : vector<8x128xf32>
    %55 = tpu.matmul %52, %54, %cst_64 {dimension_numbers = #tpu.dot_dimension_numbers<[1], [0], [0], [1], [0, 0, 1, 1], [], []>} : vector<8x128xbf16>, vector<128x128xbf16>, vector<8x128xf32> -> vector<8x128xf32>
    %56 = arith.addf %51, %55 : vector<8x128xf32>
    %c2_65 = arith.constant 2 : index
    %c0_66 = arith.constant 0 : index
    %57 = vector.load %arg13[%c2_65, %c0_66] : memref<10x128xbf16, #tpu.memory_space<vmem>>, vector<8x128xbf16>
    %c2_67 = arith.constant 2 : index
    %c0_68 = arith.constant 0 : index
    %c0_69 = arith.constant 0 : index
    %58 = vector.load %arg7[%c2_67, %c0_68, %c0_69] : memref<3x128x128xbf16, #tpu.memory_space<vmem>>, vector<1x128x128xbf16>
    %59 = vector.shape_cast %58 : vector<1x128x128xbf16> to vector<128x128xbf16>
    %cst_70 = arith.constant dense<0.000000e+00> : vector<8x128xf32>
    %60 = tpu.matmul %57, %59, %cst_70 {dimension_numbers = #tpu.dot_dimension_numbers<[1], [0], [0], [1], [0, 0, 1, 1], [], []>} : vector<8x128xbf16>, vector<128x128xbf16>, vector<8x128xf32> -> vector<8x128xf32>
    %61 = arith.addf %56, %60 : vector<8x128xf32>
    %c0_71 = arith.constant 0 : index
    %c0_72 = arith.constant 0 : index
    %62 = vector.load %arg8[%c0_71, %c0_72] : memref<1x128xf32, #tpu.memory_space<vmem>>, vector<1x128xf32>
    %63 = vector.broadcast %62 : vector<1x128xf32> to vector<8x128xf32>
    %64 = arith.addf %61, %63 : vector<8x128xf32>
    %cst_73 = arith.constant 0.000000e+00 : f32
    %65 = vector.broadcast %cst_73 : f32 to vector<8x128xf32>
    %66 = arith.maximumf %64, %65 : vector<8x128xf32>
    %cst_74 = arith.constant 0.000000e+00 : bf16
    %67 = vector.broadcast %cst_74 : bf16 to vector<10x128xbf16>
    %c0_75 = arith.constant 0 : index
    %c0_76 = arith.constant 0 : index
    %68 = vector.load %arg14[%c0_75, %c0_76] : memref<10x128xbf16, #tpu.memory_space<vmem>>, vector<10x128xbf16>
    tpu.vector_store %arg14[%c0_75, %c0_76], %67 {strides = array<i32>} : memref<10x128xbf16, #tpu.memory_space<vmem>>, vector<10x128xbf16>,
    %69 = arith.truncf %66 : vector<8x128xf32> to vector<8x128xbf16>
    %c1_77 = arith.constant 1 : index
    %c0_78 = arith.constant 0 : index
    %70 = vector.load %arg14[%c1_77, %c0_78] : memref<10x128xbf16, #tpu.memory_space<vmem>>, vector<8x128xbf16>
    tpu.vector_store %arg14[%c1_77, %c0_78], %69 {strides = array<i32>} : memref<10x128xbf16, #tpu.memory_space<vmem>>, vector<8x128xbf16>,
    %cst_79 = arith.constant 0.000000e+00 : f32
    %71 = vector.broadcast %cst_79 : f32 to vector<8x128xf32>
    %c0_80 = arith.constant 0 : index
    %c0_81 = arith.constant 0 : index
    %72 = vector.load %arg14[%c0_80, %c0_81] : memref<10x128xbf16, #tpu.memory_space<vmem>>, vector<8x128xbf16>
    %c0_82 = arith.constant 0 : index
    %c0_83 = arith.constant 0 : index
    %c0_84 = arith.constant 0 : index
    %73 = vector.load %arg9[%c0_82, %c0_83, %c0_84] : memref<3x128x128xbf16, #tpu.memory_space<vmem>>, vector<1x128x128xbf16>
    %74 = vector.shape_cast %73 : vector<1x128x128xbf16> to vector<128x128xbf16>
    %cst_85 = arith.constant dense<0.000000e+00> : vector<8x128xf32>
    %75 = tpu.matmul %72, %74, %cst_85 {dimension_numbers = #tpu.dot_dimension_numbers<[1], [0], [0], [1], [0, 0, 1, 1], [], []>} : vector<8x128xbf16>, vector<128x128xbf16>, vector<8x128xf32> -> vector<8x128xf32>
    %76 = arith.addf %71, %75 : vector<8x128xf32>
    %c1_86 = arith.constant 1 : index
    %c0_87 = arith.constant 0 : index
    %77 = vector.load %arg14[%c1_86, %c0_87] : memref<10x128xbf16, #tpu.memory_space<vmem>>, vector<8x128xbf16>
    %c1_88 = arith.constant 1 : index
    %c0_89 = arith.constant 0 : index
    %c0_90 = arith.constant 0 : index
    %78 = vector.load %arg9[%c1_88, %c0_89, %c0_90] : memref<3x128x128xbf16, #tpu.memory_space<vmem>>, vector<1x128x128xbf16>
    %79 = vector.shape_cast %78 : vector<1x128x128xbf16> to vector<128x128xbf16>
    %cst_91 = arith.constant dense<0.000000e+00> : vector<8x128xf32>
    %80 = tpu.matmul %77, %79, %cst_91 {dimension_numbers = #tpu.dot_dimension_numbers<[1], [0], [0], [1], [0, 0, 1, 1], [], []>} : vector<8x128xbf16>, vector<128x128xbf16>, vector<8x128xf32> -> vector<8x128xf32>
    %81 = arith.addf %76, %80 : vector<8x128xf32>
    %c2_92 = arith.constant 2 : index
    %c0_93 = arith.constant 0 : index
    %82 = vector.load %arg14[%c2_92, %c0_93] : memref<10x128xbf16, #tpu.memory_space<vmem>>, vector<8x128xbf16>
    %c2_94 = arith.constant 2 : index
    %c0_95 = arith.constant 0 : index
    %c0_96 = arith.constant 0 : index
    %83 = vector.load %arg9[%c2_94, %c0_95, %c0_96] : memref<3x128x128xbf16, #tpu.memory_space<vmem>>, vector<1x128x128xbf16>
    %84 = vector.shape_cast %83 : vector<1x128x128xbf16> to vector<128x128xbf16>
    %cst_97 = arith.constant dense<0.000000e+00> : vector<8x128xf32>
    %85 = tpu.matmul %82, %84, %cst_97 {dimension_numbers = #tpu.dot_dimension_numbers<[1], [0], [0], [1], [0, 0, 1, 1], [], []>} : vector<8x128xbf16>, vector<128x128xbf16>, vector<8x128xf32> -> vector<8x128xf32>
    %86 = arith.addf %81, %85 : vector<8x128xf32>
    %c0_98 = arith.constant 0 : index
    %c0_99 = arith.constant 0 : index
    %87 = vector.load %arg10[%c0_98, %c0_99] : memref<1x128xf32, #tpu.memory_space<vmem>>, vector<1x128xf32>
    %88 = vector.broadcast %87 : vector<1x128xf32> to vector<8x128xf32>
    %89 = arith.addf %86, %88 : vector<8x128xf32>
    %cst_100 = arith.constant 0.000000e+00 : f32
    %90 = vector.broadcast %cst_100 : f32 to vector<8x128xf32>
    %91 = arith.maximumf %89, %90 : vector<8x128xf32>
    %92 = arith.truncf %91 : vector<8x128xf32> to vector<8x128xbf16>
    %c0_101 = arith.constant 0 : index
    %c0_102 = arith.constant 0 : index
    %c0_103 = arith.constant 0 : index
    %93 = vector.load %arg11[%c0_101, %c0_102, %c0_103] : memref<1x8x128xbf16, #tpu.memory_space<vmem>>, vector<1x8x128xbf16>
    %94 = vector.shape_cast %93 : vector<1x8x128xbf16> to vector<8x128xbf16>
    %95 = vector.shape_cast %92 : vector<8x128xbf16> to vector<1x8x128xbf16>
    tpu.vector_store %arg11[%c0_101, %c0_102, %c0_103], %95 {strides = array<i32>} : memref<1x8x128xbf16, #tpu.memory_space<vmem>>, vector<1x8x128xbf16>,
    return
  }
  func.func @transform_0(%arg0: i32) -> (i32, i32, i32) {
    %c0_i32 = arith.constant 0 : i32
    %c0_i32_0 = arith.constant 0 : i32
    %c0_i32_1 = arith.constant 0 : i32
    return %arg0, %c0_i32, %c0_i32_0 : i32, i32, i32
  }
  func.func @transform_1(%arg0: i32) -> (i32, i32, i32) {
    %c0_i32 = arith.constant 0 : i32
    %c0_i32_0 = arith.constant 0 : i32
    %c0_i32_1 = arith.constant 0 : i32
    return %arg0, %c0_i32, %c0_i32_0 : i32, i32, i32
  }
  func.func @transform_2(%arg0: i32) -> (i32, i32, i32) {
    %c0_i32 = arith.constant 0 : i32
    %c0_i32_0 = arith.constant 0 : i32
    %c0_i32_1 = arith.constant 0 : i32
    %c0_i32_2 = arith.constant 0 : i32
    return %c0_i32, %c0_i32_0, %c0_i32_1 : i32, i32, i32
  }
  func.func @transform_3(%arg0: i32) -> (i32, i32) {
    %c0_i32 = arith.constant 0 : i32
    %c0_i32_0 = arith.constant 0 : i32
    %c0_i32_1 = arith.constant 0 : i32
    return %c0_i32, %c0_i32_0 : i32, i32
  }
  func.func @transform_4(%arg0: i32) -> (i32, i32, i32) {
    %c0_i32 = arith.constant 0 : i32
    %c0_i32_0 = arith.constant 0 : i32
    %c0_i32_1 = arith.constant 0 : i32
    %c0_i32_2 = arith.constant 0 : i32
    return %c0_i32, %c0_i32_0, %c0_i32_1 : i32, i32, i32
  }
  func.func @transform_5(%arg0: i32) -> (i32, i32, i32) {
    %c0_i32 = arith.constant 0 : i32
    %c0_i32_0 = arith.constant 0 : i32
    %c0_i32_1 = arith.constant 0 : i32
    %c0_i32_2 = arith.constant 0 : i32
    return %c0_i32, %c0_i32_0, %c0_i32_1 : i32, i32, i32
  }
  func.func @transform_6(%arg0: i32) -> (i32, i32, i32) {
    %c0_i32 = arith.constant 0 : i32
    %c0_i32_0 = arith.constant 0 : i32
    %c0_i32_1 = arith.constant 0 : i32
    %c0_i32_2 = arith.constant 0 : i32
    return %c0_i32, %c0_i32_0, %c0_i32_1 : i32, i32, i32
  }
  func.func @transform_7(%arg0: i32) -> (i32, i32) {
    %c0_i32 = arith.constant 0 : i32
    %c0_i32_0 = arith.constant 0 : i32
    %c0_i32_1 = arith.constant 0 : i32
    return %c0_i32, %c0_i32_0 : i32, i32
  }
  func.func @transform_8(%arg0: i32) -> (i32, i32, i32) {
    %c0_i32 = arith.constant 0 : i32
    %c0_i32_0 = arith.constant 0 : i32
    %c0_i32_1 = arith.constant 0 : i32
    %c0_i32_2 = arith.constant 0 : i32
    return %c0_i32, %c0_i32_0, %c0_i32_1 : i32, i32, i32
  }
  func.func @transform_9(%arg0: i32) -> (i32, i32) {
    %c0_i32 = arith.constant 0 : i32
    %c0_i32_0 = arith.constant 0 : i32
    %c0_i32_1 = arith.constant 0 : i32
    return %c0_i32, %c0_i32_0 : i32, i32
  }
  func.func @transform_10(%arg0: i32) -> (i32, i32, i32) {
    %c0_i32 = arith.constant 0 : i32
    %c0_i32_0 = arith.constant 0 : i32
    %c0_i32_1 = arith.constant 0 : i32
    return %arg0, %c0_i32, %c0_i32_0 : i32, i32, i32
  }
}

module attributes {stable_mosaic.version = 11 : i64} {
  func.func @_up_block_kernel(%arg0: i32, %arg1: memref<1x8x128xbf16, #tpu.memory_space<vmem>>, %arg2: memref<1x16x128xbf16, #tpu.memory_space<vmem>>, %arg3: memref<2x128x128xbf16, #tpu.memory_space<vmem>>, %arg4: memref<1x128xf32, #tpu.memory_space<vmem>>, %arg5: memref<2x16x8xf32, #tpu.memory_space<vmem>>, %arg6: memref<3x128x128xbf16, #tpu.memory_space<vmem>>, %arg7: memref<3x128x128xbf16, #tpu.memory_space<vmem>>, %arg8: memref<1x128xf32, #tpu.memory_space<vmem>>, %arg9: memref<3x128x128xbf16, #tpu.memory_space<vmem>>, %arg10: memref<1x128xf32, #tpu.memory_space<vmem>>, %arg11: memref<128x48xbf16, #tpu.memory_space<vmem>>, %arg12: memref<1x48xf32, #tpu.memory_space<vmem>>, %arg13: memref<1x16x48xf32, #tpu.memory_space<vmem>>, %arg14: memref<18x128xbf16, #tpu.memory_space<vmem>>, %arg15: memref<18x128xbf16, #tpu.memory_space<vmem>>, %arg16: memref<18x128xbf16, #tpu.memory_space<vmem>>) attributes {dimension_semantics = [#tpu.dimension_semantics<parallel>], iteration_bounds = array<i64: 2>, scalar_prefetch = 0 : i64, scratch_operands = 3 : i64, tpu.core_type = #tpu.core_type<tc>, window_params = [{transform_indices = @transform_0, window_bounds = array<i64: 1, 8, 128>}, {transform_indices = @transform_1, window_bounds = array<i64: 1, 16, 128>}, {pipeline_mode = #tpu.pipeline_mode<synchronous>, transform_indices = @transform_2, window_bounds = array<i64: 2, 128, 128>}, {pipeline_mode = #tpu.pipeline_mode<synchronous>, transform_indices = @transform_3, window_bounds = array<i64: 1, 128>}, {pipeline_mode = #tpu.pipeline_mode<synchronous>, transform_indices = @transform_4, window_bounds = array<i64: 2, 16, 8>}, {pipeline_mode = #tpu.pipeline_mode<synchronous>, transform_indices = @transform_5, window_bounds = array<i64: 3, 128, 128>}, {pipeline_mode = #tpu.pipeline_mode<synchronous>, transform_indices = @transform_6, window_bounds = array<i64: 3, 128, 128>}, {pipeline_mode = #tpu.pipeline_mode<synchronous>, transform_indices = @transform_7, window_bounds = array<i64: 1, 128>}, {pipeline_mode = #tpu.pipeline_mode<synchronous>, transform_indices = @transform_8, window_bounds = array<i64: 3, 128, 128>}, {pipeline_mode = #tpu.pipeline_mode<synchronous>, transform_indices = @transform_9, window_bounds = array<i64: 1, 128>}, {pipeline_mode = #tpu.pipeline_mode<synchronous>, transform_indices = @transform_10, window_bounds = array<i64: 128, 48>}, {pipeline_mode = #tpu.pipeline_mode<synchronous>, transform_indices = @transform_11, window_bounds = array<i64: 1, 48>}, {transform_indices = @transform_12, window_bounds = array<i64: 1, 16, 48>}]} {
    %cst = arith.constant 0.000000e+00 : f32
    %0 = vector.broadcast %cst : f32 to vector<16x128xf32>
    %c0 = arith.constant 0 : index
    %c0_0 = arith.constant 0 : index
    %c0_1 = arith.constant 0 : index
    %1 = vector.load %arg1[%c0, %c0_0, %c0_1] : memref<1x8x128xbf16, #tpu.memory_space<vmem>>, vector<1x8x128xbf16>
    %2 = vector.shape_cast %1 : vector<1x8x128xbf16> to vector<8x128xbf16>
    %c0_2 = arith.constant 0 : index
    %c0_3 = arith.constant 0 : index
    %c0_4 = arith.constant 0 : index
    %3 = vector.load %arg3[%c0_2, %c0_3, %c0_4] : memref<2x128x128xbf16, #tpu.memory_space<vmem>>, vector<1x128x128xbf16>
    %4 = vector.shape_cast %3 : vector<1x128x128xbf16> to vector<128x128xbf16>
    %cst_5 = arith.constant dense<0.000000e+00> : vector<8x128xf32>
    %5 = tpu.matmul %2, %4, %cst_5 {dimension_numbers = #tpu.dot_dimension_numbers<[1], [0], [0], [1], [0, 0, 1, 1], [], []>} : vector<8x128xbf16>, vector<128x128xbf16>, vector<8x128xf32> -> vector<8x128xf32>
    %c0_6 = arith.constant 0 : index
    %c0_7 = arith.constant 0 : index
    %c0_8 = arith.constant 0 : index
    %6 = vector.load %arg5[%c0_6, %c0_7, %c0_8] : memref<2x16x8xf32, #tpu.memory_space<vmem>>, vector<1x16x8xf32>
    %7 = vector.shape_cast %6 : vector<1x16x8xf32> to vector<16x8xf32>
    %cst_9 = arith.constant dense<0.000000e+00> : vector<16x128xf32>
    %8 = tpu.matmul %7, %5, %cst_9 {dimension_numbers = #tpu.dot_dimension_numbers<[1], [0], [0], [1], [0, 0, 1, 1], [], []>} : vector<16x8xf32>, vector<8x128xf32>, vector<16x128xf32> -> vector<16x128xf32>
    %9 = arith.addf %0, %8 : vector<16x128xf32>
    %c0_10 = arith.constant 0 : index
    %c0_11 = arith.constant 0 : index
    %c0_12 = arith.constant 0 : index
    %10 = vector.load %arg1[%c0_10, %c0_11, %c0_12] : memref<1x8x128xbf16, #tpu.memory_space<vmem>>, vector<1x8x128xbf16>
    %11 = vector.shape_cast %10 : vector<1x8x128xbf16> to vector<8x128xbf16>
    %c1 = arith.constant 1 : index
    %c0_13 = arith.constant 0 : index
    %c0_14 = arith.constant 0 : index
    %12 = vector.load %arg3[%c1, %c0_13, %c0_14] : memref<2x128x128xbf16, #tpu.memory_space<vmem>>, vector<1x128x128xbf16>
    %13 = vector.shape_cast %12 : vector<1x128x128xbf16> to vector<128x128xbf16>
    %cst_15 = arith.constant dense<0.000000e+00> : vector<8x128xf32>
    %14 = tpu.matmul %11, %13, %cst_15 {dimension_numbers = #tpu.dot_dimension_numbers<[1], [0], [0], [1], [0, 0, 1, 1], [], []>} : vector<8x128xbf16>, vector<128x128xbf16>, vector<8x128xf32> -> vector<8x128xf32>
    %c1_16 = arith.constant 1 : index
    %c0_17 = arith.constant 0 : index
    %c0_18 = arith.constant 0 : index
    %15 = vector.load %arg5[%c1_16, %c0_17, %c0_18] : memref<2x16x8xf32, #tpu.memory_space<vmem>>, vector<1x16x8xf32>
    %16 = vector.shape_cast %15 : vector<1x16x8xf32> to vector<16x8xf32>
    %cst_19 = arith.constant dense<0.000000e+00> : vector<16x128xf32>
    %17 = tpu.matmul %16, %14, %cst_19 {dimension_numbers = #tpu.dot_dimension_numbers<[1], [0], [0], [1], [0, 0, 1, 1], [], []>} : vector<16x8xf32>, vector<8x128xf32>, vector<16x128xf32> -> vector<16x128xf32>
    %18 = arith.addf %9, %17 : vector<16x128xf32>
    %c0_20 = arith.constant 0 : index
    %c0_21 = arith.constant 0 : index
    %19 = vector.load %arg4[%c0_20, %c0_21] : memref<1x128xf32, #tpu.memory_space<vmem>>, vector<1x128xf32>
    %20 = vector.broadcast %19 : vector<1x128xf32> to vector<16x128xf32>
    %21 = arith.addf %18, %20 : vector<16x128xf32>
    %cst_22 = arith.constant 0.000000e+00 : bf16
    %22 = vector.broadcast %cst_22 : bf16 to vector<18x128xbf16>
    %c0_23 = arith.constant 0 : index
    %c0_24 = arith.constant 0 : index
    %23 = vector.load %arg14[%c0_23, %c0_24] : memref<18x128xbf16, #tpu.memory_space<vmem>>, vector<18x128xbf16>
    tpu.vector_store %arg14[%c0_23, %c0_24], %22 {strides = array<i32>} : memref<18x128xbf16, #tpu.memory_space<vmem>>, vector<18x128xbf16>,
    %24 = arith.truncf %21 : vector<16x128xf32> to vector<16x128xbf16>
    %c1_25 = arith.constant 1 : index
    %c0_26 = arith.constant 0 : index
    %25 = vector.load %arg14[%c1_25, %c0_26] : memref<18x128xbf16, #tpu.memory_space<vmem>>, vector<16x128xbf16>
    tpu.vector_store %arg14[%c1_25, %c0_26], %24 {strides = array<i32>} : memref<18x128xbf16, #tpu.memory_space<vmem>>, vector<16x128xbf16>,
    %cst_27 = arith.constant 0.000000e+00 : bf16
    %26 = vector.broadcast %cst_27 : bf16 to vector<18x128xbf16>
    %c0_28 = arith.constant 0 : index
    %c0_29 = arith.constant 0 : index
    %27 = vector.load %arg15[%c0_28, %c0_29] : memref<18x128xbf16, #tpu.memory_space<vmem>>, vector<18x128xbf16>
    tpu.vector_store %arg15[%c0_28, %c0_29], %26 {strides = array<i32>} : memref<18x128xbf16, #tpu.memory_space<vmem>>, vector<18x128xbf16>,
    %c0_30 = arith.constant 0 : index
    %c0_31 = arith.constant 0 : index
    %c0_32 = arith.constant 0 : index
    %28 = vector.load %arg2[%c0_30, %c0_31, %c0_32] : memref<1x16x128xbf16, #tpu.memory_space<vmem>>, vector<1x16x128xbf16>
    %29 = vector.shape_cast %28 : vector<1x16x128xbf16> to vector<16x128xbf16>
    %c1_33 = arith.constant 1 : index
    %c0_34 = arith.constant 0 : index
    %30 = vector.load %arg15[%c1_33, %c0_34] : memref<18x128xbf16, #tpu.memory_space<vmem>>, vector<16x128xbf16>
    tpu.vector_store %arg15[%c1_33, %c0_34], %29 {strides = array<i32>} : memref<18x128xbf16, #tpu.memory_space<vmem>>, vector<16x128xbf16>,
    %cst_35 = arith.constant 0.000000e+00 : f32
    %31 = vector.broadcast %cst_35 : f32 to vector<16x128xf32>
    %c0_36 = arith.constant 0 : index
    %c0_37 = arith.constant 0 : index
    %32 = vector.load %arg14[%c0_36, %c0_37] : memref<18x128xbf16, #tpu.memory_space<vmem>>, vector<16x128xbf16>
    %c0_38 = arith.constant 0 : index
    %c0_39 = arith.constant 0 : index
    %c0_40 = arith.constant 0 : index
    %33 = vector.load %arg6[%c0_38, %c0_39, %c0_40] : memref<3x128x128xbf16, #tpu.memory_space<vmem>>, vector<1x128x128xbf16>
    %34 = vector.shape_cast %33 : vector<1x128x128xbf16> to vector<128x128xbf16>
    %cst_41 = arith.constant dense<0.000000e+00> : vector<16x128xf32>
    %35 = tpu.matmul %32, %34, %cst_41 {dimension_numbers = #tpu.dot_dimension_numbers<[1], [0], [0], [1], [0, 0, 1, 1], [], []>} : vector<16x128xbf16>, vector<128x128xbf16>, vector<16x128xf32> -> vector<16x128xf32>
    %36 = arith.addf %31, %35 : vector<16x128xf32>
    %c0_42 = arith.constant 0 : index
    %c0_43 = arith.constant 0 : index
    %37 = vector.load %arg15[%c0_42, %c0_43] : memref<18x128xbf16, #tpu.memory_space<vmem>>, vector<16x128xbf16>
    %c0_44 = arith.constant 0 : index
    %c0_45 = arith.constant 0 : index
    %c0_46 = arith.constant 0 : index
    %38 = vector.load %arg7[%c0_44, %c0_45, %c0_46] : memref<3x128x128xbf16, #tpu.memory_space<vmem>>, vector<1x128x128xbf16>
    %39 = vector.shape_cast %38 : vector<1x128x128xbf16> to vector<128x128xbf16>
    %cst_47 = arith.constant dense<0.000000e+00> : vector<16x128xf32>
    %40 = tpu.matmul %37, %39, %cst_47 {dimension_numbers = #tpu.dot_dimension_numbers<[1], [0], [0], [1], [0, 0, 1, 1], [], []>} : vector<16x128xbf16>, vector<128x128xbf16>, vector<16x128xf32> -> vector<16x128xf32>
    %41 = arith.addf %36, %40 : vector<16x128xf32>
    %c1_48 = arith.constant 1 : index
    %c0_49 = arith.constant 0 : index
    %42 = vector.load %arg14[%c1_48, %c0_49] : memref<18x128xbf16, #tpu.memory_space<vmem>>, vector<16x128xbf16>
    %c1_50 = arith.constant 1 : index
    %c0_51 = arith.constant 0 : index
    %c0_52 = arith.constant 0 : index
    %43 = vector.load %arg6[%c1_50, %c0_51, %c0_52] : memref<3x128x128xbf16, #tpu.memory_space<vmem>>, vector<1x128x128xbf16>
    %44 = vector.shape_cast %43 : vector<1x128x128xbf16> to vector<128x128xbf16>
    %cst_53 = arith.constant dense<0.000000e+00> : vector<16x128xf32>
    %45 = tpu.matmul %42, %44, %cst_53 {dimension_numbers = #tpu.dot_dimension_numbers<[1], [0], [0], [1], [0, 0, 1, 1], [], []>} : vector<16x128xbf16>, vector<128x128xbf16>, vector<16x128xf32> -> vector<16x128xf32>
    %46 = arith.addf %41, %45 : vector<16x128xf32>
    %c1_54 = arith.constant 1 : index
    %c0_55 = arith.constant 0 : index
    %47 = vector.load %arg15[%c1_54, %c0_55] : memref<18x128xbf16, #tpu.memory_space<vmem>>, vector<16x128xbf16>
    %c1_56 = arith.constant 1 : index
    %c0_57 = arith.constant 0 : index
    %c0_58 = arith.constant 0 : index
    %48 = vector.load %arg7[%c1_56, %c0_57, %c0_58] : memref<3x128x128xbf16, #tpu.memory_space<vmem>>, vector<1x128x128xbf16>
    %49 = vector.shape_cast %48 : vector<1x128x128xbf16> to vector<128x128xbf16>
    %cst_59 = arith.constant dense<0.000000e+00> : vector<16x128xf32>
    %50 = tpu.matmul %47, %49, %cst_59 {dimension_numbers = #tpu.dot_dimension_numbers<[1], [0], [0], [1], [0, 0, 1, 1], [], []>} : vector<16x128xbf16>, vector<128x128xbf16>, vector<16x128xf32> -> vector<16x128xf32>
    %51 = arith.addf %46, %50 : vector<16x128xf32>
    %c2 = arith.constant 2 : index
    %c0_60 = arith.constant 0 : index
    %52 = vector.load %arg14[%c2, %c0_60] : memref<18x128xbf16, #tpu.memory_space<vmem>>, vector<16x128xbf16>
    %c2_61 = arith.constant 2 : index
    %c0_62 = arith.constant 0 : index
    %c0_63 = arith.constant 0 : index
    %53 = vector.load %arg6[%c2_61, %c0_62, %c0_63] : memref<3x128x128xbf16, #tpu.memory_space<vmem>>, vector<1x128x128xbf16>
    %54 = vector.shape_cast %53 : vector<1x128x128xbf16> to vector<128x128xbf16>
    %cst_64 = arith.constant dense<0.000000e+00> : vector<16x128xf32>
    %55 = tpu.matmul %52, %54, %cst_64 {dimension_numbers = #tpu.dot_dimension_numbers<[1], [0], [0], [1], [0, 0, 1, 1], [], []>} : vector<16x128xbf16>, vector<128x128xbf16>, vector<16x128xf32> -> vector<16x128xf32>
    %56 = arith.addf %51, %55 : vector<16x128xf32>
    %c2_65 = arith.constant 2 : index
    %c0_66 = arith.constant 0 : index
    %57 = vector.load %arg15[%c2_65, %c0_66] : memref<18x128xbf16, #tpu.memory_space<vmem>>, vector<16x128xbf16>
    %c2_67 = arith.constant 2 : index
    %c0_68 = arith.constant 0 : index
    %c0_69 = arith.constant 0 : index
    %58 = vector.load %arg7[%c2_67, %c0_68, %c0_69] : memref<3x128x128xbf16, #tpu.memory_space<vmem>>, vector<1x128x128xbf16>
    %59 = vector.shape_cast %58 : vector<1x128x128xbf16> to vector<128x128xbf16>
    %cst_70 = arith.constant dense<0.000000e+00> : vector<16x128xf32>
    %60 = tpu.matmul %57, %59, %cst_70 {dimension_numbers = #tpu.dot_dimension_numbers<[1], [0], [0], [1], [0, 0, 1, 1], [], []>} : vector<16x128xbf16>, vector<128x128xbf16>, vector<16x128xf32> -> vector<16x128xf32>
    %61 = arith.addf %56, %60 : vector<16x128xf32>
    %c0_71 = arith.constant 0 : index
    %c0_72 = arith.constant 0 : index
    %62 = vector.load %arg8[%c0_71, %c0_72] : memref<1x128xf32, #tpu.memory_space<vmem>>, vector<1x128xf32>
    %63 = vector.broadcast %62 : vector<1x128xf32> to vector<16x128xf32>
    %64 = arith.addf %61, %63 : vector<16x128xf32>
    %cst_73 = arith.constant 0.000000e+00 : f32
    %65 = vector.broadcast %cst_73 : f32 to vector<16x128xf32>
    %66 = arith.maximumf %64, %65 : vector<16x128xf32>
    %cst_74 = arith.constant 0.000000e+00 : bf16
    %67 = vector.broadcast %cst_74 : bf16 to vector<18x128xbf16>
    %c0_75 = arith.constant 0 : index
    %c0_76 = arith.constant 0 : index
    %68 = vector.load %arg16[%c0_75, %c0_76] : memref<18x128xbf16, #tpu.memory_space<vmem>>, vector<18x128xbf16>
    tpu.vector_store %arg16[%c0_75, %c0_76], %67 {strides = array<i32>} : memref<18x128xbf16, #tpu.memory_space<vmem>>, vector<18x128xbf16>,
    %69 = arith.truncf %66 : vector<16x128xf32> to vector<16x128xbf16>
    %c1_77 = arith.constant 1 : index
    %c0_78 = arith.constant 0 : index
    %70 = vector.load %arg16[%c1_77, %c0_78] : memref<18x128xbf16, #tpu.memory_space<vmem>>, vector<16x128xbf16>
    tpu.vector_store %arg16[%c1_77, %c0_78], %69 {strides = array<i32>} : memref<18x128xbf16, #tpu.memory_space<vmem>>, vector<16x128xbf16>,
    %cst_79 = arith.constant 0.000000e+00 : f32
    %71 = vector.broadcast %cst_79 : f32 to vector<16x128xf32>
    %c0_80 = arith.constant 0 : index
    %c0_81 = arith.constant 0 : index
    %72 = vector.load %arg16[%c0_80, %c0_81] : memref<18x128xbf16, #tpu.memory_space<vmem>>, vector<16x128xbf16>
    %c0_82 = arith.constant 0 : index
    %c0_83 = arith.constant 0 : index
    %c0_84 = arith.constant 0 : index
    %73 = vector.load %arg9[%c0_82, %c0_83, %c0_84] : memref<3x128x128xbf16, #tpu.memory_space<vmem>>, vector<1x128x128xbf16>
    %74 = vector.shape_cast %73 : vector<1x128x128xbf16> to vector<128x128xbf16>
    %cst_85 = arith.constant dense<0.000000e+00> : vector<16x128xf32>
    %75 = tpu.matmul %72, %74, %cst_85 {dimension_numbers = #tpu.dot_dimension_numbers<[1], [0], [0], [1], [0, 0, 1, 1], [], []>} : vector<16x128xbf16>, vector<128x128xbf16>, vector<16x128xf32> -> vector<16x128xf32>
    %76 = arith.addf %71, %75 : vector<16x128xf32>
    %c1_86 = arith.constant 1 : index
    %c0_87 = arith.constant 0 : index
    %77 = vector.load %arg16[%c1_86, %c0_87] : memref<18x128xbf16, #tpu.memory_space<vmem>>, vector<16x128xbf16>
    %c1_88 = arith.constant 1 : index
    %c0_89 = arith.constant 0 : index
    %c0_90 = arith.constant 0 : index
    %78 = vector.load %arg9[%c1_88, %c0_89, %c0_90] : memref<3x128x128xbf16, #tpu.memory_space<vmem>>, vector<1x128x128xbf16>
    %79 = vector.shape_cast %78 : vector<1x128x128xbf16> to vector<128x128xbf16>
    %cst_91 = arith.constant dense<0.000000e+00> : vector<16x128xf32>
    %80 = tpu.matmul %77, %79, %cst_91 {dimension_numbers = #tpu.dot_dimension_numbers<[1], [0], [0], [1], [0, 0, 1, 1], [], []>} : vector<16x128xbf16>, vector<128x128xbf16>, vector<16x128xf32> -> vector<16x128xf32>
    %81 = arith.addf %76, %80 : vector<16x128xf32>
    %c2_92 = arith.constant 2 : index
    %c0_93 = arith.constant 0 : index
    %82 = vector.load %arg16[%c2_92, %c0_93] : memref<18x128xbf16, #tpu.memory_space<vmem>>, vector<16x128xbf16>
    %c2_94 = arith.constant 2 : index
    %c0_95 = arith.constant 0 : index
    %c0_96 = arith.constant 0 : index
    %83 = vector.load %arg9[%c2_94, %c0_95, %c0_96] : memref<3x128x128xbf16, #tpu.memory_space<vmem>>, vector<1x128x128xbf16>
    %84 = vector.shape_cast %83 : vector<1x128x128xbf16> to vector<128x128xbf16>
    %cst_97 = arith.constant dense<0.000000e+00> : vector<16x128xf32>
    %85 = tpu.matmul %82, %84, %cst_97 {dimension_numbers = #tpu.dot_dimension_numbers<[1], [0], [0], [1], [0, 0, 1, 1], [], []>} : vector<16x128xbf16>, vector<128x128xbf16>, vector<16x128xf32> -> vector<16x128xf32>
    %86 = arith.addf %81, %85 : vector<16x128xf32>
    %c0_98 = arith.constant 0 : index
    %c0_99 = arith.constant 0 : index
    %87 = vector.load %arg10[%c0_98, %c0_99] : memref<1x128xf32, #tpu.memory_space<vmem>>, vector<1x128xf32>
    %88 = vector.broadcast %87 : vector<1x128xf32> to vector<16x128xf32>
    %89 = arith.addf %86, %88 : vector<16x128xf32>
    %cst_100 = arith.constant 0.000000e+00 : f32
    %90 = vector.broadcast %cst_100 : f32 to vector<16x128xf32>
    %91 = arith.maximumf %89, %90 : vector<16x128xf32>
    %92 = arith.truncf %91 : vector<16x128xf32> to vector<16x128xbf16>
    %c0_101 = arith.constant 0 : index
    %c0_102 = arith.constant 0 : index
    %93 = vector.load %arg11[%c0_101, %c0_102] : memref<128x48xbf16, #tpu.memory_space<vmem>>, vector<128x48xbf16>
    %cst_103 = arith.constant dense<0.000000e+00> : vector<16x48xf32>
    %94 = tpu.matmul %92, %93, %cst_103 {dimension_numbers = #tpu.dot_dimension_numbers<[1], [0], [0], [1], [0, 0, 1, 1], [], []>} : vector<16x128xbf16>, vector<128x48xbf16>, vector<16x48xf32> -> vector<16x48xf32>
    %c0_104 = arith.constant 0 : index
    %c0_105 = arith.constant 0 : index
    %95 = vector.load %arg12[%c0_104, %c0_105] : memref<1x48xf32, #tpu.memory_space<vmem>>, vector<1x48xf32>
    %96 = vector.broadcast %95 : vector<1x48xf32> to vector<16x48xf32>
    %97 = arith.addf %94, %96 : vector<16x48xf32>
    %c0_106 = arith.constant 0 : index
    %c0_107 = arith.constant 0 : index
    %c0_108 = arith.constant 0 : index
    %98 = vector.load %arg13[%c0_106, %c0_107, %c0_108] : memref<1x16x48xf32, #tpu.memory_space<vmem>>, vector<1x16x48xf32>
    %99 = vector.shape_cast %98 : vector<1x16x48xf32> to vector<16x48xf32>
    %100 = vector.shape_cast %97 : vector<16x48xf32> to vector<1x16x48xf32>
    tpu.vector_store %arg13[%c0_106, %c0_107, %c0_108], %100 {strides = array<i32>} : memref<1x16x48xf32, #tpu.memory_space<vmem>>, vector<1x16x48xf32>,
    return
  }
  func.func @transform_0(%arg0: i32) -> (i32, i32, i32) {
    %c0_i32 = arith.constant 0 : i32
    %c0_i32_0 = arith.constant 0 : i32
    %c0_i32_1 = arith.constant 0 : i32
    return %arg0, %c0_i32, %c0_i32_0 : i32, i32, i32
  }
  func.func @transform_1(%arg0: i32) -> (i32, i32, i32) {
    %c0_i32 = arith.constant 0 : i32
    %c0_i32_0 = arith.constant 0 : i32
    %c0_i32_1 = arith.constant 0 : i32
    return %arg0, %c0_i32, %c0_i32_0 : i32, i32, i32
  }
  func.func @transform_2(%arg0: i32) -> (i32, i32, i32) {
    %c0_i32 = arith.constant 0 : i32
    %c0_i32_0 = arith.constant 0 : i32
    %c0_i32_1 = arith.constant 0 : i32
    %c0_i32_2 = arith.constant 0 : i32
    return %c0_i32, %c0_i32_0, %c0_i32_1 : i32, i32, i32
  }
  func.func @transform_3(%arg0: i32) -> (i32, i32) {
    %c0_i32 = arith.constant 0 : i32
    %c0_i32_0 = arith.constant 0 : i32
    %c0_i32_1 = arith.constant 0 : i32
    return %c0_i32, %c0_i32_0 : i32, i32
  }
  func.func @transform_4(%arg0: i32) -> (i32, i32, i32) {
    %c0_i32 = arith.constant 0 : i32
    %c0_i32_0 = arith.constant 0 : i32
    %c0_i32_1 = arith.constant 0 : i32
    %c0_i32_2 = arith.constant 0 : i32
    return %c0_i32, %c0_i32_0, %c0_i32_1 : i32, i32, i32
  }
  func.func @transform_5(%arg0: i32) -> (i32, i32, i32) {
    %c0_i32 = arith.constant 0 : i32
    %c0_i32_0 = arith.constant 0 : i32
    %c0_i32_1 = arith.constant 0 : i32
    %c0_i32_2 = arith.constant 0 : i32
    return %c0_i32, %c0_i32_0, %c0_i32_1 : i32, i32, i32
  }
  func.func @transform_6(%arg0: i32) -> (i32, i32, i32) {
    %c0_i32 = arith.constant 0 : i32
    %c0_i32_0 = arith.constant 0 : i32
    %c0_i32_1 = arith.constant 0 : i32
    %c0_i32_2 = arith.constant 0 : i32
    return %c0_i32, %c0_i32_0, %c0_i32_1 : i32, i32, i32
  }
  func.func @transform_7(%arg0: i32) -> (i32, i32) {
    %c0_i32 = arith.constant 0 : i32
    %c0_i32_0 = arith.constant 0 : i32
    %c0_i32_1 = arith.constant 0 : i32
    return %c0_i32, %c0_i32_0 : i32, i32
  }
  func.func @transform_8(%arg0: i32) -> (i32, i32, i32) {
    %c0_i32 = arith.constant 0 : i32
    %c0_i32_0 = arith.constant 0 : i32
    %c0_i32_1 = arith.constant 0 : i32
    %c0_i32_2 = arith.constant 0 : i32
    return %c0_i32, %c0_i32_0, %c0_i32_1 : i32, i32, i32
  }
  func.func @transform_9(%arg0: i32) -> (i32, i32) {
    %c0_i32 = arith.constant 0 : i32
    %c0_i32_0 = arith.constant 0 : i32
    %c0_i32_1 = arith.constant 0 : i32
    return %c0_i32, %c0_i32_0 : i32, i32
  }
  func.func @transform_10(%arg0: i32) -> (i32, i32) {
    %c0_i32 = arith.constant 0 : i32
    %c0_i32_0 = arith.constant 0 : i32
    %c0_i32_1 = arith.constant 0 : i32
    return %c0_i32, %c0_i32_0 : i32, i32
  }
  func.func @transform_11(%arg0: i32) -> (i32, i32) {
    %c0_i32 = arith.constant 0 : i32
    %c0_i32_0 = arith.constant 0 : i32
    %c0_i32_1 = arith.constant 0 : i32
    return %c0_i32, %c0_i32_0 : i32, i32
  }
  func.func @transform_12(%arg0: i32) -> (i32, i32, i32) {
    %c0_i32 = arith.constant 0 : i32
    %c0_i32_0 = arith.constant 0 : i32
    %c0_i32_1 = arith.constant 0 : i32
    return %arg0, %c0_i32, %c0_i32_0 : i32, i32, i32
  }
}

</mosaic_0001>

<bundles_post_ra>
// kernel: forward.7
= control target key start
LH: loop header
LB: loop body
LE: loop exit
PB: predicated region body
PF: predicated region fallthrough
CT: control target
= control target key end

     0   :  { %s1252_s18 = smov 0   ;;  %s1445_s0 = inlined_call_operand.vmem [shape: bf16[2,4,64], index: 0, kind: input, shape index: {}]   ;;  %s1446_s1 = inlined_call_operand.vmem [shape: bf16[3,64,128], index: 1, kind: input, shape index: {}]   ;;  %s1447_s2 = inlined_call_operand.vmem [shape: f32[1,128], index: 2, kind: input, shape index: {}]   ;;  %s1448_s3 = inlined_call_operand.vmem [shape: bf16[3,128,128], index: 3, kind: input, shape index: {}]   ;;  %s1449_s4 = inlined_call_operand.vmem [shape: f32[1,128], index: 4, kind: input, shape index: {}]   ;;  %s1450_s5 = inlined_call_operand.vmem [shape: bf16[2,4,128], index: 5, kind: output, shape index: {}]  }
   0x1 LB: > { %s917_s19 = sadd.s32 4294967295, %s1217_s18   ;;  %p921_p0 = scmp.ge.s32.totalorder %s1217_s18, 1  ;;  %s1217_s18 = sphi %s1252_s18, %s15_s18  }
   0x2   : > { %p186_p1 = scmp.lt.s32.totalorder %s1217_s18, 3 }
   0x4   : > { %p187_p2 = pnand %p921_p0, %p186_p1 }
   0x5   : > { %p212_p3 = scmp.lt.s32.totalorder (!%p187_p2), %s917_s19, 1 }
   0x6   : > { %190 = sbr.rel (%p187_p2) target bundleno = 509 (0x1fd), region = 40 }
   0xb   : > { %v1171_v0 = vld [vmem:[%s1446_s1 + $0x38] sm:$0xff]   ;;  %v1219_v1 = vmov 0.0   ;;  %v1173_v3 = vld [vmem:[%s1446_s1 + $0x30] sm:$0xff]   ;;  %vm1220_vm0 = vmmov 0   ;;  %vm221_vm1 = vcmask 518144   ;;  %s1452_s19 = smov (!%p212_p3, %s917_s19), 1 }
   0xc   : > { %1064 = vmatprep.subr.bf16.mxu0 %v1219_v1  ;;  %1076 = vmatprep.subr.bf16.mxu1 %v1219_v1  ;;  %v1172_v2 = vld [vmem:[%s1446_s1 + $0x18] sm:$0xff]   ;;  %v1174_v4 = vld [vmem:[%s1446_s1 + $0x10] sm:$0xff]   ;;  %v1175_v5 = vld [vmem:[%s1446_s1 + $0x28] sm:$0xff]   ;;  %s922_s30 = sshll.u32 %s1452_s19, 1  ;;  %v1221_v6 = vmov 0   ;;  %vm299_vm4 = vcmask 523264  }
   0xd   : > { %1065 = vmatpush3.bf16.msra.mxu0 %v1171_v0  ;;  %1072 = vmatprep.mubr.msk.bf16.mxu0 %vm1220_vm0, %v1219_v1  ;;  %222 = vst.msk [vmem:[#allocation2] sm:$0x7] %vm221_vm1, %v1221_v6  ;;  %501 = vst [vmem:[#allocation3] sm:$0x7] %v1221_v6  ;;  %v1176_v7 = vld [vmem:[%s1446_s1 + $0x8] sm:$0xff]   ;;  %s215_s10 = scalar_lea.vmem %s1445_s0, %s922_s30  ;;  %v1177_v11 = vld [vmem:[%s1446_s1 + $0x20] sm:$0xff]   ;;  %s219_s11 = scalar_lea.vmem %s1450_s5, %s922_s30 }
   0xe   : > { %1077 = vmatpush3.bf16.msra.mxu1 %v1172_v2  ;;  %1066 = vmatprep.subr.bf16.mxu0 %v1219_v1  ;;  %v924_v8 = vld.sshfl [vmem:[%s215_s10] sm:$0x3 pattern:$0x76325410]  ;;  %vm241_vm2 = vsmask.f32 2306 }
   0xf   : > { %1078 = vmatprep.subr.bf16.mxu1 %v1219_v1  ;;  %1084 = vmatprep.mubr.msk.bf16.mxu1 %vm1220_vm0, %v1219_v1  ;;  %v233_v9 = vshrl.u32 %v924_v8, 16  ;;  %v236_v10 = vshll.u32 %v924_v8, 16  ;;  %v1178_v12 = vld [vmem:[%s1446_s1] sm:$0xff]   ;;  %vm242_vm3 = vmand %vm221_vm1, %vm241_vm2  ;;  %v1180_v22 = vld [vmem:[%s1446_s1 + $0x58] sm:$0xff]   ;;  %vm514_vm5 = vcmask 1042432  }
  0x10   : > { %v1181_v24 = vld [vmem:[%s1446_s1 + $0x50] sm:$0xff]   ;;  %v1182_v25 = vld [vmem:[%s1446_s1 + $0x48] sm:$0xff]   ;;  %v1183_v27 = vld [vmem:[%s1446_s1 + $0x40] sm:$0xff]  }
  0x11   : > { %1067 = vmatpush3.bf16.msra.mxu0 %v1173_v3  ;;  %v235_v13 = vrot.slane %v233_v9, 7  ;;  %v1185_v29 = vld [vmem:[%s1448_s3 + $0x38] sm:$0xff]   ;;  %v1186_v30 = vld [vmem:[%s1448_s3 + $0x30] sm:$0xff]   ;;  %v1188_v32 = vld [vmem:[%s1448_s3 + $0x28] sm:$0xff]  }
  0x12   : > { %1079 = vmatpush3.bf16.msra.mxu1 %v1174_v4  ;;  %1068 = vmatprep.subr.bf16.mxu0 %v1219_v1  ;;  %v1187_v31 = vld [vmem:[%s1448_s3 + $0x78] sm:$0xff]   ;;  %v1189_v33 = vld [vmem:[%s1448_s3 + $0x70] sm:$0xff]   ;;  %v1190_v34 = vld [vmem:[%s1448_s3 + $0x20] sm:$0xff]  }
  0x13   : > { %1080 = vmatprep.subr.bf16.mxu1 %v1219_v1  ;;  %v238_v14 = vor.u32 %v236_v10, %v235_v13  ;;  %v1191_v35 = vld [vmem:[%s1448_s3 + $0x68] sm:$0xff]   ;;  %v1192_v36 = vld [vmem:[%s1448_s3 + $0x18] sm:$0xff]   ;;  %v1193_v37 = vld [vmem:[%s1448_s3 + $0x60] sm:$0xff]  }
  0x14   : > { %v243_v15 = vld [vmem:[#allocation2] sm:$0x7]  ;;  %v1194_v38 = vld [vmem:[%s1448_s3 + $0x10] sm:$0xff]   ;;  %v1195_v39 = vld [vmem:[%s1448_s3 + $0x58] sm:$0xff]  }
  0x15   : > { %1069 = vmatpush3.bf16.msra.mxu0 %v1175_v5  ;;  %v244_v16 = vsel %vm242_vm3, %v238_v14, %v243_v15  ;;  %v1196_v40 = vld [vmem:[%s1448_s3 + $0x8] sm:$0xff]   ;;  %v1197_v41 = vld [vmem:[%s1448_s3 + $0x50] sm:$0xff]   ;;  %v1198_v42 = vld [vmem:[%s1448_s3] sm:$0xff]  }
  0x16   : > { %1081 = vmatpush3.bf16.msra.mxu1 %v1176_v7  ;;  %1070 = vmatprep.subr.bf16.mxu0 %v1219_v1  ;;  %245 = vst [vmem:[#allocation2] sm:$0x7] %v244_v16  ;;  %v1199_v43 = vld [vmem:[%s1448_s3 + $0x48] sm:$0xff]   ;;  %v1200_v44 = vld [vmem:[%s1448_s3 + $0x40] sm:$0xff]   ;;  %vm515_vm6 = vmand %vm514_vm5, %vm241_vm2 }
  0x17   : > { %1082 = vmatprep.subr.bf16.mxu1 %v1219_v1  ;;  %v958_v55 = vld [vmem:[%s1447_s2] ss:$0 sm:$0xff]  ;;  %v516_v3 = vld [vmem:[#allocation3] sm:$0x7]  ;;  %v1203_v13 = vld [vmem:[%s1448_s3 + $0xb0] sm:$0xff]  }
  0x18   : > { %v1204_v14 = vld [vmem:[%s1448_s3 + $0xa8] sm:$0xff]   ;;  %v1205_v15 = vld [vmem:[%s1448_s3 + $0xa0] sm:$0xff]   ;;  %v1206_v16 = vld [vmem:[%s1448_s3 + $0x98] sm:$0xff]  }
  0x19   : > { %1071 = vmatpush3.bf16.msra.mxu0 %v1177_v11  ;;  %v1202_v11 = vld [vmem:[%s1448_s3 + $0xb8] sm:$0xff]  }
  0x1a   : > { %1083 = vmatpush3.bf16.msra.mxu1 %v1178_v12  ;;  %1088 = vmatprep.subr.bf16.mxu0 %v1219_v1 }
  0x1b   : > { %1100 = vmatprep.subr.bf16.mxu1 %v1219_v1 }
  0x1d   : > { %v1179_v17 = vld [vmem:[#allocation2] ss:$0 sps:$4 sm:$0x77]  }
  0x1e   : > { %v246_v18 = vld [vmem:[#allocation2] sm:$0x3]  ;;  %v269_v19 = vshrl.u32 %v1179_v17, 16  ;;  %v271_v20 = vshll.u32 %v1179_v17, 16  ;;  %v1207_v17 = vld [vmem:[%s1448_s3 + $0x90] sm:$0xff]  }
  0x1f   : > { %1085 = vmatmul.mubr.msk.bf16.vlgmr.msra.gmra.mxu1 %vm299_vm4, %v246_v18  ;;  %v1184_v26 = vld [vmem:[#allocation2] ss:$0 sps:$4 sm:$0x66]   ;;  %v1208_v18 = vld [vmem:[%s1448_s3 + $0x88] sm:$0xff]  }
  0x20   : > { %1116 = vmatprep.mubr.msk.bf16.mxu1 %vm1220_vm0, %v1219_v1  ;;  %v273_v21 = vrot.slane %v271_v20, 1  ;;  %v423_v28 = vrot.slane %v1184_v26, 1  ;;  %1101 = vmatpush3.bf16.msra.mxu1 %v1187_v31 }
  0x21   : > { %1102 = vmatprep.subr.bf16.mxu1 %v1219_v1 }
  0x22   : > { %v274_v23 = vor.u32 %v273_v21, %v269_v19  ;;  %v1209_v19 = vld [vmem:[%s1448_s3 + $0x80] sm:$0xff]  }
  0x24   : > { %1073 = vmatmul.mubr.msk.bf16.vlgmr.msra.gmra.mxu0 %vm299_vm4, %v274_v23  ;;  %1103 = vmatpush3.bf16.msra.mxu1 %v1189_v33 }
  0x25   : > { %1089 = vmatpush3.bf16.msra.mxu0 %v1180_v22  ;;  %1096 = vmatprep.mubr.msk.bf16.mxu0 %vm1220_vm0, %v1219_v1 }
  0x26   : > { %1090 = vmatprep.subr.bf16.mxu0 %v1219_v1  ;;  %1104 = vmatprep.subr.bf16.mxu1 %v1219_v1 }
  0x28   : > { %1105 = vmatpush3.bf16.msra.mxu1 %v1191_v35 }
  0x29   : > { %1091 = vmatpush3.bf16.msra.mxu0 %v1181_v24  ;;  %1106 = vmatprep.subr.bf16.mxu1 %v1219_v1 }
  0x2a   : > { %1092 = vmatprep.subr.bf16.mxu0 %v1219_v1 }
  0x2c   : > { %1107 = vmatpush3.bf16.msra.mxu1 %v1193_v37 }
  0x2d   : > { %1093 = vmatpush3.bf16.msra.mxu0 %v1182_v25  ;;  %1108 = vmatprep.subr.bf16.mxu1 %v1219_v1 }
  0x2e   : > { %1094 = vmatprep.subr.bf16.mxu0 %v1219_v1 }
  0x30   : > { %1109 = vmatpush3.bf16.msra.mxu1 %v1195_v39 }
  0x31   : > { %1095 = vmatpush3.bf16.msra.mxu0 %v1183_v27  ;;  %1110 = vmatprep.subr.bf16.mxu1 %v1219_v1 }
  0x32   : > { %1120 = vmatprep.subr.bf16.mxu0 %v1219_v1 }
  0x34   : > { %1097 = vmatmul.mubr.msk.bf16.vlgmr.msra.gmra.mxu0 %vm299_vm4, %v423_v28  ;;  %1111 = vmatpush3.bf16.msra.mxu1 %v1197_v41 }
  0x35   : > { %1136 = vmatprep.mubr.msk.bf16.mxu0 %vm1220_vm0, %v1219_v1  ;;  %1121 = vmatpush3.bf16.msra.mxu0 %v1185_v29 }
  0x36   : > { %1122 = vmatprep.subr.bf16.mxu0 %v1219_v1  ;;  %1112 = vmatprep.subr.bf16.mxu1 %v1219_v1 }
  0x38   : > { %1113 = vmatpush3.bf16.msra.mxu1 %v1199_v43 }
  0x39   : > { %1123 = vmatpush3.bf16.msra.mxu0 %v1186_v30  ;;  %1114 = vmatprep.subr.bf16.mxu1 %v1219_v1 }
  0x3a   : > { %1124 = vmatprep.subr.bf16.mxu0 %v1219_v1 }
  0x3c   : > { %1115 = vmatpush3.bf16.msra.mxu1 %v1200_v44 }
  0x3d   : > { %1125 = vmatpush3.bf16.msra.mxu0 %v1188_v32  ;;  %1140 = vmatprep.subr.bf16.mxu1 %v1219_v1  ;;  %v1018_v32 = vld [vmem:[%s1449_s4] ss:$0 sm:$0xff] }
  0x3e   : > { %1126 = vmatprep.subr.bf16.mxu0 %v1219_v1 }
  0x41   : > { %1127 = vmatpush3.bf16.msra.mxu0 %v1190_v34 }
  0x42   : > { %1128 = vmatprep.subr.bf16.mxu0 %v1219_v1 }
  0x45   : > { %1129 = vmatpush3.bf16.msra.mxu0 %v1192_v36 }
  0x46   : > { %1130 = vmatprep.subr.bf16.mxu0 %v1219_v1 }
  0x49   : > { %1131 = vmatpush3.bf16.msra.mxu0 %v1194_v38 }
  0x4a   : > { %1132 = vmatprep.subr.bf16.mxu0 %v1219_v1 }
  0x4d   : > { %1133 = vmatpush3.bf16.msra.mxu0 %v1196_v40 }
  0x4e   : > { %1134 = vmatprep.subr.bf16.mxu0 %v1219_v1 }
  0x51   : > { %1135 = vmatpush3.bf16.msra.mxu0 %v1198_v42 }
  0xdf   : > { %v404_v45 = vpop.f32.mrf.mxu1 }
  0xe1   : > { %v1086_v46 = vpop.f32.mrf.mxu1 }
  0xe3   : > { %v407_v47 = vpop.f32.mrf.mxu1 }
  0xe4   : > { %v337_v48 = vpop.f32.mrf.mxu0 }
  0xe5   : > { %v1087_v49 = vpop.f32.mrf.mxu1  ;;  %v405_v53 = vadd.f32 %v404_v45, %v337_v48 }
  0xe6   : > { %v1074_v50 = vpop.f32.mrf.mxu0 }
  0xe8   : > { %v340_v51 = vpop.f32.mrf.mxu0 }
  0xea   : > { %v1075_v52 = vpop.f32.mrf.mxu0 }
  0xf4   : > { %v485_v54 = vpop.f32.mrf.mxu0 }
  0xf5   : > { %v491_v56 = vadd.f32 %v485_v54, %v405_v53 }
  0xf6   : > { %v1098_v57 = vpop.f32.mrf.mxu0 }
  0xf7   : > { %v499_v58 = vadd.f32 %v958_v55, %v491_v56 }
  0xf8   : > { %v488_v59 = vpop.f32.mrf.mxu0 }
  0xf9   : > { %v500_v60 = vmax.f32 %v499_v58, 0.0 }
  0xfa   : > { %v1099_v61 = vpop.f32.mrf.mxu0 }
  0xfb   : > { %v1021_v62 = vpack.c.bf16 %v500_v60, %v500_v60 }
  0xfd   : > { %v507_v63 = vshrl.u32 %v1021_v62, 16  ;;  %v510_v2 = vshll.u32 %v1021_v62, 16 }
  0xff   : > { %v509_v0 = vrot.slane %v507_v63, 7 }
 0x101   : > { %v512_v4 = vor.u32 %v510_v2, %v509_v0 }
 0x103   : > { %v517_v5 = vsel %vm515_vm6, %v512_v4, %v516_v3 }
 0x104   : > { %518 = vst [vmem:[#allocation3] sm:$0x7] %v517_v5 }
 0x10b   : > { %v519_v6 = vld [vmem:[#allocation3] sm:$0x3] }
 0x10c   : > { %1137 = vmatmul.mubr.bf16.vlgmr.msra.gmra.mxu0 %v519_v6  ;;  %v1201_v7 = vld [vmem:[#allocation3] ss:$0 sps:$4 sm:$0x77]  }
 0x10d   : > { %v560_v8 = vshll.u32 %v1201_v7, 16  ;;  %v558_v9 = vshrl.u32 %v1201_v7, 16  ;;  %v1210_v20 = vld [vmem:[#allocation3] ss:$0 sps:$4 sm:$0x66]  }
 0x10e   : > { %v762_v21 = vrot.slane %v1210_v20, 1 }
 0x10f   : > { %v562_v10 = vrot.slane %v560_v8, 1 }
 0x111   : > { %v563_v12 = vor.u32 %v562_v10, %v558_v9 }
 0x113   : > { %1117 = vmatmul.mubr.bf16.vlgmr.msra.gmra.mxu1 %v563_v12 }
 0x114   : > { %1141 = vmatpush3.bf16.msra.mxu1 %v1202_v11  ;;  %1156 = vmatprep.mubr.msk.bf16.mxu1 %vm1220_vm0, %v1219_v1 }
 0x115   : > { %1142 = vmatprep.subr.bf16.mxu1 %v1219_v1 }
 0x118   : > { %1143 = vmatpush3.bf16.msra.mxu1 %v1203_v13 }
 0x119   : > { %1144 = vmatprep.subr.bf16.mxu1 %v1219_v1 }
 0x11c   : > { %1145 = vmatpush3.bf16.msra.mxu1 %v1204_v14 }
 0x11d   : > { %1146 = vmatprep.subr.bf16.mxu1 %v1219_v1 }
 0x120   : > { %1147 = vmatpush3.bf16.msra.mxu1 %v1205_v15 }
 0x121   : > { %1148 = vmatprep.subr.bf16.mxu1 %v1219_v1 }
 0x124   : > { %1149 = vmatpush3.bf16.msra.mxu1 %v1206_v16 }
 0x125   : > { %1150 = vmatprep.subr.bf16.mxu1 %v1219_v1 }
 0x128   : > { %1151 = vmatpush3.bf16.msra.mxu1 %v1207_v17 }
 0x129   : > { %1152 = vmatprep.subr.bf16.mxu1 %v1219_v1 }
 0x12c   : > { %1153 = vmatpush3.bf16.msra.mxu1 %v1208_v18 }
 0x12d   : > { %1154 = vmatprep.subr.bf16.mxu1 %v1219_v1 }
 0x130   : > { %1155 = vmatpush3.bf16.msra.mxu1 %v1209_v19 }
 0x133   : > { %1157 = vmatmul.mubr.bf16.vlgmr.msra.gmra.mxu1 %v762_v21 }
 0x1cc   : > { %v735_v22 = vpop.f32.mrf.mxu0 }
 0x1ce   : > { %v1138_v23 = vpop.f32.mrf.mxu0 }
 0x1d0   : > { %v738_v24 = vpop.f32.mrf.mxu0 }
 0x1d2   : > { %v1139_v25 = vpop.f32.mrf.mxu0 }
 0x1d3   : > { %v647_v26 = vpop.f32.mrf.mxu1 }
 0x1d4   : > { %v736_v30 = vadd.f32 %v735_v22, %v647_v26 }
 0x1d5   : > { %v1118_v27 = vpop.f32.mrf.mxu1 }
 0x1d7   : > { %v650_v28 = vpop.f32.mrf.mxu1 }
 0x1d9   : > { %v1119_v29 = vpop.f32.mrf.mxu1 }
 0x1f3   : > { %v846_v31 = vpop.f32.mrf.mxu1 }
 0x1f4   : > { %v852_v1 = vadd.f32 %v846_v31, %v736_v30 }
 0x1f5   : > { %v1158_v33 = vpop.f32.mrf.mxu1 }
 0x1f6   : > { %v860_v34 = vadd.f32 %v1018_v32, %v852_v1 }
 0x1f7   : > { %v849_v35 = vpop.f32.mrf.mxu1 }
 0x1f8   : > { %v861_v36 = vmax.f32 %v860_v34, 0.0 }
 0x1f9   : > { %v1159_v37 = vpop.f32.mrf.mxu1 }
 0x1fa   : > { %v862_v38 = vpack.c.bf16 %v861_v36, %v861_v36 }
 0x1fc   : > { %863 = vst [vmem:[%s219_s11] sm:$0x3] %v862_v38 }
 0x1fd PF: > { %s15_s18 = sadd.s32 1, %s1217_s18  }
 0x1fe   : > { %p12_p4 = scmp.ge.s32.totalorder %s15_s18, 4  }
 0x200   :  { %14 = sbr.rel (!%p12_p4) target bundleno = 1 (0x1), region = 74 }

// kernel: forward.5
= control target key start
LH: loop header
LB: loop body
LE: loop exit
PB: predicated region body
PF: predicated region fallthrough
CT: control target
= control target key end

     0   :  { %s1759_s27 = smov 0   ;;  %s2047_s0 = inlined_call_operand.vmem [shape: bf16[2,16,64], index: 0, kind: input, shape index: {}]   ;;  %s2048_s1 = inlined_call_operand.vmem [shape: bf16[3,64,128], index: 1, kind: input, shape index: {}]   ;;  %s2049_s2 = inlined_call_operand.vmem [shape: f32[1,128], index: 2, kind: input, shape index: {}]   ;;  %s2050_s3 = inlined_call_operand.vmem [shape: bf16[3,128,128], index: 3, kind: input, shape index: {}]   ;;  %s2051_s4 = inlined_call_operand.vmem [shape: f32[1,128], index: 4, kind: input, shape index: {}]   ;;  %s2052_s5 = inlined_call_operand.vmem [shape: f32[8,15], index: 5, kind: input, shape index: {}]   ;;  %s2053_s6 = inlined_call_operand.vmem [shape: f32[120,64], index: 6, kind: input, shape index: {}]   ;;  %s2054_s7 = inlined_call_operand.vmem [shape: bf16[2,16,128], index: 7, kind: output, shape index: {0}]   ;;  %s2055_s8 = inlined_call_operand.vmem [shape: bf16[2,8,64], index: 8, kind: output, shape index: {1}]  }
   0x1 LB: > { %s1322_s28 = sadd.s32 4294967295, %s1708_s27   ;;  %p1326_p0 = scmp.ge.s32.totalorder %s1708_s27, 1  ;;  %s1708_s27 = sphi %s1759_s27, %s19_s27  }
   0x2   : > { %p265_p1 = scmp.lt.s32.totalorder %s1708_s27, 3 }
   0x4   : > { %p266_p2 = pnand %p1326_p0, %p265_p1 }
   0x5   : > { %p303_p3 = scmp.lt.s32.totalorder (!%p266_p2), %s1322_s28, 1  ;;  %s1713_s25 = smov (!%p266_p2), 120  }
   0x6   : > { %269 = sbr.rel (%p266_p2) target bundleno = 1038 (0x40e), region = 48 }
   0xb   : > { %v1660_v0 = vld [vmem:[%s2048_s1 + $0x38] sm:$0xff]   ;;  %v1710_v1 = vmov 0.0   ;;  %v1662_v3 = vld [vmem:[%s2048_s1 + $0x30] sm:$0xff]   ;;  %vm1711_vm0 = vmmov 0   ;;  %vm318_vm1 = vcmask 519168   ;;  %s2059_s28 = smov (!%p303_p3, %s1322_s28), 1 }
   0xc   : > { %1512 = vmatprep.subr.bf16.mxu0 %v1710_v1  ;;  %1524 = vmatprep.subr.bf16.mxu1 %v1710_v1  ;;  %v1661_v2 = vld [vmem:[%s2048_s1 + $0x18] sm:$0xff]   ;;  %v1663_v4 = vld [vmem:[%s2048_s1 + $0x10] sm:$0xff]   ;;  %v1664_v5 = vld [vmem:[%s2048_s1 + $0x28] sm:$0xff]   ;;  %s1436_s17 = sshll.u32 %s2059_s28, 3  ;;  %v1712_v6 = vmov 0   ;;  %vm321_vm2 = vcmask 516096  }
   0xd   : > { %1513 = vmatpush3.bf16.msra.mxu0 %v1660_v0  ;;  %1520 = vmatprep.mubr.msk.bf16.mxu0 %vm1711_vm0, %v1710_v1  ;;  %319 = vst.msk [vmem:[#allocation2] sm:$0xf] %vm318_vm1, %v1712_v6  ;;  %320 = vst.msk [vmem:[#allocation2 + $0x4] sm:$0xf] %vm318_vm1, %v1712_v6  ;;  %v1665_v7 = vld [vmem:[%s2048_s1 + $0x8] sm:$0xff]   ;;  %s307_s22 = scalar_lea.vmem %s2047_s0, %s1436_s17  ;;  %v1666_v13 = vld [vmem:[%s2048_s1 + $0x20] sm:$0xff]   ;;  %s312_s12 = scalar_lea.vmem %s2054_s7, %s1436_s17 }
   0xe   : > { %1525 = vmatpush3.bf16.msra.mxu1 %v1661_v2  ;;  %1514 = vmatprep.subr.bf16.mxu0 %v1710_v1  ;;  %635 = vst [vmem:[#allocation3] sm:$0xf] %v1712_v6  ;;  %636 = vst [vmem:[#allocation3 + $0x4] sm:$0xf] %v1712_v6  ;;  %v323_v8 = vld [vmem:[%s307_s22] sm:$0xf] }
   0xf   : > { %1526 = vmatprep.subr.bf16.mxu1 %v1710_v1  ;;  %1532 = vmatprep.mubr.msk.bf16.mxu1 %vm1711_vm0, %v1710_v1  ;;  %637 = vst [vmem:[#allocation3 + $0x8] sm:$0x1] %v1712_v6  ;;  %322 = vst.msk [vmem:[#allocation2 + $0x8] sm:$0x1] %vm321_vm2, %v1712_v6  ;;  %v324_v9 = vld [vmem:[%s307_s22 + $0x4] sm:$0xf] }
  0x10   : > { %vm325_vm3 = vsmask.f32 256  ;;  %vm326_vm4 = vsmask.f32 4368  ;;  %v329_v10 = vshrl.u32 %v323_v8, 16  ;;  %v332_v11 = vshll.u32 %v323_v8, 16 }
  0x11   : > { %1515 = vmatpush3.bf16.msra.mxu0 %v1662_v3  ;;  %v337_v12 = vshrl.u32 %v324_v9, 16  ;;  %v1667_v14 = vld [vmem:[%s2048_s1] sm:$0xff]   ;;  %v340_v15 = vshll.u32 %v324_v9, 16  ;;  %vm349_vm5 = vsmask.f32 7938  ;;  %vm1814_vm6 = vmor %vm325_vm3, %vm326_vm4  ;;  %vm425_vm9 = vcmask 523264  }
  0x12   : > { %1527 = vmatpush3.bf16.msra.mxu1 %v1663_v4  ;;  %1516 = vmatprep.subr.bf16.mxu0 %v1710_v1  ;;  %v331_v17 = vrot.slane %v329_v10, 7  ;;  %vm350_vm7 = vmand %vm318_vm1, %vm349_vm5  ;;  %vm388_vm10 = vsmask.f32 7424  ;;  %v1670_v37 = vld [vmem:[%s2048_s1 + $0x58] sm:$0xff]   ;;  %v1671_v40 = vld [vmem:[%s2048_s1 + $0x50] sm:$0xff]   ;;  %vm550_vm11 = vcmask 1046528  }
  0x13   : > { %1528 = vmatprep.subr.bf16.mxu1 %v1710_v1  ;;  %v339_v18 = vrot.slane %v337_v12, 7  ;;  %vm356_vm8 = vmand %vm321_vm2, %vm325_vm3  ;;  %v1672_v42 = vld [vmem:[%s2048_s1 + $0x48] sm:$0xff]   ;;  %v1673_v44 = vld [vmem:[%s2048_s1 + $0x40] sm:$0xff]   ;;  %vm664_vm12 = vcmask 1043456   ;;  %vm670_vm14 = vcmask 1040384   ;;  %vm1160_vm2 = vcmask 982016  }
  0x14   : > { %v334_v19 = vor.u32 %v332_v11, %v331_v17  ;;  %v335_v20 = vrot.slane %v331_v17, 4  ;;  %v351_v23 = vld [vmem:[#allocation2] sm:$0xf]  ;;  %v1675_v48 = vld [vmem:[%s2050_s3 + $0x38] sm:$0xff]   ;;  %v1676_v49 = vld [vmem:[%s2050_s3 + $0x30] sm:$0xff]   ;;  %s1331_s26 = sshll.u32 %s2059_s28, 2 }
  0x15   : > { %1517 = vmatpush3.bf16.msra.mxu0 %v1664_v5  ;;  %v342_v21 = vor.u32 %v340_v15, %v339_v18  ;;  %v344_v22 = vrot.slane %v339_v18, 4  ;;  %v1677_v50 = vld [vmem:[%s2050_s3 + $0x78] sm:$0xff]   ;;  %v1678_v51 = vld [vmem:[%s2050_s3 + $0x28] sm:$0xff]   ;;  %v1679_v52 = vld [vmem:[%s2050_s3 + $0x70] sm:$0xff]   ;;  %s316_s9 = scalar_lea.vmem %s2055_s8, %s1331_s26 }
  0x16   : > { %1529 = vmatpush3.bf16.msra.mxu1 %v1665_v7  ;;  %1518 = vmatprep.subr.bf16.mxu0 %v1710_v1  ;;  %v352_v25 = vsel %vm350_vm7, %v334_v19, %v351_v23  ;;  %v357_v26 = vld [vmem:[#allocation2 + $0x8] sm:$0x1]  ;;  %v1680_v53 = vld [vmem:[%s2050_s3 + $0x20] sm:$0xff]   ;;  %v1682_v55 = vld [vmem:[%s2050_s3 + $0x18] sm:$0xff]  }
  0x17   : > { %1530 = vmatprep.subr.bf16.mxu1 %v1710_v1  ;;  %v343_v24 = vsel %vm1814_vm6, %v335_v20, %v342_v21  ;;  %353 = vst [vmem:[#allocation2] sm:$0xf] %v352_v25  ;;  %v358_v27 = vsel %vm356_vm8, %v344_v22, %v357_v26  ;;  %v1681_v54 = vld [vmem:[%s2050_s3 + $0x68] sm:$0xff]   ;;  %v1683_v56 = vld [vmem:[%s2050_s3 + $0x60] sm:$0xff]   ;;  %v1684_v57 = vld [vmem:[%s2050_s3 + $0x10] sm:$0xff]  }
  0x18   : > { %354 = vst.msk [vmem:[#allocation2 + $0x4] sm:$0xf] %vm318_vm1, %v343_v24  ;;  %359 = vst [vmem:[#allocation2 + $0x8] sm:$0x1] %v358_v27  ;;  %v1685_v58 = vld [vmem:[%s2050_s3 + $0x58] sm:$0xff]   ;;  %v1686_v59 = vld [vmem:[%s2050_s3 + $0x8] sm:$0xff]  }
  0x19   : > { %1519 = vmatpush3.bf16.msra.mxu0 %v1666_v13  ;;  %v1687_v60 = vld [vmem:[%s2050_s3 + $0x50] sm:$0xff]   ;;  %v1688_v61 = vld [vmem:[%s2050_s3] sm:$0xff]   ;;  %v1689_v62 = vld [vmem:[%s2050_s3 + $0x48] sm:$0xff]  }
  0x1a   : > { %1531 = vmatpush3.bf16.msra.mxu1 %v1667_v14  ;;  %1536 = vmatprep.subr.bf16.mxu0 %v1710_v1  ;;  %v1691_v63 = vld [vmem:[%s2050_s3 + $0x40] sm:$0xff]   ;;  %vm665_vm13 = vmand %vm664_vm12, %vm349_vm5  ;;  %v1693_v16 = vld [vmem:[%s2050_s3 + $0xb8] sm:$0xff]  }
  0x1b   : > { %1548 = vmatprep.subr.bf16.mxu1 %v1710_v1  ;;  %v1366_v11 = vld [vmem:[%s2049_s2] ss:$0 sm:$0xff]  ;;  %vm671_vm15 = vmand %vm670_vm14, %vm325_vm3 }
  0x1e   : > { %v360_v28 = vld [vmem:[#allocation2] sm:$0xf] }
  0x1f   : > { %v361_v29 = vld [vmem:[#allocation2 + $0x4] sm:$0xf]  ;;  %v1669_v31 = vld [vmem:[#allocation2 + $0x8] ss:$0 sps:$4 sm:$0x11]  }
  0x20   : > { %v1340_v30 = vcombine.low %v360_v28, %v361_v29  ;;  %v397_v34 = vshll.u32 %v1669_v31, 16  ;;  %v537_v41 = vld [vmem:[#allocation2] sm:$0xe]  ;;  %v552_v46 = vrot.slane %v1669_v31, 1  ;;  %v666_v28 = vld [vmem:[#allocation3] sm:$0xf] }
  0x21   : > { %v1360_v43 = vcombine.low %v537_v41, %v361_v29 }
  0x22   : > { %v390_v32 = vshrl.u32 %v1340_v30, 16  ;;  %v392_v33 = vshll.u32 %v1340_v30, 16  ;;  %1533 = vmatmul.mubr.msk.bf16.vlgmr.msra.gmra.mxu1 %vm425_vm9, %v1340_v30  ;;  %v399_v36 = vrot.slane %v397_v34, 1  ;;  %v672_v34 = vld [vmem:[#allocation3 + $0x8] sm:$0x1] }
  0x23   : > { %1564 = vmatprep.mubr.msk.bf16.mxu1 %vm1711_vm0, %v1710_v1  ;;  %v551_v45 = vrot.slane %v1360_v43, 1  ;;  %1549 = vmatpush3.bf16.msra.mxu1 %v1677_v50 }
  0x24   : > { %v394_v35 = vrot.slane %v392_v33, 1  ;;  %1550 = vmatprep.subr.bf16.mxu1 %v1710_v1 }
  0x25   : > { %v553_v47 = vsel %vm550_vm11, %v551_v45, %v552_v46 }
  0x26   : > { %v395_v38 = vor.u32 %v394_v35, %v390_v32 }
  0x27   : > { %1551 = vmatpush3.bf16.msra.mxu1 %v1679_v52  ;;  %v1695_v52 = vld [vmem:[%s2050_s3 + $0xa8] sm:$0xff]  }
  0x28   : > { %v400_v39 = vsel %vm388_vm10, %v395_v38, %v399_v36  ;;  %1552 = vmatprep.subr.bf16.mxu1 %v1710_v1 }
  0x29   : > { %1521 = vmatmul.mubr.msk.bf16.vlgmr.msra.gmra.mxu0 %vm425_vm9, %v400_v39 }
  0x2a   : > { %1537 = vmatpush3.bf16.msra.mxu0 %v1670_v37  ;;  %1544 = vmatprep.mubr.msk.bf16.mxu0 %vm1711_vm0, %v1710_v1 }
  0x2b   : > { %1538 = vmatprep.subr.bf16.mxu0 %v1710_v1  ;;  %1553 = vmatpush3.bf16.msra.mxu1 %v1681_v54  ;;  %v1697_v54 = vld [vmem:[%s2050_s3 + $0x98] sm:$0xff]  }
  0x2c   : > { %1554 = vmatprep.subr.bf16.mxu1 %v1710_v1 }
  0x2e   : > { %1539 = vmatpush3.bf16.msra.mxu0 %v1671_v40 }
  0x2f   : > { %1540 = vmatprep.subr.bf16.mxu0 %v1710_v1  ;;  %1555 = vmatpush3.bf16.msra.mxu1 %v1683_v56  ;;  %v1699_v56 = vld [vmem:[%s2050_s3 + $0x88] sm:$0xff]  }
  0x30   : > { %1556 = vmatprep.subr.bf16.mxu1 %v1710_v1 }
  0x32   : > { %1541 = vmatpush3.bf16.msra.mxu0 %v1672_v42 }
  0x33   : > { %1542 = vmatprep.subr.bf16.mxu0 %v1710_v1  ;;  %1557 = vmatpush3.bf16.msra.mxu1 %v1685_v58 }
  0x34   : > { %1558 = vmatprep.subr.bf16.mxu1 %v1710_v1 }
  0x36   : > { %1543 = vmatpush3.bf16.msra.mxu0 %v1673_v44 }
  0x37   : > { %1568 = vmatprep.subr.bf16.mxu0 %v1710_v1  ;;  %1559 = vmatpush3.bf16.msra.mxu1 %v1687_v60 }
  0x38   : > { %1560 = vmatprep.subr.bf16.mxu1 %v1710_v1 }
  0x39   : > { %1545 = vmatmul.mubr.msk.bf16.vlgmr.msra.gmra.mxu0 %vm425_vm9, %v553_v47 }
  0x3a   : > { %1584 = vmatprep.mubr.msk.bf16.mxu0 %vm1711_vm0, %v1710_v1  ;;  %1569 = vmatpush3.bf16.msra.mxu0 %v1675_v48 }
  0x3b   : > { %1570 = vmatprep.subr.bf16.mxu0 %v1710_v1  ;;  %1561 = vmatpush3.bf16.msra.mxu1 %v1689_v62 }
  0x3c   : > { %1562 = vmatprep.subr.bf16.mxu1 %v1710_v1 }
  0x3e   : > { %1571 = vmatpush3.bf16.msra.mxu0 %v1676_v49 }
  0x3f   : > { %1572 = vmatprep.subr.bf16.mxu0 %v1710_v1  ;;  %1563 = vmatpush3.bf16.msra.mxu1 %v1691_v63 }
  0x40   : > { %1588 = vmatprep.subr.bf16.mxu1 %v1710_v1 }
  0x42   : > { %1573 = vmatpush3.bf16.msra.mxu0 %v1678_v51  ;;  %v1694_v51 = vld [vmem:[%s2050_s3 + $0xb0] sm:$0xff]  }
  0x43   : > { %1574 = vmatprep.subr.bf16.mxu0 %v1710_v1 }
  0x46   : > { %1575 = vmatpush3.bf16.msra.mxu0 %v1680_v53  ;;  %v1696_v53 = vld [vmem:[%s2050_s3 + $0xa0] sm:$0xff]  }
  0x47   : > { %1576 = vmatprep.subr.bf16.mxu0 %v1710_v1 }
  0x4a   : > { %1577 = vmatpush3.bf16.msra.mxu0 %v1682_v55  ;;  %v1698_v55 = vld [vmem:[%s2050_s3 + $0x90] sm:$0xff]  }
  0x4b   : > { %1578 = vmatprep.subr.bf16.mxu0 %v1710_v1 }
  0x4e   : > { %1579 = vmatpush3.bf16.msra.mxu0 %v1684_v57 }
  0x4f   : > { %1580 = vmatprep.subr.bf16.mxu0 %v1710_v1 }
  0x52   : > { %1581 = vmatpush3.bf16.msra.mxu0 %v1686_v59  ;;  %v1700_v59 = vld [vmem:[%s2050_s3 + $0x80] sm:$0xff]  }
  0x53   : > { %1582 = vmatprep.subr.bf16.mxu0 %v1710_v1 }
  0x56   : > { %1583 = vmatpush3.bf16.msra.mxu0 %v1688_v61 }
  0x57   : > { %1615 = vmatprep.subr.mxu0 %v1710_v1 }
  0xe2   : > { %v530_v0 = vpop.f32.mrf.mxu1 }
  0xe4   : > { %v1534_v2 = vpop.f32.mrf.mxu1 }
  0xe6   : > { %v533_v3 = vpop.f32.mrf.mxu1 }
  0xe8   : > { %v1535_v4 = vpop.f32.mrf.mxu1 }
  0xe9   : > { %v463_v5 = vpop.f32.mrf.mxu0 }
  0xea   : > { %v531_v9 = vadd.f32 %v530_v0, %v463_v5 }
  0xeb   : > { %v1522_v6 = vpop.f32.mrf.mxu0 }
  0xed   : > { %v466_v7 = vpop.f32.mrf.mxu0 }
  0xee   : > { %v534_v14 = vadd.f32 %v533_v3, %v466_v7 }
  0xef   : > { %v1523_v8 = vpop.f32.mrf.mxu0 }
  0xf9   : > { %v615_v10 = vpop.f32.mrf.mxu0 }
  0xfa   : > { %v622_v12 = vadd.f32 %v615_v10, %v531_v9 }
  0xfb   : > { %v1546_v13 = vpop.f32.mrf.mxu0 }
  0xfc   : > { %v631_v15 = vadd.f32 %v1366_v11, %v622_v12 }
  0xfd   : > { %v618_v17 = vpop.f32.mrf.mxu0 }
  0xfe   : > { %v633_v18 = vmax.f32 %v631_v15, 0.0  ;;  %v623_v19 = vadd.f32 %v618_v17, %v534_v14 }
  0xff   : > { %v1547_v20 = vpop.f32.mrf.mxu0 }
 0x100   : > { %v1438_v21 = vpack.c.bf16 %v633_v18, %v633_v18  ;;  %v632_v22 = vadd.f32 %v1366_v11, %v623_v19  ;;  %v1428_v11 = vld [vmem:[%s2051_s4] ss:$0 sm:$0xff] }
 0x102   : > { %v645_v23 = vshrl.u32 %v1438_v21, 16  ;;  %v634_v24 = vmax.f32 %v632_v22, 0.0  ;;  %v648_v26 = vshll.u32 %v1438_v21, 16 }
 0x104   : > { %v647_v25 = vrot.slane %v645_v23, 7  ;;  %v1439_v27 = vpack.c.bf16 %v634_v24, %v634_v24 }
 0x106   : > { %v650_v29 = vor.u32 %v648_v26, %v647_v25  ;;  %v653_v30 = vshrl.u32 %v1439_v27, 16  ;;  %v656_v33 = vshll.u32 %v1439_v27, 16  ;;  %v651_v35 = vrot.slane %v647_v25, 4 }
 0x108   : > { %v667_v31 = vsel %vm665_vm13, %v650_v29, %v666_v28  ;;  %v655_v32 = vrot.slane %v653_v30, 7  ;;  %v1062_v30 = vld [vmem:[%s2052_s5] sm:$0xff] }
 0x109   : > { %668 = vst [vmem:[#allocation3] sm:$0xf] %v667_v31  ;;  %v1159_v31 = vld [vmem:[%s2053_s6 + $0x70] sm:$0xff] }
 0x10a   : > { %v658_v36 = vor.u32 %v656_v33, %v655_v32  ;;  %v660_v37 = vrot.slane %v655_v32, 4  ;;  %v1158_v32 = vld [vmem:[%s2053_s6 + $0x68] sm:$0xff]  ;;  %v1157_v33 = vld [vmem:[%s2053_s6 + $0x60] sm:$0xff] }
 0x10c   : > { %v659_v38 = vsel %vm1814_vm6, %v651_v35, %v658_v36  ;;  %v673_v39 = vsel %vm671_vm15, %v660_v37, %v672_v34  ;;  %v1156_v34 = vld [vmem:[%s2053_s6 + $0x58] sm:$0xff]  ;;  %v1155_v35 = vld [vmem:[%s2053_s6 + $0x50] sm:$0xff]  ;;  %v1154_v36 = vld [vmem:[%s2053_s6 + $0x48] sm:$0xff] }
 0x10d   : > { %669 = vst [vmem:[#allocation3 + $0x4] sm:$0xf] %v659_v38  ;;  %674 = vst [vmem:[#allocation3 + $0x8] sm:$0x1] %v673_v39  ;;  %v1153_v37 = vld [vmem:[%s2053_s6 + $0x40] sm:$0xff]  ;;  %v1152_v38 = vld [vmem:[%s2053_s6 + $0x38] sm:$0xff] }
 0x10e   : > { %v1151_v39 = vld [vmem:[%s2053_s6 + $0x30] sm:$0xff] }
 0x110   : > { %v675_v40 = vld [vmem:[#allocation3] sm:$0xf] }
 0x111   : > { %v911_v57 = vld [vmem:[#allocation3] sm:$0xe] }
 0x114   : > { %v676_v41 = vld [vmem:[#allocation3 + $0x4] sm:$0xf]  ;;  %v1692_v43 = vld [vmem:[#allocation3 + $0x8] ss:$0 sps:$4 sm:$0x11]  }
 0x115   : > { %v1385_v42 = vcombine.low %v675_v40, %v676_v41  ;;  %v727_v45 = vshll.u32 %v1692_v43, 16  ;;  %v1419_v58 = vcombine.low %v911_v57, %v676_v41  ;;  %v933_v61 = vrot.slane %v1692_v43, 1  ;;  %v1150_v40 = vld [vmem:[%s2053_s6 + $0x28] sm:$0xff]  ;;  %v1149_v41 = vld [vmem:[%s2053_s6 + $0x20] sm:$0xff]  ;;  %v1147_v43 = vld [vmem:[%s2053_s6 + $0x10] sm:$0xff] }
 0x117   : > { %1585 = vmatmul.mubr.bf16.vlgmr.msra.gmra.mxu0 %v1385_v42  ;;  %v722_v44 = vshll.u32 %v1385_v42, 16  ;;  %v720_v46 = vshrl.u32 %v1385_v42, 16  ;;  %v729_v49 = vrot.slane %v727_v45, 1  ;;  %v932_v60 = vrot.slane %v1419_v58, 1  ;;  %v1148_v42 = vld [vmem:[%s2053_s6 + $0x18] sm:$0xff]  ;;  %v1145_v45 = vld [vmem:[%s2053_s6] sm:$0xff] }
 0x118   : > { %1645 = vmatprep.mubr.msk.f32.mxu0 %vm1711_vm0, %v1710_v1  ;;  %1616 = vmatpush3.msra.mxu0 %v1159_v31 }
 0x119   : > { %v724_v47 = vrot.slane %v722_v44, 1  ;;  %v934_v62 = vsel %vm550_vm11, %v932_v60, %v933_v61  ;;  %1617 = vmatprep.subr.mxu0 %v1710_v1  ;;  %v1146_v44 = vld [vmem:[%s2053_s6 + $0x8] sm:$0xff] }
 0x11a   : > { %1618 = vmatpush3.msra.mxu0 %v1158_v32 }
 0x11b   : > { %v725_v48 = vor.u32 %v724_v47, %v720_v46  ;;  %1619 = vmatprep.subr.mxu0 %v1710_v1 }
 0x11c   : > { %1620 = vmatpush3.msra.mxu0 %v1157_v33 }
 0x11d   : > { %v730_v50 = vsel %vm388_vm10, %v725_v48, %v729_v49  ;;  %1621 = vmatprep.subr.mxu0 %v1710_v1 }
 0x11e   : > { %1565 = vmatmul.mubr.bf16.vlgmr.msra.gmra.mxu1 %v730_v50  ;;  %1622 = vmatpush3.msra.mxu0 %v1156_v34 }
 0x11f   : > { %1589 = vmatpush3.bf16.msra.mxu1 %v1693_v16  ;;  %1604 = vmatprep.mubr.msk.bf16.mxu1 %vm1711_vm0, %v1710_v1 }
 0x120   : > { %1590 = vmatprep.subr.bf16.mxu1 %v1710_v1  ;;  %1623 = vmatprep.subr.mxu0 %v1710_v1 }
 0x121   : > { %1624 = vmatpush3.msra.mxu0 %v1155_v35 }
 0x122   : > { %1625 = vmatprep.subr.mxu0 %v1710_v1 }
 0x123   : > { %1591 = vmatpush3.bf16.msra.mxu1 %v1694_v51  ;;  %1626 = vmatpush3.msra.mxu0 %v1154_v36 }
 0x124   : > { %1592 = vmatprep.subr.bf16.mxu1 %v1710_v1  ;;  %1627 = vmatprep.subr.mxu0 %v1710_v1 }
 0x125   : > { %1628 = vmatpush3.msra.mxu0 %v1153_v37 }
 0x126   : > { %1629 = vmatprep.subr.mxu0 %v1710_v1 }
 0x127   : > { %1593 = vmatpush3.bf16.msra.mxu1 %v1695_v52  ;;  %1630 = vmatpush3.msra.mxu0 %v1152_v38 }
 0x128   : > { %1594 = vmatprep.subr.bf16.mxu1 %v1710_v1  ;;  %1631 = vmatprep.subr.mxu0 %v1710_v1 }
 0x129   : > { %1632 = vmatpush3.msra.mxu0 %v1151_v39 }
 0x12a   : > { %1633 = vmatprep.subr.mxu0 %v1710_v1 }
 0x12b   : > { %1595 = vmatpush3.bf16.msra.mxu1 %v1696_v53  ;;  %1634 = vmatpush3.msra.mxu0 %v1150_v40 }
 0x12c   : > { %1596 = vmatprep.subr.bf16.mxu1 %v1710_v1  ;;  %1635 = vmatprep.subr.mxu0 %v1710_v1 }
 0x12d   : > { %1636 = vmatpush3.msra.mxu0 %v1149_v41 }
 0x12e   : > { %1637 = vmatprep.subr.mxu0 %v1710_v1 }
 0x12f   : > { %1597 = vmatpush3.bf16.msra.mxu1 %v1697_v54  ;;  %1638 = vmatpush3.msra.mxu0 %v1148_v42 }
 0x130   : > { %1598 = vmatprep.subr.bf16.mxu1 %v1710_v1  ;;  %1639 = vmatprep.subr.mxu0 %v1710_v1 }
 0x131   : > { %1640 = vmatpush3.msra.mxu0 %v1147_v43 }
 0x132   : > { %1641 = vmatprep.subr.mxu0 %v1710_v1 }
 0x133   : > { %1599 = vmatpush3.bf16.msra.mxu1 %v1698_v55  ;;  %1642 = vmatpush3.msra.mxu0 %v1146_v44 }
 0x134   : > { %1600 = vmatprep.subr.bf16.mxu1 %v1710_v1  ;;  %1643 = vmatprep.subr.mxu0 %v1710_v1 }
 0x135   : > { %1644 = vmatpush3.msra.mxu0 %v1145_v45 }
 0x137   : > { %1601 = vmatpush3.bf16.msra.mxu1 %v1699_v56 }
 0x138   : > { %1602 = vmatprep.subr.bf16.mxu1 %v1710_v1 }
 0x13b   : > { %1603 = vmatpush3.bf16.msra.mxu1 %v1700_v59 }
 0x13c   : > { %1608 = vmatprep.subr.mxu1 %v1710_v1 }
 0x13e   : > { %1605 = vmatmul.mubr.bf16.vlgmr.msra.gmra.mxu1 %v934_v62 }
 0x13f   : > { %1612 = vmatprep.mubr.msk.f32.mxu1 %vm1711_vm0, %v1710_v1  ;;  %vm1063_vm0 = vcmask 121856  }
 0x1d7   : > { %v904_v63 = vpop.f32.mrf.mxu0 }
 0x1d9   : > { %v1586_v0 = vpop.f32.mrf.mxu0 }
 0x1db   : > { %v907_v2 = vpop.f32.mrf.mxu0 }
 0x1dd   : > { %v1587_v3 = vpop.f32.mrf.mxu0 }
 0x1de   : > { %v814_v4 = vpop.f32.mrf.mxu1 }
 0x1df   : > { %v905_v8 = vadd.f32 %v904_v63, %v814_v4 }
 0x1e0   : > { %v1566_v5 = vpop.f32.mrf.mxu1 }
 0x1e2   : > { %v817_v6 = vpop.f32.mrf.mxu1 }
 0x1e3   : > { %v908_v13 = vadd.f32 %v907_v2, %v817_v6 }
 0x1e4   : > { %v1567_v7 = vpop.f32.mrf.mxu1 }
 0x1fe   : > { %v1018_v9 = vpop.f32.mrf.mxu1 }
 0x1ff   : > { %v1025_v10 = vadd.f32 %v1018_v9, %v905_v8 }
 0x200   : > { %v1606_v12 = vpop.f32.mrf.mxu1 }
 0x201   : > { %v1034_v15 = vadd.f32 %v1428_v11, %v1025_v10 }
 0x202   : > { %v1021_v14 = vpop.f32.mrf.mxu1 }
 0x203   : > { %v1026_v17 = vadd.f32 %v1021_v14, %v908_v13  ;;  %v1036_v20 = vmax.f32 %v1034_v15, 0.0 }
 0x204   : > { %v1607_v18 = vpop.f32.mrf.mxu1 }
 0x205   : > { %v1035_v19 = vadd.f32 %v1428_v11, %v1026_v17 }
 0x207   : > { %v1037_v21 = vmax.f32 %v1035_v19, 0.0 }
 0x209   : > { %v1445_v22 = vpack.c.bf16 %v1037_v21, %v1036_v20 }
 0x20b   : > { %1446 = vst [vmem:[%s312_s12] sm:$0xff] %v1445_v22   ;;  %v1450_v23 = vunpack.c.h.bf16 %v1445_v22  ;;  %v1449_v24 = vunpack.c.l.bf16 %v1445_v22 }
 0x20d   : > { %v1056_v25 = vrot.slane %v1450_v23, 1  ;;  %v1055_v26 = vrot.slane %v1449_v24, 1 }
 0x20f   : > { %v1061_v27 = vmax.f32 %v1450_v23, %v1056_v25  ;;  %v1057_v28 = vsel %vm550_vm11, %v1055_v26, %v1056_v25 }
 0x210   : > { %v1060_v29 = vmax.f32 %v1449_v24, %v1057_v28 }
 0x211   : > { %1609 = vmatpush3.msk.msra.mxu1 %vm550_vm11, %v1061_v27 }
 0x212   : > { %1610 = vmatprep.subr.mxu1 %v1710_v1 }
 0x213   : > { %1611 = vmatpush3.msra.mxu1 %v1060_v29 }
 0x214   : > { %1613 = vmatmul.mubr.msk.f32.vlgmr.msra.gmra.mxu1 %vm1063_vm0, %v1062_v30 }
 0x2d4   : > { %v1136_v46 = vpop.f32.mrf.mxu1 }
 0x2d5   : > { %1141 = vrot.lane.b32.xlu0 %v1136_v46, %s1713_s25 }
 0x2d6   : > { %v1614_v47 = vpop.f32.mrf.mxu1 }
 0x347   : > { %v1142_v48 = vpop.permute.xlu0 %1141 }
 0x348   : > { %v1144_v49 = vmax.f32 %v1136_v46, %v1142_v48 }
 0x34a   : > { %1646 = vmatmul.mubr.msk.f32.vlgmr.msra.gmra.mxu0 %vm1160_vm2, %v1144_v49 }
 0x40a   : > { %v1230_v16 = vpop.f32.mrf.mxu0 }
 0x40b   : > { %v1234_v50 = vpack.c.bf16 %v1230_v16, %v1230_v16 }
 0x40c   : > { %v1647_v51 = vpop.f32.mrf.mxu0 }
 0x40d   : > { %1235 = vst.msk [vmem:[%s316_s9] sm:$0xf] %vm318_vm1, %v1234_v50 }
 0x40e PF: > { %s19_s27 = sadd.s32 1, %s1708_s27  }
 0x40f   : > { %p16_p4 = scmp.ge.s32.totalorder %s19_s27, 4  }
 0x411   :  { %18 = sbr.rel (!%p16_p4) target bundleno = 1 (0x1), region = 94 }

// kernel: forward.6
= control target key start
LH: loop header
LB: loop body
LE: loop exit
PB: predicated region body
PF: predicated region fallthrough
CT: control target
= control target key end

     0   :  { %s1643_s27 = smov 0   ;;  %s1908_s0 = inlined_call_operand.vmem [shape: bf16[2,8,64], index: 0, kind: input, shape index: {}]   ;;  %s1909_s1 = inlined_call_operand.vmem [shape: bf16[3,64,128], index: 1, kind: input, shape index: {}]   ;;  %s1910_s2 = inlined_call_operand.vmem [shape: f32[1,128], index: 2, kind: input, shape index: {}]   ;;  %s1911_s3 = inlined_call_operand.vmem [shape: bf16[3,128,128], index: 3, kind: input, shape index: {}]   ;;  %s1912_s4 = inlined_call_operand.vmem [shape: f32[1,128], index: 4, kind: input, shape index: {}]   ;;  %s1913_s5 = inlined_call_operand.vmem [shape: f32[4,7], index: 5, kind: input, shape index: {}]   ;;  %s1914_s6 = inlined_call_operand.vmem [shape: f32[112,64], index: 6, kind: input, shape index: {}]   ;;  %s1915_s7 = inlined_call_operand.vmem [shape: bf16[2,8,128], index: 7, kind: output, shape index: {0}]   ;;  %s1916_s8 = inlined_call_operand.vmem [shape: bf16[2,4,64], index: 8, kind: output, shape index: {1}]  }
   0x1 LB: > { %s1235_s28 = sadd.s32 4294967295, %s1592_s27   ;;  %p1239_p0 = scmp.ge.s32.totalorder %s1592_s27, 1  ;;  %s1592_s27 = sphi %s1643_s27, %s19_s27  }
   0x2   : > { %p264_p1 = scmp.lt.s32.totalorder %s1592_s27, 3 }
   0x4   : > { %p265_p2 = pnand %p1239_p0, %p264_p1 }
   0x5   : > { %p300_p3 = scmp.lt.s32.totalorder (!%p265_p2), %s1235_s28, 1  ;;  %s1597_s23 = smov (!%p265_p2), 112  }
   0x6   : > { %268 = sbr.rel (%p265_p2) target bundleno = 1033 (0x409), region = 48 }
   0xb   : > { %v1546_v0 = vld [vmem:[%s1909_s1 + $0x38] sm:$0xff]   ;;  %v1594_v1 = vmov 0.0   ;;  %v1548_v3 = vld [vmem:[%s1909_s1 + $0x30] sm:$0xff]   ;;  %vm1595_vm0 = vmmov 0   ;;  %vm313_vm1 = vcmask 519168   ;;  %s1918_s28 = smov (!%p300_p3, %s1235_s28), 1 }
   0xc   : > { %1402 = vmatprep.subr.bf16.mxu0 %v1594_v1  ;;  %1414 = vmatprep.subr.bf16.mxu1 %v1594_v1  ;;  %v1547_v2 = vld [vmem:[%s1909_s1 + $0x18] sm:$0xff]   ;;  %v1549_v4 = vld [vmem:[%s1909_s1 + $0x10] sm:$0xff]   ;;  %v1550_v5 = vld [vmem:[%s1909_s1 + $0x28] sm:$0xff]   ;;  %s1240_s17 = sshll.u32 %s1918_s28, 2  ;;  %v1596_v6 = vmov 0   ;;  %vm315_vm2 = vcmask 516096  }
   0xd   : > { %1403 = vmatpush3.bf16.msra.mxu0 %v1546_v0  ;;  %1410 = vmatprep.mubr.msk.bf16.mxu0 %vm1595_vm0, %v1594_v1  ;;  %314 = vst.msk [vmem:[#allocation2] sm:$0xf] %vm313_vm1, %v1596_v6  ;;  %597 = vst [vmem:[#allocation3] sm:$0xf] %v1596_v6  ;;  %v1551_v7 = vld [vmem:[%s1909_s1 + $0x8] sm:$0xff]   ;;  %s303_s22 = scalar_lea.vmem %s1908_s0, %s1240_s17  ;;  %v1552_v8 = vld [vmem:[%s1909_s1 + $0x20] sm:$0xff]   ;;  %s307_s12 = scalar_lea.vmem %s1915_s7, %s1240_s17 }
   0xe   : > { %1415 = vmatpush3.bf16.msra.mxu1 %v1547_v2  ;;  %1404 = vmatprep.subr.bf16.mxu0 %v1594_v1  ;;  %598 = vst [vmem:[#allocation3 + $0x4] sm:$0x1] %v1596_v6  ;;  %316 = vst.msk [vmem:[#allocation2 + $0x4] sm:$0x1] %vm315_vm2, %v1596_v6  ;;  %v317_v9 = vld [vmem:[%s303_s22] sm:$0xf] }
   0xf   : > { %1416 = vmatprep.subr.bf16.mxu1 %v1594_v1  ;;  %1422 = vmatprep.mubr.msk.bf16.mxu1 %vm1595_vm0, %v1594_v1  ;;  %v319_v10 = vshrl.u32 %v317_v9, 16  ;;  %v322_v11 = vshll.u32 %v317_v9, 16  ;;  %vm329_vm3 = vsmask.f32 7938  ;;  %vm335_vm4 = vsmask.f32 256 }
  0x10   : > { %v1553_v12 = vld [vmem:[%s1909_s1] sm:$0xff]   ;;  %vm330_vm5 = vmand %vm313_vm1, %vm329_vm3  ;;  %vm395_vm7 = vcmask 523264   ;;  %v1555_v26 = vld [vmem:[%s1909_s1 + $0x58] sm:$0xff]   ;;  %vm613_vm8 = vcmask 1043456   ;;  %vm618_vm9 = vcmask 1040384   ;;  %vm981_vm12 = vcmask 1046528  }
  0x11   : > { %1405 = vmatpush3.bf16.msra.mxu0 %v1548_v3  ;;  %v321_v13 = vrot.slane %v319_v10, 7  ;;  %vm336_vm6 = vmand %vm315_vm2, %vm335_vm4  ;;  %v1556_v28 = vld [vmem:[%s1909_s1 + $0x50] sm:$0xff]   ;;  %v1557_v29 = vld [vmem:[%s1909_s1 + $0x48] sm:$0xff]   ;;  %vm977_vm13 = vcmask 56320   ;;  %vm1074_vm14 = vcmask 916480   ;;  %s1242_s24 = sshll.u32 %s1918_s28, 1 }
  0x12   : > { %1417 = vmatpush3.bf16.msra.mxu1 %v1549_v4  ;;  %1406 = vmatprep.subr.bf16.mxu0 %v1594_v1  ;;  %v1558_v32 = vld [vmem:[%s1909_s1 + $0x40] sm:$0xff]   ;;  %v1560_v34 = vld [vmem:[%s1911_s3 + $0x38] sm:$0xff]   ;;  %v1561_v35 = vld [vmem:[%s1911_s3 + $0x30] sm:$0xff]   ;;  %s311_s29 = scalar_lea.vmem %s1916_s8, %s1242_s24  ;;  %vm1149_vm15 = vcmask 517120  }
  0x13   : > { %1418 = vmatprep.subr.bf16.mxu1 %v1594_v1  ;;  %v324_v14 = vor.u32 %v322_v11, %v321_v13  ;;  %v325_v15 = vrot.slane %v321_v13, 4  ;;  %v1562_v36 = vld [vmem:[%s1911_s3 + $0x78] sm:$0xff]   ;;  %v1563_v37 = vld [vmem:[%s1911_s3 + $0x28] sm:$0xff]   ;;  %v1564_v38 = vld [vmem:[%s1911_s3 + $0x70] sm:$0xff]  }
  0x14   : > { %v331_v16 = vld [vmem:[#allocation2] sm:$0xf]  ;;  %v1566_v40 = vld [vmem:[%s1911_s3 + $0x68] sm:$0xff]   ;;  %v1567_v41 = vld [vmem:[%s1911_s3 + $0x18] sm:$0xff]  }
  0x15   : > { %1407 = vmatpush3.bf16.msra.mxu0 %v1550_v5  ;;  %v332_v17 = vsel %vm330_vm5, %v324_v14, %v331_v16  ;;  %v337_v18 = vld [vmem:[#allocation2 + $0x4] sm:$0x1]  ;;  %v1569_v43 = vld [vmem:[%s1911_s3 + $0x10] sm:$0xff]   ;;  %v1570_v44 = vld [vmem:[%s1911_s3 + $0x58] sm:$0xff]  }
  0x16   : > { %1419 = vmatpush3.bf16.msra.mxu1 %v1551_v7  ;;  %1408 = vmatprep.subr.bf16.mxu0 %v1594_v1  ;;  %333 = vst [vmem:[#allocation2] sm:$0xf] %v332_v17  ;;  %v338_v19 = vsel %vm336_vm6, %v325_v15, %v337_v18  ;;  %v1565_v39 = vld [vmem:[%s1911_s3 + $0x20] sm:$0xff]   ;;  %v1571_v45 = vld [vmem:[%s1911_s3 + $0x8] sm:$0xff]   ;;  %v1572_v46 = vld [vmem:[%s1911_s3 + $0x50] sm:$0xff]  }
  0x17   : > { %1420 = vmatprep.subr.bf16.mxu1 %v1594_v1  ;;  %339 = vst [vmem:[#allocation2 + $0x4] sm:$0x1] %v338_v19  ;;  %v1568_v42 = vld [vmem:[%s1911_s3 + $0x60] sm:$0xff]   ;;  %v1574_v48 = vld [vmem:[%s1911_s3 + $0x48] sm:$0xff]   ;;  %vm614_vm10 = vmand %vm613_vm8, %vm329_vm3 }
  0x18   : > { %v1573_v47 = vld [vmem:[%s1911_s3] sm:$0xff]   ;;  %vm619_vm11 = vmand %vm618_vm9, %vm335_vm4  ;;  %v620_v9 = vld [vmem:[#allocation3 + $0x4] sm:$0x1] }
  0x19   : > { %1409 = vmatpush3.bf16.msra.mxu0 %v1552_v8  ;;  %v1577_v49 = vld [vmem:[%s1911_s3 + $0x40] sm:$0xff]   ;;  %v615_v8 = vld [vmem:[#allocation3] sm:$0xf] }
  0x1a   : > { %1421 = vmatpush3.bf16.msra.mxu1 %v1553_v12  ;;  %1426 = vmatprep.subr.bf16.mxu0 %v1594_v1  ;;  %v1276_v60 = vld [vmem:[%s1910_s2] ss:$0 sm:$0xff] }
  0x1b   : > { %1438 = vmatprep.subr.bf16.mxu1 %v1594_v1 }
  0x1d   : > { %v340_v20 = vld [vmem:[#allocation2] sm:$0xf] }
  0x1e   : > { %v349_v21 = vld [vmem:[#allocation2 + $0x4] sm:$0x1]  ;;  %1423 = vmatmul.mubr.msk.bf16.vlgmr.msra.gmra.mxu1 %vm395_vm7, %v340_v20  ;;  %v506_v30 = vld [vmem:[#allocation2] sm:$0xe] }
  0x1f   : > { %v1251_v22 = vcombine.low %v340_v20, %v349_v21  ;;  %1454 = vmatprep.mubr.msk.bf16.mxu1 %vm1595_vm0, %v1594_v1  ;;  %v1270_v31 = vcombine.low %v506_v30, %v349_v21  ;;  %1439 = vmatpush3.bf16.msra.mxu1 %v1562_v36  ;;  %v1578_v20 = vld [vmem:[%s1911_s3 + $0xb8] sm:$0xff]  }
  0x20   : > { %1440 = vmatprep.subr.bf16.mxu1 %v1594_v1 }
  0x21   : > { %v365_v23 = vshrl.u32 %v1251_v22, 16  ;;  %v367_v24 = vshll.u32 %v1251_v22, 16  ;;  %v519_v33 = vrot.slane %v1270_v31, 1  ;;  %v1579_v22 = vld [vmem:[%s1911_s3 + $0xb0] sm:$0xff]  }
  0x23   : > { %v369_v25 = vrot.slane %v367_v24, 1  ;;  %1441 = vmatpush3.bf16.msra.mxu1 %v1564_v38  ;;  %v1581_v24 = vld [vmem:[%s1911_s3 + $0xa0] sm:$0xff]  }
  0x24   : > { %1442 = vmatprep.subr.bf16.mxu1 %v1594_v1 }
  0x25   : > { %v370_v27 = vor.u32 %v369_v25, %v365_v23  ;;  %v1580_v23 = vld [vmem:[%s1911_s3 + $0xa8] sm:$0xff]   ;;  %v1582_v25 = vld [vmem:[%s1911_s3 + $0x98] sm:$0xff]  }
  0x27   : > { %1411 = vmatmul.mubr.msk.bf16.vlgmr.msra.gmra.mxu0 %vm395_vm7, %v370_v27  ;;  %1443 = vmatpush3.bf16.msra.mxu1 %v1566_v40  ;;  %v1584_v27 = vld [vmem:[%s1911_s3 + $0x88] sm:$0xff]  }
  0x28   : > { %1427 = vmatpush3.bf16.msra.mxu0 %v1555_v26  ;;  %1434 = vmatprep.mubr.msk.bf16.mxu0 %vm1595_vm0, %v1594_v1  ;;  %v1583_v26 = vld [vmem:[%s1911_s3 + $0x90] sm:$0xff]  }
  0x29   : > { %1428 = vmatprep.subr.bf16.mxu0 %v1594_v1  ;;  %1444 = vmatprep.subr.bf16.mxu1 %v1594_v1 }
  0x2b   : > { %1445 = vmatpush3.bf16.msra.mxu1 %v1568_v42  ;;  %v1336_v42 = vld [vmem:[%s1912_s4] ss:$0 sm:$0xff] }
  0x2c   : > { %1429 = vmatpush3.bf16.msra.mxu0 %v1556_v28  ;;  %1446 = vmatprep.subr.bf16.mxu1 %v1594_v1 }
  0x2d   : > { %1430 = vmatprep.subr.bf16.mxu0 %v1594_v1 }
  0x2f   : > { %1447 = vmatpush3.bf16.msra.mxu1 %v1570_v44 }
  0x30   : > { %1431 = vmatpush3.bf16.msra.mxu0 %v1557_v29  ;;  %1448 = vmatprep.subr.bf16.mxu1 %v1594_v1  ;;  %v1585_v29 = vld [vmem:[%s1911_s3 + $0x80] sm:$0xff]  }
  0x31   : > { %1432 = vmatprep.subr.bf16.mxu0 %v1594_v1 }
  0x33   : > { %1449 = vmatpush3.bf16.msra.mxu1 %v1572_v46 }
  0x34   : > { %1433 = vmatpush3.bf16.msra.mxu0 %v1558_v32  ;;  %1450 = vmatprep.subr.bf16.mxu1 %v1594_v1 }
  0x35   : > { %1458 = vmatprep.subr.bf16.mxu0 %v1594_v1 }
  0x37   : > { %1435 = vmatmul.mubr.msk.bf16.vlgmr.msra.gmra.mxu0 %vm395_vm7, %v519_v33  ;;  %1451 = vmatpush3.bf16.msra.mxu1 %v1574_v48 }
  0x38   : > { %1474 = vmatprep.mubr.msk.bf16.mxu0 %vm1595_vm0, %v1594_v1  ;;  %1459 = vmatpush3.bf16.msra.mxu0 %v1560_v34 }
  0x39   : > { %1460 = vmatprep.subr.bf16.mxu0 %v1594_v1  ;;  %1452 = vmatprep.subr.bf16.mxu1 %v1594_v1 }
  0x3b   : > { %1453 = vmatpush3.bf16.msra.mxu1 %v1577_v49 }
  0x3c   : > { %1461 = vmatpush3.bf16.msra.mxu0 %v1561_v35  ;;  %1478 = vmatprep.subr.bf16.mxu1 %v1594_v1 }
  0x3d   : > { %1462 = vmatprep.subr.bf16.mxu0 %v1594_v1 }
  0x40   : > { %1463 = vmatpush3.bf16.msra.mxu0 %v1563_v37 }
  0x41   : > { %1464 = vmatprep.subr.bf16.mxu0 %v1594_v1 }
  0x44   : > { %1465 = vmatpush3.bf16.msra.mxu0 %v1565_v39 }
  0x45   : > { %1466 = vmatprep.subr.bf16.mxu0 %v1594_v1 }
  0x48   : > { %1467 = vmatpush3.bf16.msra.mxu0 %v1567_v41 }
  0x49   : > { %1468 = vmatprep.subr.bf16.mxu0 %v1594_v1 }
  0x4c   : > { %1469 = vmatpush3.bf16.msra.mxu0 %v1569_v43 }
  0x4d   : > { %1470 = vmatprep.subr.bf16.mxu0 %v1594_v1 }
  0x50   : > { %1471 = vmatpush3.bf16.msra.mxu0 %v1571_v45 }
  0x51   : > { %1472 = vmatprep.subr.bf16.mxu0 %v1594_v1 }
  0x54   : > { %1473 = vmatpush3.bf16.msra.mxu0 %v1573_v47 }
  0x55   : > { %1503 = vmatprep.subr.mxu0 %v1594_v1 }
  0xde   : > { %v500_v50 = vpop.f32.mrf.mxu1 }
  0xe0   : > { %v1424_v51 = vpop.f32.mrf.mxu1 }
  0xe2   : > { %v503_v52 = vpop.f32.mrf.mxu1 }
  0xe4   : > { %v1425_v53 = vpop.f32.mrf.mxu1 }
  0xe7   : > { %v433_v54 = vpop.f32.mrf.mxu0 }
  0xe8   : > { %v501_v58 = vadd.f32 %v500_v50, %v433_v54  ;;  %v976_v54 = vld [vmem:[%s1913_s5] sm:$0xf] }
  0xe9   : > { %v1412_v55 = vpop.f32.mrf.mxu0 }
  0xea   : > { %v1073_v55 = vld [vmem:[%s1914_s6 + $0x68] sm:$0xff] }
  0xeb   : > { %v436_v56 = vpop.f32.mrf.mxu0 }
  0xec   : > { %v1072_v56 = vld [vmem:[%s1914_s6 + $0x60] sm:$0xff] }
  0xed   : > { %v1413_v57 = vpop.f32.mrf.mxu0 }
  0xee   : > { %v1071_v57 = vld [vmem:[%s1914_s6 + $0x58] sm:$0xff] }
  0xf7   : > { %v581_v59 = vpop.f32.mrf.mxu0 }
  0xf8   : > { %v587_v61 = vadd.f32 %v581_v59, %v501_v58  ;;  %v1070_v58 = vld [vmem:[%s1914_s6 + $0x50] sm:$0xff]  ;;  %v1069_v59 = vld [vmem:[%s1914_s6 + $0x48] sm:$0xff] }
  0xf9   : > { %v1436_v62 = vpop.f32.mrf.mxu0 }
  0xfa   : > { %v595_v63 = vadd.f32 %v1276_v60, %v587_v61  ;;  %v1068_v60 = vld [vmem:[%s1914_s6 + $0x40] sm:$0xff]  ;;  %v1067_v61 = vld [vmem:[%s1914_s6 + $0x38] sm:$0xff]  ;;  %v1066_v62 = vld [vmem:[%s1914_s6 + $0x30] sm:$0xff] }
  0xfb   : > { %v584_v0 = vpop.f32.mrf.mxu0 }
  0xfc   : > { %v596_v2 = vmax.f32 %v595_v63, 0.0  ;;  %v1065_v63 = vld [vmem:[%s1914_s6 + $0x28] sm:$0xff]  ;;  %v1064_v0 = vld [vmem:[%s1914_s6 + $0x20] sm:$0xff] }
  0xfd   : > { %v1437_v3 = vpop.f32.mrf.mxu0 }
  0xfe   : > { %v1342_v4 = vpack.c.bf16 %v596_v2, %v596_v2  ;;  %v1063_v2 = vld [vmem:[%s1914_s6 + $0x18] sm:$0xff]  ;;  %v1062_v3 = vld [vmem:[%s1914_s6 + $0x10] sm:$0xff] }
 0x100   : > { %v604_v5 = vshrl.u32 %v1342_v4, 16  ;;  %v607_v7 = vshll.u32 %v1342_v4, 16  ;;  %v1061_v4 = vld [vmem:[%s1914_s6 + $0x8] sm:$0xff] }
 0x102   : > { %v606_v6 = vrot.slane %v604_v5, 7  ;;  %v1060_v5 = vld [vmem:[%s1914_s6] sm:$0xff] }
 0x104   : > { %v609_v10 = vor.u32 %v607_v7, %v606_v6  ;;  %v610_v11 = vrot.slane %v606_v6, 4 }
 0x106   : > { %v616_v12 = vsel %vm614_vm10, %v609_v10, %v615_v8  ;;  %v621_v13 = vsel %vm619_vm11, %v610_v11, %v620_v9 }
 0x107   : > { %617 = vst [vmem:[#allocation3] sm:$0xf] %v616_v12  ;;  %622 = vst [vmem:[#allocation3 + $0x4] sm:$0x1] %v621_v13 }
 0x10e   : > { %v623_v14 = vld [vmem:[#allocation3] sm:$0xf]  ;;  %v640_v15 = vld [vmem:[#allocation3 + $0x4] sm:$0x1] }
 0x10f   : > { %v1294_v16 = vcombine.low %v623_v14, %v640_v15  ;;  %1475 = vmatmul.mubr.bf16.vlgmr.msra.gmra.mxu0 %v623_v14  ;;  %v847_v28 = vld [vmem:[#allocation3] sm:$0xe] }
 0x110   : > { %1531 = vmatprep.mubr.msk.f32.mxu0 %vm1595_vm0, %v1594_v1  ;;  %v1327_v30 = vcombine.low %v847_v28, %v640_v15  ;;  %1504 = vmatpush3.msra.mxu0 %v1073_v55 }
 0x111   : > { %v666_v17 = vshll.u32 %v1294_v16, 16  ;;  %v664_v18 = vshrl.u32 %v1294_v16, 16  ;;  %1505 = vmatprep.subr.mxu0 %v1594_v1 }
 0x112   : > { %v868_v31 = vrot.slane %v1327_v30, 1  ;;  %1506 = vmatpush3.msra.mxu0 %v1072_v56 }
 0x113   : > { %v668_v19 = vrot.slane %v666_v17, 1  ;;  %1507 = vmatprep.subr.mxu0 %v1594_v1 }
 0x114   : > { %1508 = vmatpush3.msra.mxu0 %v1071_v57 }
 0x115   : > { %v669_v21 = vor.u32 %v668_v19, %v664_v18  ;;  %1509 = vmatprep.subr.mxu0 %v1594_v1 }
 0x116   : > { %1510 = vmatpush3.msra.mxu0 %v1070_v58 }
 0x117   : > { %1455 = vmatmul.mubr.bf16.vlgmr.msra.gmra.mxu1 %v669_v21  ;;  %1511 = vmatprep.subr.mxu0 %v1594_v1 }
 0x118   : > { %1479 = vmatpush3.bf16.msra.mxu1 %v1578_v20  ;;  %1494 = vmatprep.mubr.msk.bf16.mxu1 %vm1595_vm0, %v1594_v1 }
 0x119   : > { %1480 = vmatprep.subr.bf16.mxu1 %v1594_v1  ;;  %1512 = vmatpush3.msra.mxu0 %v1069_v59 }
 0x11a   : > { %1513 = vmatprep.subr.mxu0 %v1594_v1 }
 0x11b   : > { %1514 = vmatpush3.msra.mxu0 %v1068_v60 }
 0x11c   : > { %1481 = vmatpush3.bf16.msra.mxu1 %v1579_v22  ;;  %1515 = vmatprep.subr.mxu0 %v1594_v1 }
 0x11d   : > { %1482 = vmatprep.subr.bf16.mxu1 %v1594_v1  ;;  %1516 = vmatpush3.msra.mxu0 %v1067_v61 }
 0x11e   : > { %1517 = vmatprep.subr.mxu0 %v1594_v1 }
 0x11f   : > { %1518 = vmatpush3.msra.mxu0 %v1066_v62 }
 0x120   : > { %1483 = vmatpush3.bf16.msra.mxu1 %v1580_v23  ;;  %1519 = vmatprep.subr.mxu0 %v1594_v1 }
 0x121   : > { %1484 = vmatprep.subr.bf16.mxu1 %v1594_v1  ;;  %1520 = vmatpush3.msra.mxu0 %v1065_v63 }
 0x122   : > { %1521 = vmatprep.subr.mxu0 %v1594_v1 }
 0x123   : > { %1522 = vmatpush3.msra.mxu0 %v1064_v0 }
 0x124   : > { %1485 = vmatpush3.bf16.msra.mxu1 %v1581_v24  ;;  %1523 = vmatprep.subr.mxu0 %v1594_v1 }
 0x125   : > { %1486 = vmatprep.subr.bf16.mxu1 %v1594_v1  ;;  %1524 = vmatpush3.msra.mxu0 %v1063_v2 }
 0x126   : > { %1525 = vmatprep.subr.mxu0 %v1594_v1 }
 0x127   : > { %1526 = vmatpush3.msra.mxu0 %v1062_v3 }
 0x128   : > { %1487 = vmatpush3.bf16.msra.mxu1 %v1582_v25  ;;  %1527 = vmatprep.subr.mxu0 %v1594_v1 }
 0x129   : > { %1488 = vmatprep.subr.bf16.mxu1 %v1594_v1  ;;  %1528 = vmatpush3.msra.mxu0 %v1061_v4 }
 0x12a   : > { %1529 = vmatprep.subr.mxu0 %v1594_v1 }
 0x12b   : > { %1530 = vmatpush3.msra.mxu0 %v1060_v5 }
 0x12c   : > { %1489 = vmatpush3.bf16.msra.mxu1 %v1583_v26 }
 0x12d   : > { %1490 = vmatprep.subr.bf16.mxu1 %v1594_v1 }
 0x130   : > { %1491 = vmatpush3.bf16.msra.mxu1 %v1584_v27 }
 0x131   : > { %1492 = vmatprep.subr.bf16.mxu1 %v1594_v1 }
 0x134   : > { %1493 = vmatpush3.bf16.msra.mxu1 %v1585_v29 }
 0x135   : > { %1498 = vmatprep.subr.mxu1 %v1594_v1 }
 0x137   : > { %1495 = vmatmul.mubr.bf16.vlgmr.msra.gmra.mxu1 %v868_v31 }
 0x138   : > { %1500 = vmatprep.mubr.msk.f32.mxu1 %vm1595_vm0, %v1594_v1 }
 0x1cf   : > { %v841_v32 = vpop.f32.mrf.mxu0 }
 0x1d1   : > { %v1476_v33 = vpop.f32.mrf.mxu0 }
 0x1d3   : > { %v844_v34 = vpop.f32.mrf.mxu0 }
 0x1d5   : > { %v1477_v35 = vpop.f32.mrf.mxu0 }
 0x1d7   : > { %v753_v36 = vpop.f32.mrf.mxu1 }
 0x1d8   : > { %v842_v40 = vadd.f32 %v841_v32, %v753_v36 }
 0x1d9   : > { %v1456_v37 = vpop.f32.mrf.mxu1 }
 0x1db   : > { %v756_v38 = vpop.f32.mrf.mxu1 }
 0x1dd   : > { %v1457_v39 = vpop.f32.mrf.mxu1 }
 0x1f7   : > { %v952_v41 = vpop.f32.mrf.mxu1 }
 0x1f8   : > { %v958_v43 = vadd.f32 %v952_v41, %v842_v40 }
 0x1f9   : > { %v1496_v44 = vpop.f32.mrf.mxu1 }
 0x1fa   : > { %v966_v45 = vadd.f32 %v1336_v42, %v958_v43 }
 0x1fb   : > { %v955_v46 = vpop.f32.mrf.mxu1 }
 0x1fc   : > { %v967_v47 = vmax.f32 %v966_v45, 0.0 }
 0x1fd   : > { %v1497_v48 = vpop.f32.mrf.mxu1 }
 0x1fe   : > { %v968_v49 = vpack.c.bf16 %v967_v47, %v967_v47 }
 0x200   : > { %969 = vst [vmem:[%s307_s12] sm:$0xf] %v968_v49 }
 0x207   : > { %v970_v50 = vld [vmem:[%s307_s12] sm:$0xf] }
 0x208   : > { %v971_v51 = vunpack.c.l.bf16 %v970_v50 }
 0x20a   : > { %v973_v52 = vrot.slane %v971_v51, 1 }
 0x20c   : > { %v975_v53 = vmax.f32 %v971_v51, %v973_v52 }
 0x20e   : > { %1499 = vmatpush3.msk.msra.mxu1 %vm981_vm12, %v975_v53 }
 0x20f   : > { %1501 = vmatmul.mubr.msk.f32.vlgmr.msra.gmra.mxu1 %vm977_vm13, %v976_v54 }
 0x2cf   : > { %v1051_v6 = vpop.f32.mrf.mxu1 }
 0x2d0   : > { %1056 = vrot.lane.b32.xlu0 %v1051_v6, %s1597_s23 }
 0x2d1   : > { %v1502_v7 = vpop.f32.mrf.mxu1 }
 0x342   : > { %v1057_v8 = vpop.permute.xlu0 %1056 }
 0x343   : > { %v1059_v9 = vmax.f32 %v1051_v6, %v1057_v8 }
 0x345   : > { %1532 = vmatmul.mubr.msk.f32.vlgmr.msra.gmra.mxu0 %vm1074_vm14, %v1059_v9 }
 0x405   : > { %v1144_v10 = vpop.f32.mrf.mxu0 }
 0x406   : > { %v1148_v1 = vpack.c.bf16 %v1144_v10, %v1144_v10 }
 0x407   : > { %v1533_v11 = vpop.f32.mrf.mxu0 }
 0x408   : > { %1150 = vst.msk [vmem:[%s311_s29] sm:$0x3] %vm1149_vm15, %v1148_v1 }
 0x409 PF: > { %s19_s27 = sadd.s32 1, %s1592_s27  }
 0x40a   : > { %p16_p4 = scmp.ge.s32.totalorder %s19_s27, 4  }
 0x40c   :  { %18 = sbr.rel (!%p16_p4) target bundleno = 1 (0x1), region = 94 }

// kernel: forward.8
= control target key start
LH: loop header
LB: loop body
LE: loop exit
PB: predicated region body
PF: predicated region fallthrough
CT: control target
= control target key end

     0   :  { %s2646_s13 = smov 0   ;;  %s3113_s0 = inlined_call_operand.vmem [shape: bf16[2,4,128], index: 0, kind: input, shape index: {}]   ;;  %s3114_s1 = inlined_call_operand.vmem [shape: bf16[2,8,128], index: 1, kind: input, shape index: {}]   ;;  %s3115_s2 = inlined_call_operand.vmem [shape: bf16[2,128,128], index: 2, kind: input, shape index: {}]   ;;  %s3116_s3 = inlined_call_operand.vmem [shape: f32[1,128], index: 3, kind: input, shape index: {}]   ;;  %s3117_s4 = inlined_call_operand.vmem [shape: f32[2,8,4], index: 4, kind: input, shape index: {}]   ;;  %s3118_s5 = inlined_call_operand.vmem [shape: bf16[3,128,128], index: 5, kind: input, shape index: {}]   ;;  %s3119_s6 = inlined_call_operand.vmem [shape: bf16[3,128,128], index: 6, kind: input, shape index: {}]   ;;  %s3120_s7 = inlined_call_operand.vmem [shape: f32[1,128], index: 7, kind: input, shape index: {}]   ;;  %s3121_s8 = inlined_call_operand.vmem [shape: bf16[3,128,128], index: 8, kind: input, shape index: {}]   ;;  %s3122_s9 = inlined_call_operand.vmem [shape: f32[1,128], index: 9, kind: input, shape index: {}]   ;;  %s3123_s10 = inlined_call_operand.vmem [shape: bf16[2,8,128], index: 10, kind: output, shape index: {}]  }
   0x1 LB: > { %s1914_s14 = sadd.s32 4294967295, %s2586_s13   ;;  %p1918_p0 = scmp.ge.s32.totalorder %s2586_s13, 1  ;;  %s2586_s13 = sphi %s2646_s13, %s20_s13  }
   0x2   : > { %p320_p1 = scmp.lt.s32.totalorder %s2586_s13, 3 }
   0x4   : > { %p321_p2 = pnand %p1918_p0, %p320_p1 }
   0x5   : > { %p360_p3 = scmp.lt.s32.totalorder (!%p321_p2), %s1914_s14, 1 }
   0x6   : > { %324 = sbr.rel (%p321_p2) target bundleno = 978 (0x3d2), region = 60 }
   0xb   : > { %v2486_v0 = vld [vmem:[%s3115_s2 + $0x78] sm:$0xff]   ;;  %v2588_v1 = vmov 0.0   ;;  %v2488_v3 = vld [vmem:[%s3115_s2 + $0x70] sm:$0xff]   ;;  %vm2589_vm0 = vmmov 0   ;;  %v2490_v5 = vld [vmem:[%s3115_s2 + $0x68] sm:$0xff]   ;;  %s3129_s14 = smov (!%p360_p3, %s1914_s14), 1 }
   0xc   : > { %2265 = vmatprep.subr.bf16.mxu1 %v2588_v1  ;;  %2245 = vmatprep.subr.bf16.mxu0 %v2588_v1  ;;  %v2487_v2 = vld [vmem:[%s3115_s2 + $0x38] sm:$0xff]   ;;  %v2489_v4 = vld [vmem:[%s3115_s2 + $0x30] sm:$0xff]   ;;  %v2491_v6 = vld [vmem:[%s3115_s2 + $0x28] sm:$0xff]   ;;  %s1919_s25 = sshll.u32 %s3129_s14, 1  ;;  %s1920_s15 = sshll.u32 %s3129_s14, 2  ;;  %v2590_v22 = vmov 0  }
   0xd   : > { %2266 = vmatpush3.bf16.msra.mxu1 %v2486_v0  ;;  %2281 = vmatprep.mubr.msk.bf16.mxu1 %vm2589_vm0, %v2588_v1  ;;  %v2492_v7 = vld [vmem:[%s3115_s2 + $0x60] sm:$0xff]   ;;  %v2494_v9 = vld [vmem:[%s3115_s2 + $0x58] sm:$0xff]   ;;  %v2496_v11 = vld [vmem:[%s3115_s2 + $0x50] sm:$0xff]   ;;  %s363_s12 = scalar_lea.vmem %s3113_s0, %s1919_s25  ;;  %s367_s18 = scalar_lea.vmem %s3114_s1, %s1920_s15  ;;  %776 = vst [vmem:[#allocation3] sm:$0xf] %v2590_v22  ;;  %vm590_vm2 = vcmask 1043456  }
   0xe   : > { %2246 = vmatpush3.bf16.msra.mxu0 %v2487_v2  ;;  %2267 = vmatprep.subr.bf16.mxu1 %v2588_v1  ;;  %v2493_v8 = vld [vmem:[%s3115_s2 + $0x20] sm:$0xff]   ;;  %v2495_v10 = vld [vmem:[%s3115_s2 + $0x18] sm:$0xff]   ;;  %v2497_v12 = vld [vmem:[%s3115_s2 + $0x10] sm:$0xff]   ;;  %748 = vst [vmem:[#allocation2] sm:$0xf] %v2590_v22  ;;  %vm586_vm4 = vcmask 31744   ;;  %s371_s22 = scalar_lea.vmem %s3123_s10, %s1920_s15 }
   0xf   : > { %2247 = vmatprep.subr.bf16.mxu0 %v2588_v1  ;;  %2261 = vmatprep.mubr.msk.bf16.mxu0 %vm2589_vm0, %v2588_v1  ;;  %v2498_v13 = vld [vmem:[%s3115_s2 + $0x48] sm:$0xff]   ;;  %v2500_v15 = vld [vmem:[%s3115_s2 + $0x40] sm:$0xff]   ;;  %749 = vst [vmem:[#allocation2 + $0x4] sm:$0x1] %v2590_v22  ;;  %777 = vst [vmem:[#allocation3 + $0x4] sm:$0x1] %v2590_v22 }
  0x10   : > { %v2499_v14 = vld [vmem:[%s3115_s2 + $0x8] sm:$0xff]   ;;  %v2501_v16 = vld [vmem:[%s3115_s2] sm:$0xff]   ;;  %1480 = vst [vmem:[#allocation4] sm:$0xf] %v2590_v22  ;;  %1481 = vst [vmem:[#allocation4 + $0x4] sm:$0x1] %v2590_v22 }
  0x11   : > { %2268 = vmatpush3.bf16.msra.mxu1 %v2488_v3  ;;  %v373_v17 = vld [vmem:[%s363_s12] sm:$0x3]  ;;  %vm765_vm1 = vsmask.f32 7938  ;;  %v2502_v25 = vld [vmem:[%s3119_s6 + $0x38] sm:$0xff]   ;;  %v2503_v27 = vld [vmem:[%s3119_s6 + $0x30] sm:$0xff]  }
  0x12   : > { %2248 = vmatpush3.bf16.msra.mxu0 %v2489_v4  ;;  %2269 = vmatprep.subr.bf16.mxu1 %v2588_v1  ;;  %v778_v18 = vld [vmem:[%s367_s18] sm:$0xf]  ;;  %vm2748_vm3 = vmand %vm590_vm2, %vm765_vm1  ;;  %v2504_v29 = vld [vmem:[%s3119_s6 + $0x28] sm:$0xff]   ;;  %vm770_vm5 = vcmask 1040384   ;;  %vm771_vm6 = vsmask.f32 256 }
  0x13   : > { %2249 = vmatprep.subr.bf16.mxu0 %v2588_v1  ;;  %v780_v19 = vshrl.u32 %v778_v18, 16  ;;  %v783_v21 = vshll.u32 %v778_v18, 16  ;;  %v2505_v30 = vld [vmem:[%s3119_s6 + $0x20] sm:$0xff]   ;;  %v2506_v31 = vld [vmem:[%s3119_s6 + $0x18] sm:$0xff]   ;;  %v2507_v32 = vld [vmem:[%s3119_s6 + $0x10] sm:$0xff]  }
  0x14   : > { %v789_v26 = vld [vmem:[#allocation3] sm:$0xf]  ;;  %v2510_v34 = vld [vmem:[%s3119_s6] sm:$0xff]   ;;  %v2509_v41 = vld [vmem:[%s3118_s5 + $0x38] sm:$0xff]  }
  0x15   : > { %2270 = vmatpush3.bf16.msra.mxu1 %v2490_v5  ;;  %v2744_v20 = vrot.slane %v780_v19, 7  ;;  %v2508_v33 = vld [vmem:[%s3119_s6 + $0x8] sm:$0xff]   ;;  %v478_v40 = vld [vmem:[%s3117_s4] sm:$0xff]  ;;  %v2511_v46 = vld [vmem:[%s3118_s5 + $0x30] sm:$0xff]  }
  0x16   : > { %2250 = vmatpush3.bf16.msra.mxu0 %v2491_v6  ;;  %2271 = vmatprep.subr.bf16.mxu1 %v2588_v1  ;;  %v1954_v35 = vld [vmem:[%s3117_s4 + $0x8] sm:$0xff]  ;;  %v2513_v48 = vld [vmem:[%s3118_s5 + $0x78] sm:$0xff]   ;;  %v2514_v50 = vld [vmem:[%s3118_s5 + $0x20] sm:$0xff]  }
  0x17   : > { %2251 = vmatprep.subr.bf16.mxu0 %v2588_v1  ;;  %v785_v23 = vor.u32 %v783_v21, %v2744_v20  ;;  %v2512_v47 = vld [vmem:[%s3118_s5 + $0x28] sm:$0xff]   ;;  %v2515_v51 = vld [vmem:[%s3118_s5 + $0x70] sm:$0xff]   ;;  %v2516_v52 = vld [vmem:[%s3118_s5 + $0x18] sm:$0xff]   ;;  %v786_v56 = vrot.slane %v2744_v20, 4 }
  0x18   : > { %v2517_v53 = vld [vmem:[%s3118_s5 + $0x68] sm:$0xff]   ;;  %v2518_v54 = vld [vmem:[%s3118_s5 + $0x10] sm:$0xff]   ;;  %v2519_v55 = vld [vmem:[%s3118_s5 + $0x60] sm:$0xff]  }
  0x19   : > { %2272 = vmatpush3.bf16.msra.mxu1 %v2492_v7  ;;  %v790_v28 = vsel %vm2748_vm3, %v785_v23, %v789_v26  ;;  %v2520_v57 = vld [vmem:[%s3118_s5 + $0x8] sm:$0xff]   ;;  %vm2848_vm7 = vmand %vm770_vm5, %vm771_vm6  ;;  %v2521_v60 = vld [vmem:[%s3118_s5 + $0x58] sm:$0xff]  }
  0x1a   : > { %2252 = vmatpush3.bf16.msra.mxu0 %v2493_v8  ;;  %2273 = vmatprep.subr.bf16.mxu1 %v2588_v1  ;;  %791 = vst [vmem:[#allocation3] sm:$0xf] %v790_v28  ;;  %v792_v59 = vld [vmem:[#allocation3 + $0x4] sm:$0x1]  ;;  %v2522_v62 = vld [vmem:[%s3118_s5] sm:$0xff]   ;;  %v2523_v63 = vld [vmem:[%s3118_s5 + $0x50] sm:$0xff]  }
  0x1b   : > { %2253 = vmatprep.subr.bf16.mxu0 %v2588_v1  ;;  %v793_v61 = vsel %vm2848_vm7, %v786_v56, %v792_v59  ;;  %v2524_v0 = vld [vmem:[%s3118_s5 + $0x48] sm:$0xff]   ;;  %v2526_v2 = vld [vmem:[%s3118_s5 + $0x40] sm:$0xff]   ;;  %v2525_v20 = vld [vmem:[%s3119_s6 + $0x78] sm:$0xff]  }
  0x1c   : > { %794 = vst [vmem:[#allocation3 + $0x4] sm:$0x1] %v793_v61  ;;  %v1959_v6 = vld [vmem:[%s3116_s3] ss:$0 sm:$0xff]  ;;  %v2527_v26 = vld [vmem:[%s3119_s6 + $0x70] sm:$0xff]   ;;  %v2547_v56 = vld [vmem:[%s3119_s6 + $0xa8] sm:$0xff]  }
  0x1d   : > { %2274 = vmatpush3.bf16.msra.mxu1 %v2494_v9  ;;  %v2548_v59 = vld [vmem:[%s3119_s6 + $0xa0] sm:$0xff]   ;;  %v2573_v24 = vld [vmem:[%s3121_s8 + $0xb0] sm:$0xff]   ;;  %v2574_v58 = vld [vmem:[%s3121_s8 + $0xa8] sm:$0xff]  }
  0x1e   : > { %2254 = vmatpush3.bf16.msra.mxu0 %v2495_v10  ;;  %2275 = vmatprep.subr.bf16.mxu1 %v2588_v1 }
  0x1f   : > { %2255 = vmatprep.subr.bf16.mxu0 %v2588_v1 }
  0x21   : > { %2276 = vmatpush3.bf16.msra.mxu1 %v2496_v11  ;;  %v812_v49 = vld [vmem:[#allocation3] sm:$0xf] }
  0x22   : > { %2256 = vmatpush3.bf16.msra.mxu0 %v2497_v12  ;;  %2277 = vmatprep.subr.bf16.mxu1 %v2588_v1 }
  0x23   : > { %2257 = vmatprep.subr.bf16.mxu0 %v2588_v1 }
  0x25   : > { %2278 = vmatpush3.bf16.msra.mxu1 %v2498_v13 }
  0x26   : > { %2258 = vmatpush3.bf16.msra.mxu0 %v2499_v14  ;;  %2279 = vmatprep.subr.bf16.mxu1 %v2588_v1  ;;  %v767_v14 = vld [vmem:[#allocation2] sm:$0xf] }
  0x27   : > { %2259 = vmatprep.subr.bf16.mxu0 %v2588_v1 }
  0x29   : > { %2280 = vmatpush3.bf16.msra.mxu1 %v2500_v15  ;;  %v773_v15 = vld [vmem:[#allocation2 + $0x4] sm:$0x1] }
  0x2a   : > { %2260 = vmatpush3.bf16.msra.mxu0 %v2501_v16  ;;  %2285 = vmatprep.subr.mxu1 %v2588_v1 }
  0x2b   : > { %2295 = vmatprep.subr.bf16.mxu0 %v2588_v1 }
  0x2c   : > { %2282 = vmatmul.mubr.bf16.vlgmr.msra.gmra.mxu1 %v373_v17 }
  0x2d   : > { %2262 = vmatmul.mubr.bf16.vlgmr.msra.gmra.mxu0 %v373_v17  ;;  %2287 = vmatprep.mubr.msk.f32.mxu1 %vm2589_vm0, %v2588_v1 }
  0x2e   : > { %2311 = vmatprep.mubr.msk.bf16.mxu0 %vm2589_vm0, %v2588_v1  ;;  %2296 = vmatpush3.bf16.msra.mxu0 %v2502_v25 }
  0x2f   : > { %2297 = vmatprep.subr.bf16.mxu0 %v2588_v1 }
  0x32   : > { %2298 = vmatpush3.bf16.msra.mxu0 %v2503_v27 }
  0x33   : > { %2299 = vmatprep.subr.bf16.mxu0 %v2588_v1 }
  0x36   : > { %2300 = vmatpush3.bf16.msra.mxu0 %v2504_v29 }
  0x37   : > { %2301 = vmatprep.subr.bf16.mxu0 %v2588_v1 }
  0x3a   : > { %2302 = vmatpush3.bf16.msra.mxu0 %v2505_v30  ;;  %v2529_v30 = vld [vmem:[%s3119_s6 + $0x68] sm:$0xff]  }
  0x3b   : > { %2303 = vmatprep.subr.bf16.mxu0 %v2588_v1 }
  0x3e   : > { %2304 = vmatpush3.bf16.msra.mxu0 %v2506_v31  ;;  %v2530_v31 = vld [vmem:[%s3118_s5 + $0xb8] sm:$0xff]  }
  0x3f   : > { %2305 = vmatprep.subr.bf16.mxu0 %v2588_v1 }
  0x42   : > { %2306 = vmatpush3.bf16.msra.mxu0 %v2507_v32 }
  0x43   : > { %2307 = vmatprep.subr.bf16.mxu0 %v2588_v1 }
  0x46   : > { %2308 = vmatpush3.bf16.msra.mxu0 %v2508_v33  ;;  %v2531_v33 = vld [vmem:[%s3119_s6 + $0x60] sm:$0xff]  }
  0x47   : > { %2309 = vmatprep.subr.bf16.mxu0 %v2588_v1 }
  0x4a   : > { %2310 = vmatpush3.bf16.msra.mxu0 %v2510_v34  ;;  %v2532_v34 = vld [vmem:[%s3118_s5 + $0xb0] sm:$0xff]  }
  0x4b   : > { %2335 = vmatprep.subr.bf16.mxu0 %v2588_v1 }
  0x4d   : > { %2312 = vmatmul.mubr.bf16.vlgmr.msra.gmra.mxu0 %v812_v49 }
  0x4e   : > { %2336 = vmatpush3.bf16.msra.mxu0 %v2513_v48  ;;  %2351 = vmatprep.mubr.msk.bf16.mxu0 %vm2589_vm0, %v2588_v1  ;;  %v2540_v48 = vld [vmem:[%s3118_s5 + $0x90] sm:$0xff]  }
  0x4f   : > { %2337 = vmatprep.subr.bf16.mxu0 %v2588_v1 }
  0x52   : > { %2338 = vmatpush3.bf16.msra.mxu0 %v2515_v51  ;;  %v2543_v51 = vld [vmem:[%s3119_s6 + $0xb8] sm:$0xff]  }
  0x53   : > { %2339 = vmatprep.subr.bf16.mxu0 %v2588_v1 }
  0x56   : > { %2340 = vmatpush3.bf16.msra.mxu0 %v2517_v53  ;;  %v2544_v53 = vld [vmem:[%s3118_s5 + $0x80] sm:$0xff]  }
  0x57   : > { %2341 = vmatprep.subr.bf16.mxu0 %v2588_v1 }
  0x5a   : > { %2342 = vmatpush3.bf16.msra.mxu0 %v2519_v55 }
  0x5b   : > { %2343 = vmatprep.subr.bf16.mxu0 %v2588_v1 }
  0x5e   : > { %2344 = vmatpush3.bf16.msra.mxu0 %v2521_v60 }
  0x5f   : > { %2345 = vmatprep.subr.bf16.mxu0 %v2588_v1 }
  0x62   : > { %2346 = vmatpush3.bf16.msra.mxu0 %v2523_v63 }
  0x63   : > { %2347 = vmatprep.subr.bf16.mxu0 %v2588_v1 }
  0x66   : > { %2348 = vmatpush3.bf16.msra.mxu0 %v2524_v0 }
  0x67   : > { %2349 = vmatprep.subr.bf16.mxu0 %v2588_v1 }
  0x6a   : > { %2350 = vmatpush3.bf16.msra.mxu0 %v2526_v2  ;;  %v2550_v2 = vld [vmem:[%s3119_s6 + $0x90] sm:$0xff]  }
  0x6b   : > { %2375 = vmatprep.subr.bf16.mxu0 %v2588_v1 }
  0xec   : > { %v578_v36 = vpop.f32.mrf.mxu1 }
  0xed   : > { %2286 = vmatpush3.msk.msra.mxu1 %vm590_vm2, %v578_v36  ;;  %v472_v37 = vpop.f32.mrf.mxu0  ;;  %v2534_v36 = vld [vmem:[%s3118_s5 + $0xa8] sm:$0xff]  }
  0xee   : > { %v2283_v38 = vpop.f32.mrf.mxu1  ;;  %2288 = vmatmul.mubr.msk.f32.vlgmr.msra.gmra.mxu1 %vm586_vm4, %v1954_v35  ;;  %2290 = vmatprep.subr.mxu1 %v2588_v1  ;;  %v2533_v35 = vld [vmem:[%s3119_s6 + $0x58] sm:$0xff]  }
  0xef   : > { %v2263_v39 = vpop.f32.mrf.mxu0  ;;  %2291 = vmatpush3.msk.msra.mxu1 %vm590_vm2, %v472_v37  ;;  %2292 = vmatprep.mubr.msk.f32.mxu1 %vm2589_vm0, %v2588_v1  ;;  %v1126_v37 = vld [vmem:[#allocation3] sm:$0xf]  ;;  %v2917_v38 = vld [vmem:[#allocation3 + $0x4] sm:$0x1] }
  0xf0   : > { %v581_v42 = vpop.f32.mrf.mxu1  ;;  %2315 = vmatprep.subr.bf16.mxu1 %v2588_v1  ;;  %v2018_v39 = vcombine.low %v1126_v37, %v2917_v38 }
  0xf1   : > { %v475_v43 = vpop.f32.mrf.mxu0 }
  0xf2   : > { %v2284_v44 = vpop.f32.mrf.mxu1  ;;  %2293 = vmatmul.mubr.msk.f32.vlgmr.msra.gmra.mxu1 %vm586_vm4, %v478_v40  ;;  %v2535_v40 = vld [vmem:[%s3119_s6 + $0x50] sm:$0xff]   ;;  %v1153_v42 = vshll.u32 %v2018_v39, 16  ;;  %v2537_v43 = vld [vmem:[%s3119_s6 + $0x48] sm:$0xff]  }
  0xf3   : > { %v2264_v45 = vpop.f32.mrf.mxu0  ;;  %2316 = vmatpush3.bf16.msra.mxu1 %v2509_v41  ;;  %2331 = vmatprep.mubr.msk.bf16.mxu1 %vm2589_vm0, %v2588_v1  ;;  %v2536_v41 = vld [vmem:[%s3118_s5 + $0xa0] sm:$0xff]   ;;  %v2538_v44 = vld [vmem:[%s3118_s5 + $0x98] sm:$0xff]  }
  0xf4   : > { %2317 = vmatprep.subr.bf16.mxu1 %v2588_v1  ;;  %v1151_v45 = vshrl.u32 %v2018_v39, 16 }
  0xf7   : > { %2318 = vmatpush3.bf16.msra.mxu1 %v2511_v46  ;;  %v1155_v46 = vrot.slane %v1153_v42, 1 }
  0xf8   : > { %2319 = vmatprep.subr.bf16.mxu1 %v2588_v1 }
  0xf9   : > { %v1156_v49 = vor.u32 %v1155_v46, %v1151_v45  ;;  %v2077_v46 = vld [vmem:[%s3120_s7] ss:$0 sm:$0xff] }
  0xfb   : > { %2320 = vmatpush3.bf16.msra.mxu1 %v2512_v47  ;;  %v2539_v47 = vld [vmem:[%s3119_s6 + $0x40] sm:$0xff]  }
  0xfc   : > { %2321 = vmatprep.subr.bf16.mxu1 %v2588_v1 }
  0xff   : > { %2322 = vmatpush3.bf16.msra.mxu1 %v2514_v50  ;;  %v2542_v50 = vld [vmem:[%s3118_s5 + $0x88] sm:$0xff]  }
 0x100   : > { %2323 = vmatprep.subr.bf16.mxu1 %v2588_v1 }
 0x103   : > { %2324 = vmatpush3.bf16.msra.mxu1 %v2516_v52 }
 0x104   : > { %2325 = vmatprep.subr.bf16.mxu1 %v2588_v1 }
 0x107   : > { %2326 = vmatpush3.bf16.msra.mxu1 %v2518_v54  ;;  %v2545_v54 = vld [vmem:[%s3119_s6 + $0xb0] sm:$0xff]  }
 0x108   : > { %2327 = vmatprep.subr.bf16.mxu1 %v2588_v1 }
 0x10b   : > { %2328 = vmatpush3.bf16.msra.mxu1 %v2520_v57 }
 0x10c   : > { %2329 = vmatprep.subr.bf16.mxu1 %v2588_v1 }
 0x10d   : > { %v2973_v60 = vpop.f32.mrf.mxu0 }
 0x10f   : > { %2330 = vmatpush3.bf16.msra.mxu1 %v2522_v62  ;;  %v2313_v61 = vpop.f32.mrf.mxu0  ;;  %v2549_v62 = vld [vmem:[%s3119_s6 + $0x98] sm:$0xff]  }
 0x110   : > { %2355 = vmatprep.subr.bf16.mxu1 %v2588_v1 }
 0x111   : > { %v914_v63 = vpop.f32.mrf.mxu0 }
 0x113   : > { %v2314_v0 = vpop.f32.mrf.mxu0 }
 0x1ae   : > { %v660_v3 = vpop.f32.mrf.mxu1 }
 0x1b0   : > { %v2289_v4 = vpop.f32.mrf.mxu1 }
 0x1b1   : > { %v1359_v4 = vld [vmem:[#allocation3] sm:$0xe] }
 0x1b2   : > { %v736_v5 = vpop.f32.mrf.mxu1 }
 0x1b3   : > { %v737_v7 = vadd.f32 %v736_v5, %v660_v3  ;;  %v2551_v3 = vld [vmem:[%s3119_s6 + $0x88] sm:$0xff]   ;;  %v2068_v5 = vcombine.low %v1359_v4, %v2917_v38 }
 0x1b4   : > { %v2294_v8 = vpop.f32.mrf.mxu1 }
 0x1b5   : > { %v747_v9 = vadd.f32 %v1959_v6, %v737_v7  ;;  %v2552_v6 = vld [vmem:[%s3119_s6 + $0x80] sm:$0xff]   ;;  %v1380_v7 = vrot.slane %v2068_v5, 1  ;;  %v2554_v8 = vld [vmem:[%s3121_s8 + $0x38] sm:$0xff]  }
 0x1b7   : > { %v2140_v10 = vpack.c.bf16 %v747_v9, %v747_v9  ;;  %v2555_v9 = vld [vmem:[%s3121_s8 + $0x30] sm:$0xff]  }
 0x1b9   : > { %v755_v11 = vshrl.u32 %v2140_v10, 16  ;;  %v758_v13 = vshll.u32 %v2140_v10, 16  ;;  %v2556_v10 = vld [vmem:[%s3121_s8 + $0x78] sm:$0xff]  }
 0x1bb   : > { %v757_v12 = vrot.slane %v755_v11, 7  ;;  %v2557_v11 = vld [vmem:[%s3121_s8 + $0x28] sm:$0xff]  }
 0x1bd   : > { %v760_v16 = vor.u32 %v758_v13, %v757_v12  ;;  %v761_v17 = vrot.slane %v757_v12, 4  ;;  %v2558_v12 = vld [vmem:[%s3121_s8 + $0x70] sm:$0xff]   ;;  %v2559_v13 = vld [vmem:[%s3121_s8 + $0x20] sm:$0xff]  }
 0x1bf   : > { %v768_v18 = vsel %vm2748_vm3, %v760_v16, %v767_v14  ;;  %v774_v19 = vsel %vm2848_vm7, %v761_v17, %v773_v15  ;;  %v2560_v14 = vld [vmem:[%s3121_s8 + $0x68] sm:$0xff]   ;;  %v2561_v15 = vld [vmem:[%s3121_s8 + $0x18] sm:$0xff]   ;;  %v2562_v16 = vld [vmem:[%s3121_s8 + $0x60] sm:$0xff]  }
 0x1c0   : > { %769 = vst [vmem:[#allocation2] sm:$0xf] %v768_v18  ;;  %775 = vst [vmem:[#allocation2 + $0x4] sm:$0x1] %v774_v19  ;;  %v2563_v17 = vld [vmem:[%s3121_s8 + $0x10] sm:$0xff]   ;;  %v2564_v18 = vld [vmem:[%s3121_s8 + $0x58] sm:$0xff]  }
 0x1c1   : > { %v2565_v19 = vld [vmem:[%s3121_s8 + $0x8] sm:$0xff]  }
 0x1c7   : > { %v795_v21 = vld [vmem:[#allocation2] sm:$0xf]  ;;  %v2885_v23 = vld [vmem:[#allocation2 + $0x4] sm:$0x1] }
 0x1c8   : > { %v1005_v22 = vld [vmem:[#allocation2] sm:$0xf]  ;;  %2332 = vmatmul.mubr.bf16.vlgmr.msra.gmra.mxu1 %v795_v21 }
 0x1c9   : > { %v1993_v25 = vcombine.low %v1005_v22, %v2885_v23  ;;  %2356 = vmatpush3.bf16.msra.mxu1 %v2525_v20  ;;  %2371 = vmatprep.mubr.msk.bf16.mxu1 %vm2589_vm0, %v2588_v1  ;;  %v1247_v52 = vld [vmem:[#allocation2] sm:$0xe]  ;;  %v2566_v20 = vld [vmem:[%s3121_s8 + $0x50] sm:$0xff]   ;;  %v2568_v22 = vld [vmem:[%s3121_s8 + $0x48] sm:$0xff]  }
 0x1ca   : > { %2357 = vmatprep.subr.bf16.mxu1 %v2588_v1  ;;  %v2043_v55 = vcombine.low %v1247_v52, %v2885_v23  ;;  %v2567_v21 = vld [vmem:[%s3121_s8] sm:$0xff]  }
 0x1cb   : > { %v1032_v27 = vshll.u32 %v1993_v25, 16  ;;  %v1030_v28 = vshrl.u32 %v1993_v25, 16  ;;  %v2571_v23 = vld [vmem:[%s3121_s8 + $0x40] sm:$0xff]  }
 0x1cc   : > { %v1268_v57 = vrot.slane %v2043_v55, 1 }
 0x1cd   : > { %v1034_v29 = vrot.slane %v1032_v27, 1  ;;  %2358 = vmatpush3.bf16.msra.mxu1 %v2527_v26 }
 0x1ce   : > { %2359 = vmatprep.subr.bf16.mxu1 %v2588_v1 }
 0x1cf   : > { %v1035_v32 = vor.u32 %v1034_v29, %v1030_v28 }
 0x1d1   : > { %2352 = vmatmul.mubr.bf16.vlgmr.msra.gmra.mxu0 %v1035_v32  ;;  %2360 = vmatpush3.bf16.msra.mxu1 %v2529_v30 }
 0x1d2   : > { %2376 = vmatpush3.bf16.msra.mxu0 %v2530_v31  ;;  %2361 = vmatprep.subr.bf16.mxu1 %v2588_v1 }
 0x1d3   : > { %2377 = vmatprep.subr.bf16.mxu0 %v2588_v1  ;;  %2391 = vmatprep.mubr.msk.bf16.mxu0 %vm2589_vm0, %v2588_v1 }
 0x1d5   : > { %2362 = vmatpush3.bf16.msra.mxu1 %v2531_v33 }
 0x1d6   : > { %2378 = vmatpush3.bf16.msra.mxu0 %v2532_v34  ;;  %2363 = vmatprep.subr.bf16.mxu1 %v2588_v1 }
 0x1d7   : > { %2379 = vmatprep.subr.bf16.mxu0 %v2588_v1 }
 0x1d9   : > { %2364 = vmatpush3.bf16.msra.mxu1 %v2533_v35 }
 0x1da   : > { %2380 = vmatpush3.bf16.msra.mxu0 %v2534_v36  ;;  %2365 = vmatprep.subr.bf16.mxu1 %v2588_v1 }
 0x1db   : > { %2381 = vmatprep.subr.bf16.mxu0 %v2588_v1 }
 0x1dd   : > { %2366 = vmatpush3.bf16.msra.mxu1 %v2535_v40 }
 0x1de   : > { %2382 = vmatpush3.bf16.msra.mxu0 %v2536_v41  ;;  %2367 = vmatprep.subr.bf16.mxu1 %v2588_v1 }
 0x1df   : > { %2383 = vmatprep.subr.bf16.mxu0 %v2588_v1 }
 0x1e1   : > { %2368 = vmatpush3.bf16.msra.mxu1 %v2537_v43 }
 0x1e2   : > { %2384 = vmatpush3.bf16.msra.mxu0 %v2538_v44  ;;  %2369 = vmatprep.subr.bf16.mxu1 %v2588_v1 }
 0x1e3   : > { %2385 = vmatprep.subr.bf16.mxu0 %v2588_v1 }
 0x1e5   : > { %2370 = vmatpush3.bf16.msra.mxu1 %v2539_v47 }
 0x1e6   : > { %2386 = vmatpush3.bf16.msra.mxu0 %v2540_v48  ;;  %2395 = vmatprep.subr.bf16.mxu1 %v2588_v1 }
 0x1e7   : > { %2387 = vmatprep.subr.bf16.mxu0 %v2588_v1 }
 0x1e8   : > { %2372 = vmatmul.mubr.bf16.vlgmr.msra.gmra.mxu1 %v1156_v49 }
 0x1e9   : > { %2396 = vmatpush3.bf16.msra.mxu1 %v2543_v51  ;;  %2411 = vmatprep.mubr.msk.bf16.mxu1 %vm2589_vm0, %v2588_v1 }
 0x1ea   : > { %2388 = vmatpush3.bf16.msra.mxu0 %v2542_v50  ;;  %2397 = vmatprep.subr.bf16.mxu1 %v2588_v1 }
 0x1eb   : > { %2389 = vmatprep.subr.bf16.mxu0 %v2588_v1 }
 0x1ed   : > { %2398 = vmatpush3.bf16.msra.mxu1 %v2545_v54 }
 0x1ee   : > { %2390 = vmatpush3.bf16.msra.mxu0 %v2544_v53  ;;  %2399 = vmatprep.subr.bf16.mxu1 %v2588_v1 }
 0x1ef   : > { %2415 = vmatprep.subr.bf16.mxu0 %v2588_v1 }
 0x1f1   : > { %2392 = vmatmul.mubr.bf16.vlgmr.msra.gmra.mxu0 %v1268_v57  ;;  %2400 = vmatpush3.bf16.msra.mxu1 %v2547_v56  ;;  %v1496_v57 = vld [vmem:[#allocation4] sm:$0xf] }
 0x1f2   : > { %2431 = vmatprep.mubr.msk.bf16.mxu0 %vm2589_vm0, %v2588_v1  ;;  %2401 = vmatprep.subr.bf16.mxu1 %v2588_v1 }
 0x1f3   : > { %2416 = vmatpush3.bf16.msra.mxu0 %v2556_v10  ;;  %v2576_v10 = vld [vmem:[%s3121_s8 + $0x98] sm:$0xff]  }
 0x1f4   : > { %2417 = vmatprep.subr.bf16.mxu0 %v2588_v1 }
 0x1f5   : > { %2402 = vmatpush3.bf16.msra.mxu1 %v2548_v59  ;;  %v1499_v59 = vld [vmem:[#allocation4 + $0x4] sm:$0x1] }
 0x1f6   : > { %2403 = vmatprep.subr.bf16.mxu1 %v2588_v1 }
 0x1f7   : > { %2418 = vmatpush3.bf16.msra.mxu0 %v2558_v12  ;;  %v2578_v12 = vld [vmem:[%s3121_s8 + $0x88] sm:$0xff]  }
 0x1f8   : > { %2419 = vmatprep.subr.bf16.mxu0 %v2588_v1 }
 0x1f9   : > { %2404 = vmatpush3.bf16.msra.mxu1 %v2549_v62 }
 0x1fa   : > { %2405 = vmatprep.subr.bf16.mxu1 %v2588_v1 }
 0x1fb   : > { %2420 = vmatpush3.bf16.msra.mxu0 %v2560_v14  ;;  %v2579_v14 = vld [vmem:[%s3121_s8 + $0x80] sm:$0xff]  }
 0x1fc   : > { %2421 = vmatprep.subr.bf16.mxu0 %v2588_v1 }
 0x1fd   : > { %2406 = vmatpush3.bf16.msra.mxu1 %v2550_v2 }
 0x1fe   : > { %2407 = vmatprep.subr.bf16.mxu1 %v2588_v1 }
 0x1ff   : > { %2422 = vmatpush3.bf16.msra.mxu0 %v2562_v16 }
 0x200   : > { %2423 = vmatprep.subr.bf16.mxu0 %v2588_v1 }
 0x201   : > { %2408 = vmatpush3.bf16.msra.mxu1 %v2551_v3 }
 0x202   : > { %2409 = vmatprep.subr.bf16.mxu1 %v2588_v1 }
 0x203   : > { %2424 = vmatpush3.bf16.msra.mxu0 %v2564_v18 }
 0x204   : > { %2425 = vmatprep.subr.bf16.mxu0 %v2588_v1 }
 0x205   : > { %2410 = vmatpush3.bf16.msra.mxu1 %v2552_v6 }
 0x206   : > { %2435 = vmatprep.subr.bf16.mxu1 %v2588_v1 }
 0x207   : > { %2426 = vmatpush3.bf16.msra.mxu0 %v2566_v20 }
 0x208   : > { %2412 = vmatmul.mubr.bf16.vlgmr.msra.gmra.mxu1 %v1380_v7  ;;  %2427 = vmatprep.subr.bf16.mxu0 %v2588_v1  ;;  %v2572_v7 = vld [vmem:[%s3121_s8 + $0xb8] sm:$0xff]  }
 0x209   : > { %2451 = vmatprep.mubr.msk.bf16.mxu1 %vm2589_vm0, %v2588_v1  ;;  %2436 = vmatpush3.bf16.msra.mxu1 %v2554_v8 }
 0x20a   : > { %2437 = vmatprep.subr.bf16.mxu1 %v2588_v1 }
 0x20b   : > { %2428 = vmatpush3.bf16.msra.mxu0 %v2568_v22 }
 0x20c   : > { %2429 = vmatprep.subr.bf16.mxu0 %v2588_v1 }
 0x20d   : > { %2438 = vmatpush3.bf16.msra.mxu1 %v2555_v9  ;;  %v2575_v9 = vld [vmem:[%s3121_s8 + $0xa0] sm:$0xff]  }
 0x20e   : > { %2439 = vmatprep.subr.bf16.mxu1 %v2588_v1 }
 0x20f   : > { %2430 = vmatpush3.bf16.msra.mxu0 %v2571_v23 }
 0x210   : > { %2455 = vmatprep.subr.bf16.mxu0 %v2588_v1 }
 0x211   : > { %2440 = vmatpush3.bf16.msra.mxu1 %v2557_v11  ;;  %v2577_v11 = vld [vmem:[%s3121_s8 + $0x90] sm:$0xff]  }
 0x212   : > { %2441 = vmatprep.subr.bf16.mxu1 %v2588_v1 }
 0x215   : > { %2442 = vmatpush3.bf16.msra.mxu1 %v2559_v13 }
 0x216   : > { %2443 = vmatprep.subr.bf16.mxu1 %v2588_v1 }
 0x219   : > { %2444 = vmatpush3.bf16.msra.mxu1 %v2561_v15 }
 0x21a   : > { %2445 = vmatprep.subr.bf16.mxu1 %v2588_v1 }
 0x21d   : > { %2446 = vmatpush3.bf16.msra.mxu1 %v2563_v17 }
 0x21e   : > { %2447 = vmatprep.subr.bf16.mxu1 %v2588_v1 }
 0x221   : > { %2448 = vmatpush3.bf16.msra.mxu1 %v2565_v19 }
 0x222   : > { %2449 = vmatprep.subr.bf16.mxu1 %v2588_v1 }
 0x225   : > { %2450 = vmatpush3.bf16.msra.mxu1 %v2567_v21 }
 0x288   : > { %v999_v25 = vpop.f32.mrf.mxu1 }
 0x289   : > { %v1000_v41 = vadd.f32 %v999_v25, %v2973_v60 }
 0x28a   : > { %v2333_v26 = vpop.f32.mrf.mxu1 }
 0x28c   : > { %v1002_v27 = vpop.f32.mrf.mxu1 }
 0x28e   : > { %v2334_v28 = vpop.f32.mrf.mxu1 }
 0x28f   : > { %v2137_v28 = vld [vmem:[%s3122_s9] ss:$0 sm:$0xff] }
 0x291   : > { %v1119_v29 = vpop.f32.mrf.mxu0 }
 0x292   : > { %v1125_v42 = vadd.f32 %v1119_v29, %v1000_v41 }
 0x293   : > { %v2353_v30 = vpop.f32.mrf.mxu0 }
 0x295   : > { %v1122_v31 = vpop.f32.mrf.mxu0 }
 0x297   : > { %v2354_v32 = vpop.f32.mrf.mxu0 }
 0x2a8   : > { %v1240_v33 = vpop.f32.mrf.mxu1 }
 0x2a9   : > { %v1246_v43 = vadd.f32 %v1240_v33, %v1125_v42 }
 0x2aa   : > { %v2373_v34 = vpop.f32.mrf.mxu1 }
 0x2ac   : > { %v1243_v35 = vpop.f32.mrf.mxu1 }
 0x2ae   : > { %v2374_v36 = vpop.f32.mrf.mxu1 }
 0x2b1   : > { %v1352_v37 = vpop.f32.mrf.mxu0 }
 0x2b2   : > { %v1358_v44 = vadd.f32 %v1352_v37, %v1246_v43 }
 0x2b3   : > { %v2393_v38 = vpop.f32.mrf.mxu0 }
 0x2b5   : > { %v1355_v39 = vpop.f32.mrf.mxu0 }
 0x2b7   : > { %v2394_v40 = vpop.f32.mrf.mxu0 }
 0x2c8   : > { %v1464_v45 = vpop.f32.mrf.mxu1 }
 0x2c9   : > { %v1470_v47 = vadd.f32 %v1464_v45, %v1358_v44 }
 0x2ca   : > { %v2413_v48 = vpop.f32.mrf.mxu1 }
 0x2cb   : > { %v1478_v49 = vadd.f32 %v2077_v46, %v1470_v47 }
 0x2cc   : > { %v1467_v50 = vpop.f32.mrf.mxu1 }
 0x2cd   : > { %v1479_v51 = vmax.f32 %v1478_v49, 0.0 }
 0x2ce   : > { %v2414_v52 = vpop.f32.mrf.mxu1 }
 0x2cf   : > { %v2141_v53 = vpack.c.bf16 %v1479_v51, %v1479_v51 }
 0x2d1   : > { %v1487_v54 = vshrl.u32 %v2141_v53, 16  ;;  %v1490_v56 = vshll.u32 %v2141_v53, 16 }
 0x2d3   : > { %v1489_v55 = vrot.slane %v1487_v54, 7 }
 0x2d5   : > { %v1492_v60 = vor.u32 %v1490_v56, %v1489_v55  ;;  %v1493_v61 = vrot.slane %v1489_v55, 4 }
 0x2d7   : > { %v1497_v62 = vsel %vm2748_vm3, %v1492_v60, %v1496_v57  ;;  %v1500_v63 = vsel %vm2848_vm7, %v1493_v61, %v1499_v59 }
 0x2d8   : > { %1498 = vst [vmem:[#allocation4] sm:$0xf] %v1497_v62  ;;  %1501 = vst [vmem:[#allocation4 + $0x4] sm:$0x1] %v1500_v63 }
 0x2df   : > { %v1502_v0 = vld [vmem:[#allocation4] sm:$0xf]  ;;  %v1519_v2 = vld [vmem:[#allocation4 + $0x4] sm:$0x1] }
 0x2e0   : > { %v2095_v3 = vcombine.low %v1502_v0, %v1519_v2  ;;  %2452 = vmatmul.mubr.bf16.vlgmr.msra.gmra.mxu1 %v1502_v0  ;;  %v1726_v13 = vld [vmem:[#allocation4] sm:$0xe] }
 0x2e1   : > { %v2128_v15 = vcombine.low %v1726_v13, %v1519_v2 }
 0x2e2   : > { %v1545_v4 = vshll.u32 %v2095_v3, 16  ;;  %v1543_v5 = vshrl.u32 %v2095_v3, 16 }
 0x2e3   : > { %v1747_v16 = vrot.slane %v2128_v15, 1 }
 0x2e4   : > { %v1547_v6 = vrot.slane %v1545_v4, 1 }
 0x2e6   : > { %v1548_v8 = vor.u32 %v1547_v6, %v1543_v5 }
 0x2e8   : > { %2432 = vmatmul.mubr.bf16.vlgmr.msra.gmra.mxu0 %v1548_v8 }
 0x2e9   : > { %2456 = vmatpush3.bf16.msra.mxu0 %v2572_v7  ;;  %2471 = vmatprep.mubr.msk.bf16.mxu0 %vm2589_vm0, %v2588_v1 }
 0x2ea   : > { %2457 = vmatprep.subr.bf16.mxu0 %v2588_v1 }
 0x2ed   : > { %2458 = vmatpush3.bf16.msra.mxu0 %v2573_v24 }
 0x2ee   : > { %2459 = vmatprep.subr.bf16.mxu0 %v2588_v1 }
 0x2f1   : > { %2460 = vmatpush3.bf16.msra.mxu0 %v2574_v58 }
 0x2f2   : > { %2461 = vmatprep.subr.bf16.mxu0 %v2588_v1 }
 0x2f5   : > { %2462 = vmatpush3.bf16.msra.mxu0 %v2575_v9 }
 0x2f6   : > { %2463 = vmatprep.subr.bf16.mxu0 %v2588_v1 }
 0x2f9   : > { %2464 = vmatpush3.bf16.msra.mxu0 %v2576_v10 }
 0x2fa   : > { %2465 = vmatprep.subr.bf16.mxu0 %v2588_v1 }
 0x2fd   : > { %2466 = vmatpush3.bf16.msra.mxu0 %v2577_v11 }
 0x2fe   : > { %2467 = vmatprep.subr.bf16.mxu0 %v2588_v1 }
 0x301   : > { %2468 = vmatpush3.bf16.msra.mxu0 %v2578_v12 }
 0x302   : > { %2469 = vmatprep.subr.bf16.mxu0 %v2588_v1 }
 0x305   : > { %2470 = vmatpush3.bf16.msra.mxu0 %v2579_v14 }
 0x308   : > { %2472 = vmatmul.mubr.bf16.vlgmr.msra.gmra.mxu0 %v1747_v16 }
 0x3a0   : > { %v1720_v17 = vpop.f32.mrf.mxu1 }
 0x3a2   : > { %v2453_v18 = vpop.f32.mrf.mxu1 }
 0x3a4   : > { %v1723_v19 = vpop.f32.mrf.mxu1 }
 0x3a6   : > { %v2454_v20 = vpop.f32.mrf.mxu1 }
 0x3a8   : > { %v1632_v21 = vpop.f32.mrf.mxu0 }
 0x3a9   : > { %v1721_v26 = vadd.f32 %v1720_v17, %v1632_v21 }
 0x3aa   : > { %v2433_v22 = vpop.f32.mrf.mxu0 }
 0x3ac   : > { %v1635_v23 = vpop.f32.mrf.mxu0 }
 0x3ae   : > { %v2434_v25 = vpop.f32.mrf.mxu0 }
 0x3c8   : > { %v1831_v27 = vpop.f32.mrf.mxu0 }
 0x3c9   : > { %v1837_v29 = vadd.f32 %v1831_v27, %v1721_v26 }
 0x3ca   : > { %v2473_v1 = vpop.f32.mrf.mxu0 }
 0x3cb   : > { %v1845_v30 = vadd.f32 %v2137_v28, %v1837_v29 }
 0x3cc   : > { %v1834_v31 = vpop.f32.mrf.mxu0 }
 0x3cd   : > { %v1846_v32 = vmax.f32 %v1845_v30, 0.0 }
 0x3ce   : > { %v2474_v33 = vpop.f32.mrf.mxu0 }
 0x3cf   : > { %v1847_v34 = vpack.c.bf16 %v1846_v32, %v1846_v32 }
 0x3d1   : > { %1848 = vst [vmem:[%s371_s22] sm:$0xf] %v1847_v34 }
 0x3d2 PF: > { %s20_s13 = sadd.s32 1, %s2586_s13  }
 0x3d3   : > { %p17_p4 = scmp.ge.s32.totalorder %s20_s13, 4  }
 0x3d5   :  { %19 = sbr.rel (!%p17_p4) target bundleno = 1 (0x1), region = 101 }

// kernel: forward.9
= control target key start
LH: loop header
LB: loop body
LE: loop exit
PB: predicated region body
PF: predicated region fallthrough
CT: control target
= control target key end

     0   :  { %s3021_s21 = smov 0   ;;  %s3560_s0 = inlined_call_operand.vmem [shape: bf16[2,8,128], index: 0, kind: input, shape index: {}]   ;;  %s3561_s1 = inlined_call_operand.vmem [shape: bf16[2,16,128], index: 1, kind: input, shape index: {}]   ;;  %s3562_s2 = inlined_call_operand.vmem [shape: bf16[2,128,128], index: 2, kind: input, shape index: {}]   ;;  %s3563_s3 = inlined_call_operand.vmem [shape: f32[1,128], index: 3, kind: input, shape index: {}]   ;;  %s3564_s4 = inlined_call_operand.vmem [shape: f32[2,16,8], index: 4, kind: input, shape index: {}]   ;;  %s3565_s5 = inlined_call_operand.vmem [shape: bf16[3,128,128], index: 5, kind: input, shape index: {}]   ;;  %s3566_s6 = inlined_call_operand.vmem [shape: bf16[3,128,128], index: 6, kind: input, shape index: {}]   ;;  %s3567_s7 = inlined_call_operand.vmem [shape: f32[1,128], index: 7, kind: input, shape index: {}]   ;;  %s3568_s8 = inlined_call_operand.vmem [shape: bf16[3,128,128], index: 8, kind: input, shape index: {}]   ;;  %s3569_s9 = inlined_call_operand.vmem [shape: f32[1,128], index: 9, kind: input, shape index: {}]   ;;  %s3570_s10 = inlined_call_operand.vmem [shape: bf16[128,48], index: 10, kind: input, shape index: {}]   ;;  %s3571_s11 = inlined_call_operand.vmem [shape: f32[1,48], index: 11, kind: input, shape index: {}]   ;;  %s3572_s12 = inlined_call_operand.vmem [shape: f32[2,16,48], index: 12, kind: output, shape index: {}]  }
   0x1 LB: > { %s2212_s22 = sadd.s32 4294967295, %s2951_s21   ;;  %p2216_p0 = scmp.ge.s32.totalorder %s2951_s21, 1  ;;  %s2951_s21 = sphi %s3021_s21, %s22_s21  }
   0x2   : > { %p371_p1 = scmp.lt.s32.totalorder %s2951_s21, 3 }
   0x4   : > { %p372_p2 = pnand %p2216_p0, %p371_p1 }
   0x5   : > { %p3051_p3 = scmp.lt.s32.totalorder (!%p372_p2), %s2212_s22, 1 }
   0x6   : > { %375 = sbr.rel (%p372_p2) target bundleno = 1186 (0x4a2), region = 68 }
   0xb   : > { %v2838_v0 = vld [vmem:[%s3562_s2 + $0x38] sm:$0xff]   ;;  %v2953_v1 = vmov 0.0   ;;  %v2840_v3 = vld [vmem:[%s3562_s2 + $0x30] sm:$0xff]   ;;  %vm2954_vm0 = vmmov 0   ;;  %v2955_v5 = vmov 0   ;;  %v2842_v6 = vld [vmem:[%s3562_s2 + $0x28] sm:$0xff]  }
   0xc   : > { %2577 = vmatprep.subr.bf16.mxu0 %v2953_v1  ;;  %2597 = vmatprep.subr.bf16.mxu1 %v2953_v1  ;;  %v2839_v2 = vld [vmem:[%s3562_s2 + $0x78] sm:$0xff]   ;;  %v2841_v4 = vld [vmem:[%s3562_s2 + $0x70] sm:$0xff]   ;;  %863 = vst [vmem:[#allocation3] sm:$0xf] %v2955_v5  ;;  %819 = vst [vmem:[#allocation2] sm:$0xf] %v2955_v5 }
   0xd   : > { %2578 = vmatpush3.bf16.msra.mxu0 %v2838_v0  ;;  %2593 = vmatprep.mubr.msk.bf16.mxu0 %vm2954_vm0, %v2953_v1  ;;  %820 = vst [vmem:[#allocation2 + $0x4] sm:$0xf] %v2955_v5  ;;  %821 = vst [vmem:[#allocation2 + $0x8] sm:$0x1] %v2955_v5  ;;  %v2843_v7 = vld [vmem:[%s3562_s2 + $0x68] sm:$0xff]   ;;  %s3581_s22 = smov (!%p3051_p3, %s2212_s22), 1 }
   0xe   : > { %2598 = vmatpush3.bf16.msra.mxu1 %v2839_v2  ;;  %2579 = vmatprep.subr.bf16.mxu0 %v2953_v1  ;;  %864 = vst [vmem:[#allocation3 + $0x4] sm:$0xf] %v2955_v5  ;;  %865 = vst [vmem:[#allocation3 + $0x8] sm:$0x1] %v2955_v5  ;;  %v2844_v8 = vld [vmem:[%s3562_s2 + $0x20] sm:$0xff]   ;;  %s2457_s20 = sshll.u32 %s3581_s22, 3 }
   0xf   : > { %2599 = vmatprep.subr.bf16.mxu1 %v2953_v1  ;;  %2613 = vmatprep.mubr.msk.bf16.mxu1 %vm2954_vm0, %v2953_v1  ;;  %1630 = vst [vmem:[#allocation4] sm:$0xf] %v2955_v5  ;;  %1631 = vst [vmem:[#allocation4 + $0x4] sm:$0xf] %v2955_v5  ;;  %v2845_v9 = vld [vmem:[%s3562_s2 + $0x60] sm:$0xff]   ;;  %s3081_s27 = scalar_lea.vmem %s3561_s1, %s2457_s20  ;;  %v2846_v10 = vld [vmem:[%s3562_s2 + $0x18] sm:$0xff]  }
  0x10   : > { %1632 = vst [vmem:[#allocation4 + $0x8] sm:$0x1] %v2955_v5  ;;  %v2847_v11 = vld [vmem:[%s3562_s2 + $0x58] sm:$0xff]   ;;  %vm851_vm1 = vcmask 1043456   ;;  %vm852_vm2 = vsmask.f32 7938 }
  0x11   : > { %2580 = vmatpush3.bf16.msra.mxu0 %v2840_v3  ;;  %v866_v12 = vld [vmem:[%s3081_s27] sm:$0xf]  ;;  %v2848_v13 = vld [vmem:[%s3562_s2 + $0x10] sm:$0xff]   ;;  %vm3099_vm3 = vmand %vm851_vm1, %vm852_vm2  ;;  %s2217_s24 = sshll.u32 %s3581_s22, 2  ;;  %vm647_vm4 = vcmask 64512   ;;  %vm858_vm8 = vcmask 1040384  }
  0x12   : > { %2600 = vmatpush3.bf16.msra.mxu1 %v2841_v4  ;;  %2581 = vmatprep.subr.bf16.mxu0 %v2953_v1  ;;  %v869_v14 = vshrl.u32 %v866_v12, 16  ;;  %v872_v15 = vshll.u32 %v866_v12, 16  ;;  %v2849_v16 = vld [vmem:[%s3562_s2 + $0x50] sm:$0xff]   ;;  %v2850_v20 = vld [vmem:[%s3562_s2 + $0x8] sm:$0xff]   ;;  %v2852_v24 = vld [vmem:[%s3562_s2] sm:$0xff]   ;;  %s420_s14 = scalar_lea.vmem %s3560_s0, %s2217_s24  ;;  %vm1407_vm11 = vcmask 1046528  }
  0x13   : > { %2601 = vmatprep.subr.bf16.mxu1 %v2953_v1  ;;  %v888_v19 = vld [vmem:[#allocation3] sm:$0xf]  ;;  %v2853_v25 = vld [vmem:[%s3562_s2 + $0x40] sm:$0xff]   ;;  %v2254_v27 = vld [vmem:[%s3564_s4 + $0x10] sm:$0xff]  ;;  %vm828_vm5 = vsmask.f32 256 }
  0x14   : > { %v3103_v18 = vrot.slane %v869_v14, 7  ;;  %v2851_v22 = vld [vmem:[%s3562_s2 + $0x48] sm:$0xff]   ;;  %v432_v26 = vld [vmem:[%s420_s14] sm:$0xf]  ;;  %v2255_v32 = vld [vmem:[%s3564_s4 + $0x18] sm:$0xff]  ;;  %s2458_s14 = sshll.u32 %s3581_s22, 4 }
  0x15   : > { %2582 = vmatpush3.bf16.msra.mxu0 %v2842_v6  ;;  %v537_v28 = vld [vmem:[%s3564_s4] sm:$0xff]  ;;  %v538_v30 = vld [vmem:[%s3564_s4 + $0x8] sm:$0xff]  ;;  %v2854_v33 = vld [vmem:[%s3566_s6 + $0x38] sm:$0xff]   ;;  %vm829_vm6 = vsmask.f32 4368  ;;  %s430_s19 = scalar_lea.vmem %s3572_s12, %s2458_s14  ;;  %vm2142_vm12 = vcmask 392192  }
  0x16   : > { %2602 = vmatpush3.bf16.msra.mxu1 %v2843_v7  ;;  %2583 = vmatprep.subr.bf16.mxu0 %v2953_v1  ;;  %v874_v21 = vor.u32 %v872_v15, %v3103_v18  ;;  %v2861_v35 = vld [vmem:[%s3565_s5 + $0x38] sm:$0xff]   ;;  %v2855_v39 = vld [vmem:[%s3566_s6 + $0x30] sm:$0xff]   ;;  %v2856_v43 = vld [vmem:[%s3566_s6 + $0x28] sm:$0xff]   ;;  %v875_v53 = vrot.slane %v3103_v18, 4  ;;  %vm1149_vm10 = vsmask.f32 7424 }
  0x17   : > { %2603 = vmatprep.subr.bf16.mxu1 %v2953_v1  ;;  %v2863_v41 = vld [vmem:[%s3565_s5 + $0x30] sm:$0xff]   ;;  %v2857_v44 = vld [vmem:[%s3566_s6 + $0x20] sm:$0xff]   ;;  %v2858_v45 = vld [vmem:[%s3566_s6 + $0x18] sm:$0xff]  }
  0x18   : > { %v889_v23 = vsel %vm3099_vm3, %v874_v21, %v888_v19  ;;  %v2859_v46 = vld [vmem:[%s3566_s6 + $0x10] sm:$0xff]   ;;  %v2860_v47 = vld [vmem:[%s3566_s6 + $0x8] sm:$0xff]   ;;  %v2862_v48 = vld [vmem:[%s3566_s6] sm:$0xff]  }
  0x19   : > { %2584 = vmatpush3.bf16.msra.mxu0 %v2844_v8  ;;  %890 = vst [vmem:[#allocation3] sm:$0xf] %v889_v23  ;;  %v867_v49 = vld [vmem:[%s3081_s27 + $0x4] sm:$0xf]  ;;  %vm3194_vm7 = vmor %vm828_vm5, %vm829_vm6  ;;  %v2865_v58 = vld [vmem:[%s3565_s5 + $0x78] sm:$0xff]  }
  0x1a   : > { %2604 = vmatpush3.bf16.msra.mxu1 %v2845_v9  ;;  %2585 = vmatprep.subr.bf16.mxu0 %v2953_v1  ;;  %v877_v50 = vshrl.u32 %v867_v49, 16  ;;  %v880_v52 = vshll.u32 %v867_v49, 16  ;;  %v2866_v59 = vld [vmem:[%s3565_s5 + $0x28] sm:$0xff]   ;;  %v2867_v60 = vld [vmem:[%s3565_s5 + $0x70] sm:$0xff]   ;;  %v2868_v61 = vld [vmem:[%s3565_s5 + $0x20] sm:$0xff]  }
  0x1b   : > { %2605 = vmatprep.subr.bf16.mxu1 %v2953_v1  ;;  %v2869_v62 = vld [vmem:[%s3565_s5 + $0x68] sm:$0xff]   ;;  %v2870_v63 = vld [vmem:[%s3565_s5 + $0x18] sm:$0xff]   ;;  %v2871_v2 = vld [vmem:[%s3565_s5 + $0x60] sm:$0xff]  }
  0x1c   : > { %v879_v51 = vrot.slane %v877_v50, 7  ;;  %v2872_v3 = vld [vmem:[%s3565_s5 + $0x10] sm:$0xff]   ;;  %vm3233_vm9 = vmand %vm858_vm8, %vm828_vm5  ;;  %v2873_v7 = vld [vmem:[%s3565_s5 + $0x58] sm:$0xff]  }
  0x1d   : > { %2586 = vmatpush3.bf16.msra.mxu0 %v2846_v10  ;;  %v892_v5 = vld [vmem:[#allocation3 + $0x8] sm:$0x1]  ;;  %v2874_v8 = vld [vmem:[%s3565_s5 + $0x8] sm:$0xff]   ;;  %v2876_v10 = vld [vmem:[%s3565_s5] sm:$0xff]  }
  0x1e   : > { %2606 = vmatpush3.bf16.msra.mxu1 %v2847_v11  ;;  %2587 = vmatprep.subr.bf16.mxu0 %v2953_v1  ;;  %v882_v54 = vor.u32 %v880_v52, %v879_v51  ;;  %v884_v0 = vrot.slane %v879_v51, 4  ;;  %v2875_v9 = vld [vmem:[%s3565_s5 + $0x50] sm:$0xff]   ;;  %v2877_v11 = vld [vmem:[%s3565_s5 + $0x48] sm:$0xff]   ;;  %v2880_v12 = vld [vmem:[%s3565_s5 + $0x40] sm:$0xff]  }
  0x1f   : > { %2607 = vmatprep.subr.bf16.mxu1 %v2953_v1  ;;  %v2260_v15 = vld [vmem:[%s3563_s3] ss:$0 sm:$0xff]  ;;  %v2885_v51 = vld [vmem:[%s3566_s6 + $0x68] sm:$0xff]   ;;  %v2928_v4 = vld [vmem:[%s3568_s8 + $0xb8] sm:$0xff]  }
  0x20   : > { %v883_v56 = vsel %vm3194_vm7, %v875_v53, %v882_v54  ;;  %v893_v6 = vsel %vm3233_vm9, %v884_v0, %v892_v5  ;;  %v2884_v54 = vld [vmem:[%s3565_s5 + $0xb8] sm:$0xff]   ;;  %v2891_v0 = vld [vmem:[%s3566_s6 + $0x50] sm:$0xff]   ;;  %v2890_v5 = vld [vmem:[%s3565_s5 + $0xa0] sm:$0xff]  }
  0x21   : > { %2588 = vmatpush3.bf16.msra.mxu0 %v2848_v13  ;;  %891 = vst [vmem:[#allocation3 + $0x4] sm:$0xf] %v883_v56  ;;  %894 = vst [vmem:[#allocation3 + $0x8] sm:$0x1] %v893_v6  ;;  %v2893_v6 = vld [vmem:[%s3566_s6 + $0x48] sm:$0xff]  }
  0x22   : > { %2608 = vmatpush3.bf16.msra.mxu1 %v2849_v16  ;;  %2589 = vmatprep.subr.bf16.mxu0 %v2953_v1 }
  0x23   : > { %2609 = vmatprep.subr.bf16.mxu1 %v2953_v1 }
  0x25   : > { %2590 = vmatpush3.bf16.msra.mxu0 %v2850_v20 }
  0x26   : > { %2610 = vmatpush3.bf16.msra.mxu1 %v2851_v22  ;;  %2591 = vmatprep.subr.bf16.mxu0 %v2953_v1 }
  0x27   : > { %2611 = vmatprep.subr.bf16.mxu1 %v2953_v1 }
  0x28   : > { %v2864_v57 = vld [vmem:[#allocation3] sm:$0xff]  }
  0x29   : > { %2592 = vmatpush3.bf16.msra.mxu0 %v2852_v24 }
  0x2a   : > { %2612 = vmatpush3.bf16.msra.mxu1 %v2853_v25 }
  0x2c   : > { %2594 = vmatmul.mubr.bf16.vlgmr.msra.gmra.mxu0 %v432_v26 }
  0x2d   : > { %2614 = vmatmul.mubr.bf16.vlgmr.msra.gmra.mxu1 %v432_v26  ;;  %2619 = vmatprep.mubr.msk.f32.mxu0 %vm647_vm4, %v2254_v27 }
  0x2e   : > { %2624 = vmatprep.mubr.msk.f32.mxu1 %vm647_vm4, %v537_v28  ;;  %v860_v28 = vld [vmem:[#allocation2 + $0x8] sm:$0x1] }
  0xec   : > { %v531_v29 = vpop.f32.mrf.mxu0 }
  0xed   : > { %v638_v31 = vpop.f32.mrf.mxu1  ;;  %2622 = vmatprep.subr.mxu1 %v531_v29 }
  0xee   : > { %2617 = vmatprep.subr.mxu0 %v638_v31  ;;  %v2595_v34 = vpop.f32.mrf.mxu0  ;;  %2623 = vmatpush3.msra.mxu1 %v531_v29 }
  0xef   : > { %v2615_v36 = vpop.f32.mrf.mxu1  ;;  %2618 = vmatpush3.msra.mxu0 %v638_v31  ;;  %2625 = vmatmul.mubr.msk.f32.vlgmr.msra.gmra.mxu1 %vm647_vm4, %v538_v30 }
  0xf0   : > { %2620 = vmatmul.mubr.msk.f32.vlgmr.msra.gmra.mxu0 %vm647_vm4, %v2255_v32  ;;  %v534_v37 = vpop.f32.mrf.mxu0  ;;  %2627 = vmatprep.subr.bf16.mxu0 %v2953_v1 }
  0xf1   : > { %v641_v38 = vpop.f32.mrf.mxu1  ;;  %2628 = vmatpush3.bf16.msra.mxu0 %v2854_v33  ;;  %2647 = vmatprep.subr.bf16.mxu1 %v2953_v1  ;;  %v854_v33 = vld [vmem:[#allocation2] sm:$0xf] }
  0xf2   : > { %v2596_v40 = vpop.f32.mrf.mxu0  ;;  %2629 = vmatprep.subr.bf16.mxu0 %v2953_v1  ;;  %2648 = vmatpush3.bf16.msra.mxu1 %v2861_v35 }
  0xf3   : > { %v2616_v42 = vpop.f32.mrf.mxu1  ;;  %2649 = vmatprep.subr.bf16.mxu1 %v2953_v1  ;;  %2643 = vmatprep.mubr.msk.bf16.mxu0 %vm2954_vm0, %v2953_v1  ;;  %v2879_v40 = vld [vmem:[%s3566_s6 + $0x78] sm:$0xff]  }
  0xf4   : > { %2663 = vmatprep.mubr.msk.bf16.mxu1 %vm2954_vm0, %v2953_v1 }
  0xf5   : > { %2630 = vmatpush3.bf16.msra.mxu0 %v2855_v39 }
  0xf6   : > { %2631 = vmatprep.subr.bf16.mxu0 %v2953_v1  ;;  %2650 = vmatpush3.bf16.msra.mxu1 %v2863_v41 }
  0xf7   : > { %2651 = vmatprep.subr.bf16.mxu1 %v2953_v1 }
  0xf9   : > { %2632 = vmatpush3.bf16.msra.mxu0 %v2856_v43 }
  0xfa   : > { %2633 = vmatprep.subr.bf16.mxu0 %v2953_v1  ;;  %2652 = vmatpush3.bf16.msra.mxu1 %v2866_v59  ;;  %v1254_v59 = vld [vmem:[#allocation3] sm:$0xf] }
  0xfb   : > { %2653 = vmatprep.subr.bf16.mxu1 %v2953_v1 }
  0xfd   : > { %2634 = vmatpush3.bf16.msra.mxu0 %v2857_v44 }
  0xfe   : > { %2635 = vmatprep.subr.bf16.mxu0 %v2953_v1  ;;  %2654 = vmatpush3.bf16.msra.mxu1 %v2868_v61  ;;  %v2889_v61 = vld [vmem:[%s3566_s6 + $0x58] sm:$0xff]  }
  0xff   : > { %2655 = vmatprep.subr.bf16.mxu1 %v2953_v1 }
 0x101   : > { %2636 = vmatpush3.bf16.msra.mxu0 %v2858_v45 }
 0x102   : > { %2637 = vmatprep.subr.bf16.mxu0 %v2953_v1  ;;  %2656 = vmatpush3.bf16.msra.mxu1 %v2870_v63  ;;  %v2888_v63 = vld [vmem:[%s3565_s5 + $0xa8] sm:$0xff]  }
 0x103   : > { %2657 = vmatprep.subr.bf16.mxu1 %v2953_v1 }
 0x105   : > { %2638 = vmatpush3.bf16.msra.mxu0 %v2859_v46  ;;  %v2881_v46 = vld [vmem:[%s3566_s6 + $0x70] sm:$0xff]  }
 0x106   : > { %2639 = vmatprep.subr.bf16.mxu0 %v2953_v1  ;;  %2658 = vmatpush3.bf16.msra.mxu1 %v2872_v3 }
 0x107   : > { %2659 = vmatprep.subr.bf16.mxu1 %v2953_v1 }
 0x109   : > { %2640 = vmatpush3.bf16.msra.mxu0 %v2860_v47 }
 0x10a   : > { %2641 = vmatprep.subr.bf16.mxu0 %v2953_v1  ;;  %2660 = vmatpush3.bf16.msra.mxu1 %v2874_v8 }
 0x10b   : > { %2661 = vmatprep.subr.bf16.mxu1 %v2953_v1 }
 0x10d   : > { %2642 = vmatpush3.bf16.msra.mxu0 %v2862_v48 }
 0x10e   : > { %2667 = vmatprep.subr.bf16.mxu0 %v2953_v1  ;;  %2662 = vmatpush3.bf16.msra.mxu1 %v2876_v10  ;;  %v2892_v10 = vld [vmem:[%s3565_s5 + $0x98] sm:$0xff]  }
 0x10f   : > { %2687 = vmatprep.subr.bf16.mxu1 %v2953_v1 }
 0x110   : > { %2644 = vmatmul.mubr.bf16.vlgmr.msra.gmra.mxu0 %v2864_v57  ;;  %v2887_v57 = vld [vmem:[%s3566_s6 + $0x60] sm:$0xff]  }
 0x111   : > { %2668 = vmatpush3.bf16.msra.mxu0 %v2865_v58  ;;  %2683 = vmatprep.mubr.msk.bf16.mxu0 %vm2954_vm0, %v2953_v1  ;;  %v2886_v58 = vld [vmem:[%s3565_s5 + $0xb0] sm:$0xff]  }
 0x112   : > { %2669 = vmatprep.subr.bf16.mxu0 %v2953_v1 }
 0x115   : > { %2670 = vmatpush3.bf16.msra.mxu0 %v2867_v60  ;;  %v3304_v60 = vld [vmem:[#allocation3 + $0x4] sm:$0xf] }
 0x116   : > { %2671 = vmatprep.subr.bf16.mxu0 %v2953_v1 }
 0x119   : > { %2672 = vmatpush3.bf16.msra.mxu0 %v2869_v62  ;;  %v2323_v62 = vcombine.low %v1254_v59, %v3304_v60 }
 0x11a   : > { %2673 = vmatprep.subr.bf16.mxu0 %v2953_v1 }
 0x11b   : > { %v1285_v3 = vshll.u32 %v2323_v62, 16 }
 0x11d   : > { %2674 = vmatpush3.bf16.msra.mxu0 %v2871_v2  ;;  %v3321_v2 = vld [vmem:[#allocation3 + $0x8] ss:$0 sps:$4 sm:$0x11]   ;;  %v1287_v8 = vrot.slane %v1285_v3, 1 }
 0x11e   : > { %2675 = vmatprep.subr.bf16.mxu0 %v2953_v1 }
 0x121   : > { %2676 = vmatpush3.bf16.msra.mxu0 %v2873_v7  ;;  %v1283_v7 = vshrl.u32 %v2323_v62, 16 }
 0x122   : > { %2677 = vmatprep.subr.bf16.mxu0 %v2953_v1 }
 0x125   : > { %2678 = vmatpush3.bf16.msra.mxu0 %v2875_v9  ;;  %v1290_v9 = vshll.u32 %v3321_v2, 16 }
 0x126   : > { %2679 = vmatprep.subr.bf16.mxu0 %v2953_v1 }
 0x129   : > { %2680 = vmatpush3.bf16.msra.mxu0 %v2877_v11  ;;  %v2895_v11 = vld [vmem:[%s3566_s6 + $0x40] sm:$0xff]  }
 0x12a   : > { %2681 = vmatprep.subr.bf16.mxu0 %v2953_v1 }
 0x12d   : > { %2682 = vmatpush3.bf16.msra.mxu0 %v2880_v12  ;;  %v1288_v12 = vor.u32 %v1287_v8, %v1283_v7 }
 0x12e   : > { %2707 = vmatprep.subr.bf16.mxu0 %v2953_v1 }
 0x1af   : > { %v2626_v13 = vpop.f32.mrf.mxu1 }
 0x1b0   : > { %v2621_v14 = vpop.f32.mrf.mxu0 }
 0x1b1   : > { %v807_v16 = vadd.f32 %v2626_v13, %v2621_v14  ;;  %v801_v18 = vpop.f32.mrf.mxu1  ;;  %v1292_v13 = vrot.slane %v1290_v9, 1  ;;  %v2894_v14 = vld [vmem:[%s3565_s5 + $0x90] sm:$0xff]  }
 0x1b2   : > { %v720_v19 = vpop.f32.mrf.mxu0 }
 0x1b3   : > { %v818_v20 = vadd.f32 %v2260_v15, %v807_v16  ;;  %v802_v21 = vadd.f32 %v801_v18, %v720_v19  ;;  %v2899_v16 = vld [vmem:[%s3566_s6 + $0xb8] sm:$0xff]   ;;  %v2898_v19 = vld [vmem:[%s3565_s5 + $0x88] sm:$0xff]  }
 0x1b5   : > { %v2460_v22 = vpack.c.bf16 %v818_v20, %v818_v20  ;;  %v817_v23 = vadd.f32 %v2260_v15, %v802_v21  ;;  %v1293_v15 = vsel %vm1149_vm10, %v1288_v12, %v1292_v13  ;;  %v2901_v21 = vld [vmem:[%s3566_s6 + $0xb0] sm:$0xff]  }
 0x1b7   : > { %v840_v24 = vshrl.u32 %v2460_v22, 16  ;;  %v2459_v25 = vpack.c.bf16 %v817_v23, %v817_v23  ;;  %v843_v29 = vshll.u32 %v2460_v22, 16  ;;  %v2900_v22 = vld [vmem:[%s3565_s5 + $0x80] sm:$0xff]  }
 0x1b9   : > { %v842_v26 = vrot.slane %v840_v24, 7  ;;  %v832_v27 = vshrl.u32 %v2459_v25, 16  ;;  %v835_v32 = vshll.u32 %v2459_v25, 16  ;;  %v2903_v24 = vld [vmem:[%s3566_s6 + $0xa8] sm:$0xff]  }
 0x1bb   : > { %v847_v30 = vrot.slane %v842_v26, 4  ;;  %v834_v31 = vrot.slane %v832_v27, 7  ;;  %v845_v34 = vor.u32 %v843_v29, %v842_v26 }
 0x1bd   : > { %v861_v35 = vsel %vm3233_vm9, %v847_v30, %v860_v28  ;;  %v837_v36 = vor.u32 %v835_v32, %v834_v31  ;;  %v838_v37 = vrot.slane %v834_v31, 4  ;;  %v2904_v28 = vld [vmem:[%s3566_s6 + $0xa0] sm:$0xff]   ;;  %v2905_v30 = vld [vmem:[%s3566_s6 + $0x98] sm:$0xff]   ;;  %v2906_v31 = vld [vmem:[%s3566_s6 + $0x90] sm:$0xff]  }
 0x1be   : > { %862 = vst [vmem:[#allocation2 + $0x8] sm:$0x1] %v861_v35  ;;  %v1503_v32 = vld [vmem:[#allocation3] sm:$0xe]  ;;  %v2908_v35 = vld [vmem:[%s3566_s6 + $0x80] sm:$0xff]  }
 0x1bf   : > { %v846_v38 = vsel %vm3194_vm7, %v838_v37, %v845_v34  ;;  %v855_v39 = vsel %vm3099_vm3, %v837_v36, %v854_v33  ;;  %v2907_v33 = vld [vmem:[%s3566_s6 + $0x88] sm:$0xff]   ;;  %v2374_v34 = vcombine.low %v1503_v32, %v3304_v60  ;;  %v1525_v37 = vrot.slane %v3321_v2, 1 }
 0x1c0   : > { %856 = vst [vmem:[#allocation2] sm:$0xf] %v855_v39  ;;  %857 = vst [vmem:[#allocation2 + $0x4] sm:$0xf] %v846_v38 }
 0x1c1   : > { %v1524_v36 = vrot.slane %v2374_v34, 1 }
 0x1c3   : > { %v1526_v38 = vsel %vm1407_vm11, %v1524_v36, %v1525_v37  ;;  %v1659_v37 = vld [vmem:[#allocation4] sm:$0xf] }
 0x1c5   : > { %v3277_v41 = vld [vmem:[#allocation2 + $0x8] ss:$0 sps:$4 sm:$0x11]  }
 0x1c6   : > { %v1158_v48 = vshll.u32 %v3277_v41, 16  ;;  %v1409_v25 = vrot.slane %v3277_v41, 1  ;;  %v2910_v41 = vld [vmem:[%s3568_s8 + $0x38] sm:$0xff]  }
 0x1c7   : > { %v2878_v42 = vld [vmem:[#allocation2] sm:$0xff]  }
 0x1c8   : > { %v1121_v43 = vld [vmem:[#allocation2] sm:$0xf]  ;;  %v3279_v44 = vld [vmem:[#allocation2 + $0x4] sm:$0xf]  ;;  %2664 = vmatmul.mubr.bf16.vlgmr.msra.gmra.mxu1 %v2878_v42  ;;  %v1160_v53 = vrot.slane %v1158_v48, 1  ;;  %v2911_v42 = vld [vmem:[%s3568_s8 + $0x30] sm:$0xff]  }
 0x1c9   : > { %v2297_v45 = vcombine.low %v1121_v43, %v3279_v44  ;;  %2688 = vmatpush3.bf16.msra.mxu1 %v2879_v40  ;;  %2703 = vmatprep.mubr.msk.bf16.mxu1 %vm2954_vm0, %v2953_v1  ;;  %v1386_v18 = vld [vmem:[#allocation2] sm:$0xe]  ;;  %v2912_v43 = vld [vmem:[%s3568_s8 + $0x78] sm:$0xff]  }
 0x1ca   : > { %2689 = vmatprep.subr.bf16.mxu1 %v2953_v1  ;;  %v2349_v20 = vcombine.low %v1386_v18, %v3279_v44  ;;  %v2913_v44 = vld [vmem:[%s3568_s8 + $0x28] sm:$0xff]   ;;  %v2917_v48 = vld [vmem:[%s3568_s8 + $0x18] sm:$0xff]  }
 0x1cb   : > { %v1153_v47 = vshll.u32 %v2297_v45, 16  ;;  %v1151_v49 = vshrl.u32 %v2297_v45, 16  ;;  %v2914_v45 = vld [vmem:[%s3568_s8 + $0x70] sm:$0xff]  }
 0x1cc   : > { %v1408_v23 = vrot.slane %v2349_v20, 1  ;;  %v2383_v20 = vld [vmem:[%s3567_s7] ss:$0 sm:$0xff] }
 0x1cd   : > { %v1155_v50 = vrot.slane %v1153_v47, 1  ;;  %2690 = vmatpush3.bf16.msra.mxu1 %v2881_v46  ;;  %v2915_v46 = vld [vmem:[%s3568_s8 + $0x20] sm:$0xff]   ;;  %v2916_v47 = vld [vmem:[%s3568_s8 + $0x68] sm:$0xff]  }
 0x1ce   : > { %2691 = vmatprep.subr.bf16.mxu1 %v2953_v1  ;;  %v1410_v26 = vsel %vm1407_vm11, %v1408_v23, %v1409_v25 }
 0x1cf   : > { %v1156_v52 = vor.u32 %v1155_v50, %v1151_v49  ;;  %v2918_v49 = vld [vmem:[%s3568_s8 + $0x60] sm:$0xff]   ;;  %v2919_v50 = vld [vmem:[%s3568_s8 + $0x10] sm:$0xff]  }
 0x1d0   : > { %v3372_v27 = vpop.f32.mrf.mxu0 }
 0x1d1   : > { %v1161_v56 = vsel %vm1149_vm10, %v1156_v52, %v1160_v53  ;;  %2692 = vmatpush3.bf16.msra.mxu1 %v2885_v51  ;;  %v2920_v51 = vld [vmem:[%s3568_s8 + $0x58] sm:$0xff]   ;;  %v2921_v52 = vld [vmem:[%s3568_s8 + $0x8] sm:$0xff]   ;;  %v2922_v53 = vld [vmem:[%s3568_s8 + $0x50] sm:$0xff]  }
 0x1d2   : > { %2684 = vmatmul.mubr.bf16.vlgmr.msra.gmra.mxu0 %v1161_v56  ;;  %2693 = vmatprep.subr.bf16.mxu1 %v2953_v1  ;;  %v2645_v29 = vpop.f32.mrf.mxu0  ;;  %v2924_v56 = vld [vmem:[%s3568_s8 + $0x48] sm:$0xff]  }
 0x1d3   : > { %2708 = vmatpush3.bf16.msra.mxu0 %v2884_v54  ;;  %2723 = vmatprep.mubr.msk.bf16.mxu0 %vm2954_vm0, %v2953_v1  ;;  %v2923_v54 = vld [vmem:[%s3568_s8] sm:$0xff]  }
 0x1d4   : > { %2709 = vmatprep.subr.bf16.mxu0 %v2953_v1  ;;  %v3399_v39 = vpop.f32.mrf.mxu0 }
 0x1d5   : > { %2694 = vmatpush3.bf16.msra.mxu1 %v2887_v57  ;;  %v2926_v57 = vld [vmem:[%s3568_s8 + $0x40] sm:$0xff]  }
 0x1d6   : > { %2695 = vmatprep.subr.bf16.mxu1 %v2953_v1  ;;  %v2646_v40 = vpop.f32.mrf.mxu0 }
 0x1d7   : > { %2710 = vmatpush3.bf16.msra.mxu0 %v2886_v58 }
 0x1d8   : > { %2711 = vmatprep.subr.bf16.mxu0 %v2953_v1 }
 0x1d9   : > { %2696 = vmatpush3.bf16.msra.mxu1 %v2889_v61 }
 0x1da   : > { %2697 = vmatprep.subr.bf16.mxu1 %v2953_v1 }
 0x1db   : > { %2712 = vmatpush3.bf16.msra.mxu0 %v2888_v63 }
 0x1dc   : > { %2713 = vmatprep.subr.bf16.mxu0 %v2953_v1 }
 0x1dd   : > { %2698 = vmatpush3.bf16.msra.mxu1 %v2891_v0 }
 0x1de   : > { %2699 = vmatprep.subr.bf16.mxu1 %v2953_v1 }
 0x1df   : > { %2714 = vmatpush3.bf16.msra.mxu0 %v2890_v5 }
 0x1e0   : > { %2715 = vmatprep.subr.bf16.mxu0 %v2953_v1 }
 0x1e1   : > { %2700 = vmatpush3.bf16.msra.mxu1 %v2893_v6 }
 0x1e2   : > { %2701 = vmatprep.subr.bf16.mxu1 %v2953_v1 }
 0x1e3   : > { %2716 = vmatpush3.bf16.msra.mxu0 %v2892_v10 }
 0x1e4   : > { %2717 = vmatprep.subr.bf16.mxu0 %v2953_v1 }
 0x1e5   : > { %2702 = vmatpush3.bf16.msra.mxu1 %v2895_v11 }
 0x1e6   : > { %2727 = vmatprep.subr.bf16.mxu1 %v2953_v1 }
 0x1e7   : > { %2718 = vmatpush3.bf16.msra.mxu0 %v2894_v14 }
 0x1e8   : > { %2719 = vmatprep.subr.bf16.mxu0 %v2953_v1  ;;  %2704 = vmatmul.mubr.bf16.vlgmr.msra.gmra.mxu1 %v1293_v15 }
 0x1e9   : > { %2728 = vmatpush3.bf16.msra.mxu1 %v2899_v16  ;;  %2743 = vmatprep.mubr.msk.bf16.mxu1 %vm2954_vm0, %v2953_v1 }
 0x1ea   : > { %2729 = vmatprep.subr.bf16.mxu1 %v2953_v1 }
 0x1eb   : > { %2720 = vmatpush3.bf16.msra.mxu0 %v2898_v19 }
 0x1ec   : > { %2721 = vmatprep.subr.bf16.mxu0 %v2953_v1 }
 0x1ed   : > { %2730 = vmatpush3.bf16.msra.mxu1 %v2901_v21 }
 0x1ee   : > { %2731 = vmatprep.subr.bf16.mxu1 %v2953_v1 }
 0x1ef   : > { %2722 = vmatpush3.bf16.msra.mxu0 %v2900_v22 }
 0x1f0   : > { %2747 = vmatprep.subr.bf16.mxu0 %v2953_v1 }
 0x1f1   : > { %2732 = vmatpush3.bf16.msra.mxu1 %v2903_v24 }
 0x1f2   : > { %2724 = vmatmul.mubr.bf16.vlgmr.msra.gmra.mxu0 %v1410_v26  ;;  %2733 = vmatprep.subr.bf16.mxu1 %v2953_v1 }
 0x1f3   : > { %2763 = vmatprep.mubr.msk.bf16.mxu0 %vm2954_vm0, %v2953_v1  ;;  %2748 = vmatpush3.bf16.msra.mxu0 %v2912_v43  ;;  %v1663_v43 = vld [vmem:[#allocation4 + $0x8] sm:$0x1] }
 0x1f4   : > { %2749 = vmatprep.subr.bf16.mxu0 %v2953_v1 }
 0x1f5   : > { %2734 = vmatpush3.bf16.msra.mxu1 %v2904_v28 }
 0x1f6   : > { %2735 = vmatprep.subr.bf16.mxu1 %v2953_v1 }
 0x1f7   : > { %2750 = vmatpush3.bf16.msra.mxu0 %v2914_v45 }
 0x1f8   : > { %2751 = vmatprep.subr.bf16.mxu0 %v2953_v1 }
 0x1f9   : > { %2736 = vmatpush3.bf16.msra.mxu1 %v2905_v30 }
 0x1fa   : > { %2737 = vmatprep.subr.bf16.mxu1 %v2953_v1 }
 0x1fb   : > { %2752 = vmatpush3.bf16.msra.mxu0 %v2916_v47 }
 0x1fc   : > { %2753 = vmatprep.subr.bf16.mxu0 %v2953_v1 }
 0x1fd   : > { %2738 = vmatpush3.bf16.msra.mxu1 %v2906_v31 }
 0x1fe   : > { %2739 = vmatprep.subr.bf16.mxu1 %v2953_v1 }
 0x1ff   : > { %2754 = vmatpush3.bf16.msra.mxu0 %v2918_v49 }
 0x200   : > { %2755 = vmatprep.subr.bf16.mxu0 %v2953_v1 }
 0x201   : > { %2740 = vmatpush3.bf16.msra.mxu1 %v2907_v33 }
 0x202   : > { %2741 = vmatprep.subr.bf16.mxu1 %v2953_v1 }
 0x203   : > { %2756 = vmatpush3.bf16.msra.mxu0 %v2920_v51 }
 0x204   : > { %2757 = vmatprep.subr.bf16.mxu0 %v2953_v1 }
 0x205   : > { %2742 = vmatpush3.bf16.msra.mxu1 %v2908_v35 }
 0x206   : > { %2767 = vmatprep.subr.bf16.mxu1 %v2953_v1 }
 0x207   : > { %2758 = vmatpush3.bf16.msra.mxu0 %v2922_v53 }
 0x208   : > { %2744 = vmatmul.mubr.bf16.vlgmr.msra.gmra.mxu1 %v1526_v38  ;;  %2759 = vmatprep.subr.bf16.mxu0 %v2953_v1 }
 0x209   : > { %2783 = vmatprep.mubr.msk.bf16.mxu1 %vm2954_vm0, %v2953_v1  ;;  %2768 = vmatpush3.bf16.msra.mxu1 %v2910_v41 }
 0x20a   : > { %2769 = vmatprep.subr.bf16.mxu1 %v2953_v1 }
 0x20b   : > { %2760 = vmatpush3.bf16.msra.mxu0 %v2924_v56 }
 0x20c   : > { %2761 = vmatprep.subr.bf16.mxu0 %v2953_v1 }
 0x20d   : > { %2770 = vmatpush3.bf16.msra.mxu1 %v2911_v42 }
 0x20e   : > { %2771 = vmatprep.subr.bf16.mxu1 %v2953_v1 }
 0x20f   : > { %2762 = vmatpush3.bf16.msra.mxu0 %v2926_v57 }
 0x210   : > { %2787 = vmatprep.subr.bf16.mxu0 %v2953_v1 }
 0x211   : > { %2772 = vmatpush3.bf16.msra.mxu1 %v2913_v44 }
 0x212   : > { %2773 = vmatprep.subr.bf16.mxu1 %v2953_v1 }
 0x215   : > { %2774 = vmatpush3.bf16.msra.mxu1 %v2915_v46 }
 0x216   : > { %2775 = vmatprep.subr.bf16.mxu1 %v2953_v1 }
 0x219   : > { %2776 = vmatpush3.bf16.msra.mxu1 %v2917_v48 }
 0x21a   : > { %2777 = vmatprep.subr.bf16.mxu1 %v2953_v1 }
 0x21d   : > { %2778 = vmatpush3.bf16.msra.mxu1 %v2919_v50 }
 0x21e   : > { %2779 = vmatprep.subr.bf16.mxu1 %v2953_v1 }
 0x221   : > { %2780 = vmatpush3.bf16.msra.mxu1 %v2921_v52 }
 0x222   : > { %2781 = vmatprep.subr.bf16.mxu1 %v2953_v1 }
 0x225   : > { %2782 = vmatpush3.bf16.msra.mxu1 %v2923_v54 }
 0x226   : > { %2807 = vmatprep.subr.bf16.mxu1 %v2953_v1 }
 0x288   : > { %v1114_v58 = vpop.f32.mrf.mxu1 }
 0x289   : > { %v1115_v12 = vadd.f32 %v1114_v58, %v3372_v27 }
 0x28a   : > { %v2665_v59 = vpop.f32.mrf.mxu1 }
 0x28b   : > { %v2929_v59 = vld [vmem:[%s3568_s8 + $0xb0] sm:$0xff]  }
 0x28c   : > { %v1117_v60 = vpop.f32.mrf.mxu1 }
 0x28d   : > { %v1118_v14 = vadd.f32 %v1117_v60, %v3399_v39  ;;  %v2930_v60 = vld [vmem:[%s3568_s8 + $0xa8] sm:$0xff]  }
 0x28e   : > { %v2666_v61 = vpop.f32.mrf.mxu1 }
 0x28f   : > { %v2931_v61 = vld [vmem:[%s3568_s8 + $0xa0] sm:$0xff]  }
 0x292   : > { %v1245_v62 = vpop.f32.mrf.mxu0 }
 0x293   : > { %v1252_v13 = vadd.f32 %v1245_v62, %v1115_v12  ;;  %v2932_v62 = vld [vmem:[%s3568_s8 + $0x98] sm:$0xff]   ;;  %v2940_v12 = vld [vmem:[%s3570_s10 + $0x20] sm:$0xff]  }
 0x294   : > { %v2685_v63 = vpop.f32.mrf.mxu0 }
 0x295   : > { %v2933_v63 = vld [vmem:[%s3568_s8 + $0x90] sm:$0xff]  }
 0x296   : > { %v1248_v0 = vpop.f32.mrf.mxu0 }
 0x297   : > { %v1253_v16 = vadd.f32 %v1248_v0, %v1118_v14  ;;  %v2934_v0 = vld [vmem:[%s3568_s8 + $0x88] sm:$0xff]   ;;  %v2942_v14 = vld [vmem:[%s3570_s10 + $0x10] sm:$0xff]  }
 0x298   : > { %v2686_v2 = vpop.f32.mrf.mxu0 }
 0x2a8   : > { %v1377_v3 = vpop.f32.mrf.mxu1 }
 0x2a9   : > { %v1384_v15 = vadd.f32 %v1377_v3, %v1252_v13  ;;  %v2941_v13 = vld [vmem:[%s3570_s10 + $0x18] sm:$0xff]  }
 0x2aa   : > { %v2705_v5 = vpop.f32.mrf.mxu1 }
 0x2ab   : > { %v2935_v5 = vld [vmem:[%s3568_s8 + $0x80] sm:$0xff]  }
 0x2ac   : > { %v1380_v6 = vpop.f32.mrf.mxu1 }
 0x2ad   : > { %v1385_v21 = vadd.f32 %v1380_v6, %v1253_v16  ;;  %v2944_v16 = vld [vmem:[%s3570_s10] sm:$0xff]  }
 0x2ae   : > { %v2706_v7 = vpop.f32.mrf.mxu1 }
 0x2b2   : > { %v1494_v8 = vpop.f32.mrf.mxu0 }
 0x2b3   : > { %v1501_v18 = vadd.f32 %v1494_v8, %v1384_v15  ;;  %v2943_v15 = vld [vmem:[%s3570_s10 + $0x8] sm:$0xff]  }
 0x2b4   : > { %v2725_v9 = vpop.f32.mrf.mxu0 }
 0x2b5   : > { %v2937_v9 = vld [vmem:[%s3570_s10 + $0x38] sm:$0xff]  }
 0x2b6   : > { %v1497_v10 = vpop.f32.mrf.mxu0 }
 0x2b7   : > { %v1502_v24 = vadd.f32 %v1497_v10, %v1385_v21  ;;  %v2938_v10 = vld [vmem:[%s3570_s10 + $0x30] sm:$0xff]  }
 0x2b8   : > { %v2726_v11 = vpop.f32.mrf.mxu0 }
 0x2b9   : > { %v2939_v11 = vld [vmem:[%s3570_s10 + $0x28] sm:$0xff]  }
 0x2c8   : > { %v1610_v19 = vpop.f32.mrf.mxu1 }
 0x2c9   : > { %v1617_v22 = vadd.f32 %v1610_v19, %v1501_v18 }
 0x2ca   : > { %v2745_v23 = vpop.f32.mrf.mxu1 }
 0x2cb   : > { %v1626_v25 = vadd.f32 %v2383_v20, %v1617_v22 }
 0x2cc   : > { %v1613_v26 = vpop.f32.mrf.mxu1 }
 0x2cd   : > { %v1628_v28 = vmax.f32 %v1626_v25, 0.0  ;;  %v1618_v29 = vadd.f32 %v1613_v26, %v1502_v24 }
 0x2ce   : > { %v2746_v27 = vpop.f32.mrf.mxu1 }
 0x2cf   : > { %v2461_v30 = vpack.c.bf16 %v1628_v28, %v1628_v28  ;;  %v1627_v31 = vadd.f32 %v2383_v20, %v1618_v29 }
 0x2d1   : > { %v1640_v32 = vshrl.u32 %v2461_v30, 16  ;;  %v1629_v33 = vmax.f32 %v1627_v31, 0.0  ;;  %v1643_v35 = vshll.u32 %v2461_v30, 16 }
 0x2d3   : > { %v1642_v34 = vrot.slane %v1640_v32, 7  ;;  %v2462_v36 = vpack.c.bf16 %v1629_v33, %v1629_v33 }
 0x2d5   : > { %v1645_v38 = vor.u32 %v1643_v35, %v1642_v34  ;;  %v1648_v39 = vshrl.u32 %v2462_v36, 16  ;;  %v1651_v42 = vshll.u32 %v2462_v36, 16  ;;  %v1646_v44 = vrot.slane %v1642_v34, 4 }
 0x2d7   : > { %v1660_v40 = vsel %vm3099_vm3, %v1645_v38, %v1659_v37  ;;  %v1650_v41 = vrot.slane %v1648_v39, 7  ;;  %v2446_v39 = vld [vmem:[%s3571_s11] ss:$0 sm:$0xff] }
 0x2d8   : > { %1661 = vst [vmem:[#allocation4] sm:$0xf] %v1660_v40 }
 0x2d9   : > { %v1653_v45 = vor.u32 %v1651_v42, %v1650_v41  ;;  %v1655_v46 = vrot.slane %v1650_v41, 4 }
 0x2db   : > { %v1654_v47 = vsel %vm3194_vm7, %v1646_v44, %v1653_v45  ;;  %v1664_v48 = vsel %vm3233_vm9, %v1655_v46, %v1663_v43 }
 0x2dc   : > { %1662 = vst [vmem:[#allocation4 + $0x4] sm:$0xf] %v1654_v47  ;;  %1665 = vst [vmem:[#allocation4 + $0x8] sm:$0x1] %v1664_v48 }
 0x2df   : > { %v1666_v49 = vld [vmem:[#allocation4] sm:$0xf] }
 0x2e0   : > { %v1902_v2 = vld [vmem:[#allocation4] sm:$0xe] }
 0x2e3   : > { %v1667_v50 = vld [vmem:[#allocation4 + $0x4] sm:$0xf]  ;;  %v2927_v17 = vld [vmem:[#allocation4 + $0x8] ss:$0 sps:$4 sm:$0x11]  }
 0x2e4   : > { %v2402_v51 = vcombine.low %v1666_v49, %v1667_v50  ;;  %v1718_v53 = vshll.u32 %v2927_v17, 16  ;;  %v2436_v3 = vcombine.low %v1902_v2, %v1667_v50  ;;  %v1924_v7 = vrot.slane %v2927_v17, 1 }
 0x2e6   : > { %2784 = vmatmul.mubr.bf16.vlgmr.msra.gmra.mxu1 %v2402_v51  ;;  %v1713_v52 = vshll.u32 %v2402_v51, 16  ;;  %v1711_v54 = vshrl.u32 %v2402_v51, 16  ;;  %v1720_v55 = vrot.slane %v1718_v53, 1  ;;  %v1923_v6 = vrot.slane %v2436_v3, 1 }
 0x2e7   : > { %2823 = vmatprep.mubr.msk.bf16.mxu1 %vm2954_vm0, %v2953_v1  ;;  %2808 = vmatpush3.bf16.msra.mxu1 %v2937_v9 }
 0x2e8   : > { %v1715_v56 = vrot.slane %v1713_v52, 1  ;;  %v1925_v8 = vsel %vm1407_vm11, %v1923_v6, %v1924_v7  ;;  %2809 = vmatprep.subr.bf16.mxu1 %v2953_v1 }
 0x2ea   : > { %v1716_v57 = vor.u32 %v1715_v56, %v1711_v54 }
 0x2eb   : > { %2810 = vmatpush3.bf16.msra.mxu1 %v2938_v10 }
 0x2ec   : > { %v1721_v58 = vsel %vm1149_vm10, %v1716_v57, %v1720_v55  ;;  %2811 = vmatprep.subr.bf16.mxu1 %v2953_v1 }
 0x2ed   : > { %2764 = vmatmul.mubr.bf16.vlgmr.msra.gmra.mxu0 %v1721_v58 }
 0x2ee   : > { %2788 = vmatpush3.bf16.msra.mxu0 %v2928_v4  ;;  %2803 = vmatprep.mubr.msk.bf16.mxu0 %vm2954_vm0, %v2953_v1 }
 0x2ef   : > { %2789 = vmatprep.subr.bf16.mxu0 %v2953_v1  ;;  %2812 = vmatpush3.bf16.msra.mxu1 %v2939_v11 }
 0x2f0   : > { %2813 = vmatprep.subr.bf16.mxu1 %v2953_v1 }
 0x2f2   : > { %2790 = vmatpush3.bf16.msra.mxu0 %v2929_v59 }
 0x2f3   : > { %2791 = vmatprep.subr.bf16.mxu0 %v2953_v1  ;;  %2814 = vmatpush3.bf16.msra.mxu1 %v2940_v12 }
 0x2f4   : > { %2815 = vmatprep.subr.bf16.mxu1 %v2953_v1 }
 0x2f6   : > { %2792 = vmatpush3.bf16.msra.mxu0 %v2930_v60 }
 0x2f7   : > { %2793 = vmatprep.subr.bf16.mxu0 %v2953_v1  ;;  %2816 = vmatpush3.bf16.msra.mxu1 %v2941_v13 }
 0x2f8   : > { %2817 = vmatprep.subr.bf16.mxu1 %v2953_v1 }
 0x2fa   : > { %2794 = vmatpush3.bf16.msra.mxu0 %v2931_v61 }
 0x2fb   : > { %2795 = vmatprep.subr.bf16.mxu0 %v2953_v1  ;;  %2818 = vmatpush3.bf16.msra.mxu1 %v2942_v14 }
 0x2fc   : > { %2819 = vmatprep.subr.bf16.mxu1 %v2953_v1 }
 0x2fe   : > { %2796 = vmatpush3.bf16.msra.mxu0 %v2932_v62 }
 0x2ff   : > { %2797 = vmatprep.subr.bf16.mxu0 %v2953_v1  ;;  %2820 = vmatpush3.bf16.msra.mxu1 %v2943_v15 }
 0x300   : > { %2821 = vmatprep.subr.bf16.mxu1 %v2953_v1 }
 0x302   : > { %2798 = vmatpush3.bf16.msra.mxu0 %v2933_v63 }
 0x303   : > { %2799 = vmatprep.subr.bf16.mxu0 %v2953_v1  ;;  %2822 = vmatpush3.bf16.msra.mxu1 %v2944_v16 }
 0x306   : > { %2800 = vmatpush3.bf16.msra.mxu0 %v2934_v0 }
 0x307   : > { %2801 = vmatprep.subr.bf16.mxu0 %v2953_v1  ;;  %v2445_v1 = vld [vmem:[%s3569_s9] ss:$0 sm:$0xff] }
 0x30a   : > { %2802 = vmatpush3.bf16.msra.mxu0 %v2935_v5 }
 0x30d   : > { %2804 = vmatmul.mubr.bf16.vlgmr.msra.gmra.mxu0 %v1925_v8 }
 0x3a6   : > { %v1895_v18 = vpop.f32.mrf.mxu1 }
 0x3a8   : > { %v2785_v19 = vpop.f32.mrf.mxu1 }
 0x3aa   : > { %v1898_v20 = vpop.f32.mrf.mxu1 }
 0x3ac   : > { %v2786_v21 = vpop.f32.mrf.mxu1 }
 0x3ad   : > { %v1805_v22 = vpop.f32.mrf.mxu0 }
 0x3ae   : > { %v1896_v26 = vadd.f32 %v1895_v18, %v1805_v22 }
 0x3af   : > { %v2765_v23 = vpop.f32.mrf.mxu0 }
 0x3b1   : > { %v1808_v24 = vpop.f32.mrf.mxu0 }
 0x3b2   : > { %v1899_v30 = vadd.f32 %v1898_v20, %v1808_v24 }
 0x3b3   : > { %v2766_v25 = vpop.f32.mrf.mxu0 }
 0x3cd   : > { %v2009_v28 = vpop.f32.mrf.mxu0 }
 0x3ce   : > { %v2016_v29 = vadd.f32 %v2009_v28, %v1896_v26 }
 0x3cf   : > { %v2805_v27 = vpop.f32.mrf.mxu0 }
 0x3d0   : > { %v2025_v32 = vadd.f32 %v2445_v1, %v2016_v29 }
 0x3d1   : > { %v2012_v31 = vpop.f32.mrf.mxu0 }
 0x3d2   : > { %v2017_v33 = vadd.f32 %v2012_v31, %v1899_v30  ;;  %v2027_v36 = vmax.f32 %v2025_v32, 0.0 }
 0x3d3   : > { %v2806_v34 = vpop.f32.mrf.mxu0 }
 0x3d4   : > { %v2026_v35 = vadd.f32 %v2445_v1, %v2017_v33 }
 0x3d6   : > { %v2028_v37 = vmax.f32 %v2026_v35, 0.0 }
 0x3d8   : > { %v2029_v38 = vpack.c.bf16 %v2028_v37, %v2027_v36 }
 0x3da   : > { %2824 = vmatmul.mubr.bf16.vlgmr.msra.gmra.mxu1 %v2029_v38 }
 0x49a   : > { %v2135_v40 = vpop.f32.mrf.mxu1 }
 0x49b   : > { %v2136_v41 = vadd.f32 %v2446_v39, %v2135_v40 }
 0x49c   : > { %v2825_v42 = vpop.f32.mrf.mxu1 }
 0x49d   : > { %2143 = vst.msk [vmem:[%s430_s19] sm:$0xff] %vm2142_vm12, %v2136_v41 }
 0x49e   : > { %v2138_v43 = vpop.f32.mrf.mxu1 }
 0x49f   : > { %v2139_v44 = vadd.f32 %v2446_v39, %v2138_v43 }
 0x4a0   : > { %v2826_v45 = vpop.f32.mrf.mxu1 }
 0x4a1   : > { %2144 = vst.msk [vmem:[%s430_s19 + $0x8] sm:$0xff] %vm2142_vm12, %v2139_v44 }
 0x4a2 PF: > { %s22_s21 = sadd.s32 1, %s2951_s21  }
 0x4a3   : > { %p19_p4 = scmp.ge.s32.totalorder %s22_s21, 4  }
 0x4a5   :  { %21 = sbr.rel (!%p19_p4) target bundleno = 1 (0x1), region = 109 }

</bundles_post_ra>
